<compile_context>
chip_gen: v5e
topology: v5e:2x2
jax: 0.10.0
libtpu: 0.0.40
codegen_flags: <defaults>
</compile_context>

<pallas_src>
import numpy as np

import jax
import jax.numpy as jnp
from jax.experimental import pallas as pl
from jax.experimental.pallas import tpu as pltpu


# ---------------------------------------------------------------------------
# In-kernel helpers and the fused kernel
# ---------------------------------------------------------------------------
def _conv_relu_pool(xp, H, wb_ref, brow_ref, sel_ref):
    """Batched conv(3x3, pad=1) + bias + ReLU + 2x2 maxpool.

    xp:       (B, H+2, K)        bf16 padded activations (zero border rows,
                                  zero K-padding columns), channel-minor.
    wb_ref:   (3, K, W*Cout)     bf16 banded weights (one band per row tap dy),
                                  output columns permuted: even-w blocks fill
                                  the first half of the lanes, odd-w the rest.
    brow_ref: (1, W*Cout)        f32 bias row.
    sel_ref:  (2, B*H/2, B*H)    bf16 even/odd row-selection matrices.
    returns:  (B*H/2, (W/2)*Cout) f32 pooled activations, rows ordered
              image-major / pooled-row minor.
    """
    B, _, K = xp.shape
    n_out = wb_ref.shape[2]

    # 3 banded matmuls (one per kernel row tap), stacked over the B images.
    acc = jnp.zeros((B * H, n_out), jnp.float32)
    for dy in range(3):
        xs = xp[:, dy:dy + H, :].reshape(B * H, K)          # (B*H, K) bf16
        acc = acc + jnp.dot(xs, wb_ref[dy], preferred_element_type=jnp.float32)

    acc = jnp.maximum(acc + brow_ref[...], 0.0)             # bias + ReLU (f32)

    # Width half of the 2x2 maxpool: aligned lane-half max (even-w vs odd-w
    # column blocks were separated when building the banded weight).
    half = n_out // 2
    yc = jnp.maximum(acc[:, :half], acc[:, half:]).astype(jnp.bfloat16)

    # Height half: max of even-row / odd-row selections via two MXU matmuls
    # with constant 0/1 matrices (no strided loads / reshapes in-kernel).
    pooled = jnp.maximum(
        jnp.dot(sel_ref[0], yc, preferred_element_type=jnp.float32),
        jnp.dot(sel_ref[1], yc, preferred_element_type=jnp.float32))
    return pooled                                            # (B*H/2, half) f32


def _fused_cnn_kernel(x_ref, wb1_ref, brow1_ref, wb2_ref, brow2_ref,
                      wb3_ref, brow3_ref, wfc_ref, bfc_ref,
                      sel1_ref, sel2_ref, sel3_ref, selfc_ref,
                      o_ref, x2_ref, x3_ref):
    B = x_ref.shape[0]
    zrow = jnp.zeros((B, 1, 256), jnp.bfloat16)

    # ---- stage 1: 32x32x3 -> 16x16x16 ----------------------------------
    p1 = _conv_relu_pool(x_ref[...], 32, wb1_ref, brow1_ref, sel1_ref)   # (B*16,256)

    # In-kernel zero padding for stage 2 (height pad = 1): border rows zero,
    # data in rows 1..16 of the VMEM scratch.
    x2_ref[:, 0:1, :] = zrow
    x2_ref[:, 17:18, :] = zrow
    x2_ref[:, 1:17, :] = p1.reshape(B, 16, 256).astype(jnp.bfloat16)

    # ---- stage 2: 16x16x16 -> 8x8x32 ------------------------------------
    p2 = _conv_relu_pool(x2_ref[...], 16, wb2_ref, brow2_ref, sel2_ref)  # (B*8,256)

    x3_ref[:, 0:1, :] = zrow
    x3_ref[:, 9:10, :] = zrow
    x3_ref[:, 1:9, :] = p2.reshape(B, 8, 256).astype(jnp.bfloat16)

    # ---- stage 3: 8x8x32 -> 4x4x64 ---------------------------------------
    p3 = _conv_relu_pool(x3_ref[...], 8, wb3_ref, brow3_ref, sel3_ref)   # (B*4,256)
    p3 = p3.astype(jnp.bfloat16)

    # ---- fused FC: logits[b] = sum_h pooled3[b, h, :] @ Wh[h] + b --------
    acc = jnp.zeros((B, 128), jnp.float32) + bfc_ref[...]
    for h in range(4):
        rows_h = jnp.dot(selfc_ref[h], p3,
                         preferred_element_type=jnp.float32)             # (B,256)
        acc = acc + jnp.dot(rows_h.astype(jnp.bfloat16), wfc_ref[h],
                            preferred_element_type=jnp.float32)
    o_ref[...] = acc


# ---------------------------------------------------------------------------
# Host-side constants (selection matrices, trace-time, depend only on B)
# ---------------------------------------------------------------------------
def _sel_pool(m_out):
    """(2, m_out, 2*m_out): [0] selects even rows, [1] odd rows."""
    s = np.zeros((2, m_out, 2 * m_out), np.float32)
    r = np.arange(m_out)
    s[0, r, 2 * r] = 1.0
    s[1, r, 2 * r + 1] = 1.0
    return jnp.asarray(s, jnp.bfloat16)


def _sel_fc(b):
    """(4, b, 4*b): [h] selects row (4*img + h) of the stage-3 pooled block."""
    s = np.zeros((4, b, 4 * b), np.float32)
    for h in range(4):
        s[h, np.arange(b), 4 * np.arange(b) + h] = 1.0
    return jnp.asarray(s, jnp.bfloat16)


# ---------------------------------------------------------------------------
# Forward pass wrapper (single pallas_call, grid over batch blocks)
# ---------------------------------------------------------------------------
@jax.jit
def cifar_cnn_forward(x_nchw, params):
    """Forward of CIFAR_CNN_Net_test (activation instantiated as ReLU)."""
    N = x_nchw.shape[0]
    B = N if N < 8 else 8                      # images per grid step
    Np = ((N + B - 1) // B) * B                # pad batch to a multiple of B
    n_steps = Np // B

    # NCHW -> per-image (H, W*C) channel-minor rows, bf16; pad height by 1 on
    # each side and pad K (32*3 = 96) up to 128 lanes with zeros.
    x = jnp.transpose(x_nchw, (0, 2, 3, 1)).reshape(N, 32, 96).astype(jnp.bfloat16)
    x = jnp.pad(x, ((0, Np - N), (1, 1), (0, 32)))                  # (Np, 34, 128)

    sel1 = _sel_pool(B * 16)
    sel2 = _sel_pool(B * 8)
    sel3 = _sel_pool(B * 4)
    selfc = _sel_fc(B)

    c2 = lambda n: (0, 0)
    c3 = lambda n: (0, 0, 0)

    conv_flops = 2 * (32 * 32 * 27 * 16 + 16 * 16 * 144 * 32 + 8 * 8 * 288 * 64
                      + 1024 * 10)
    weight_bytes = (params["wb1"].size + params["wb2"].size + params["wb3"].size
                    + params["wfc"].size) * 2
    cost = pl.CostEstimate(flops=Np * conv_flops, transcendentals=0,
                           bytes_accessed=int(x.size * 2 + Np * 128 * 4
                                              + weight_bytes))

    out = pl.pallas_call(
        _fused_cnn_kernel,
        out_shape=jax.ShapeDtypeStruct((Np, 128), jnp.float32),
        grid=(n_steps,),
        in_specs=[
            pl.BlockSpec((B, 34, 128), lambda n: (n, 0, 0)),
            pl.BlockSpec(params["wb1"].shape, c3),
            pl.BlockSpec(params["brow1"].shape, c2),
            pl.BlockSpec(params["wb2"].shape, c3),
            pl.BlockSpec(params["brow2"].shape, c2),
            pl.BlockSpec(params["wb3"].shape, c3),
            pl.BlockSpec(params["brow3"].shape, c2),
            pl.BlockSpec(params["wfc"].shape, c3),
            pl.BlockSpec(params["bfc"].shape, c2),
            pl.BlockSpec(sel1.shape, c3),
            pl.BlockSpec(sel2.shape, c3),
            pl.BlockSpec(sel3.shape, c3),
            pl.BlockSpec(selfc.shape, c3),
        ],
        out_specs=pl.BlockSpec((B, 128), lambda n: (n, 0)),
        scratch_shapes=[
            pltpu.VMEM((B, 18, 256), jnp.bfloat16),   # padded stage-2 input
            pltpu.VMEM((B, 10, 256), jnp.bfloat16),   # padded stage-3 input
        ],
        compiler_params=pltpu.CompilerParams(
            dimension_semantics=("parallel",),
            vmem_limit_bytes=48 * 1024 * 1024,
        ),
        cost_estimate=cost,
    )(x, params["wb1"], params["brow1"], params["wb2"], params["brow2"],
      params["wb3"], params["brow3"], params["wfc"], params["bfc"],
      sel1, sel2, sel3, selfc)

    return out[:N, :10]


# ---------------------------------------------------------------------------
# Host-side parameter packing (torch layouts -> banded / permuted matrices)
# ---------------------------------------------------------------------------
def _build_banded_conv(w_oihw, width, k_pad):
    """(O, I, 3, 3) torch conv weight -> (3, k_pad, width*O) banded weight.

    Input K layout is the UNPADDED width (w*I + c); edge taps that would read
    the pad=1 zero border are simply omitted (zero rows).  Output columns are
    permuted: even-w channel blocks occupy the first (width//2)*O columns,
    odd-w blocks the last (width//2)*O columns (for the lane-half width pool).
    """
    w = np.asarray(w_oihw, np.float32)
    o, i = w.shape[0], w.shape[1]
    half = (width // 2) * o
    wb = np.zeros((3, k_pad, width * o), np.float32)
    for wcol in range(width):
        base = (wcol // 2) * o + (0 if wcol % 2 == 0 else half)
        for dx in range(3):
            win = wcol + dx - 1                       # input width pos (pad=1)
            if 0 <= win < width:
                # block[dy, c, o] = w[o, c, dy, dx]
                wb[:, win * i:(win + 1) * i, base:base + o] = np.transpose(
                    w[:, :, :, dx], (2, 1, 0))
    return jnp.asarray(wb, jnp.bfloat16)


def _build_bias_row(b, width):
    b = np.asarray(b, np.float32)
    return jnp.asarray(np.tile(b, width)[None, :], jnp.float32)   # (1, W*Cout)


def _build_fc_params(wfc_torch, bfc_torch):
    # torch fc weight (10, 4*4*64); torch flatten index = c*16 + h*4 + w.
    # Stage-3 pooled layout is pooled[h, w*64 + c]  ->  build per-h weights
    # Wh[h][w*64+c, k] so the kernel consumes our layout directly.
    w = np.asarray(wfc_torch, np.float32)
    wmat = np.zeros((4, 4 * 64, 128), np.float32)                 # (h, w*64+c, k)
    wmat[:, :, :10] = w.reshape(10, 64, 4, 4).transpose(2, 3, 1, 0).reshape(4, 256, 10)
    b = np.zeros((1, 128), np.float32)
    b[0, :10] = np.asarray(bfc_torch, np.float32)
    return jnp.asarray(wmat, jnp.bfloat16), jnp.asarray(b, jnp.float32)


def pack_params(raw):
    wfc, bfc = _build_fc_params(raw["wfc"], raw["bfc"])
    return {
        "wb1": _build_banded_conv(raw["w1"], 32, 128), "brow1": _build_bias_row(raw["b1"], 32),
        "wb2": _build_banded_conv(raw["w2"], 16, 256), "brow2": _build_bias_row(raw["b2"], 16),
        "wb3": _build_banded_conv(raw["w3"], 8, 256),  "brow3": _build_bias_row(raw["b3"], 8),
        "wfc": wfc, "bfc": bfc,
    }


def init_params(key):
    ks = jax.random.split(key, 8)

    def rnd(k, shape, scale):
        w = jax.random.normal(k, shape, jnp.float32) * scale
        return w.astype(jnp.bfloat16).astype(jnp.float32)   # match bf16 storage

    raw = {
        "w1": rnd(ks[0], (16, 3, 3, 3), 0.1),   "b1": rnd(ks[1], (16,), 0.1),
        "w2": rnd(ks[2], (32, 16, 3, 3), 0.05), "b2": rnd(ks[3], (32,), 0.1),
        "w3": rnd(ks[4], (64, 32, 3, 3), 0.05), "b3": rnd(ks[5], (64,), 0.1),
        "wfc": rnd(ks[6], (10, 4 * 4 * 64), 0.02), "bfc": rnd(ks[7], (10,), 0.1),
    }
    return pack_params(raw), raw


# ---------------------------------------------------------------------------
# Pure-JAX reference (same torch semantics) for a numerical sanity check
# ---------------------------------------------------------------------------
@jax.jit
def _reference_forward(x, raw):
    dn = ("NCHW", "OIHW", "NCHW")

    def conv(x, w, b):
        y = jax.lax.conv_general_dilated(
            x, w, window_strides=(1, 1), padding=((1, 1), (1, 1)),
            dimension_numbers=dn, precision=jax.lax.Precision.HIGHEST)
        return jax.nn.relu(y + b[None, :, None, None])

    def pool(x):
        return jax.lax.reduce_window(x, -jnp.inf, jax.lax.max,
                                     (1, 1, 2, 2), (1, 1, 2, 2), "VALID")

    x = pool(conv(x, raw["w1"], raw["b1"]))
    x = pool(conv(x, raw["w2"], raw["b2"]))
    x = pool(conv(x, raw["w3"], raw["b3"]))
    x = x.reshape(x.shape[0], -1)                       # NCHW flatten, like torch
    return jnp.dot(x, raw["wfc"].T,
                   precision=jax.lax.Precision.HIGHEST) + raw["bfc"]


if __name__ == "__main__":
    key = jax.random.PRNGKey(0)
    pkey, xkey = jax.random.split(key)
    params, raw = init_params(pkey)
    # The module implies 3 input channels and 32x32 spatial (fc = 4*4*64).
    x = jax.random.normal(xkey, (2, 3, 32, 32), jnp.float32)

    out = jax.block_until_ready(cifar_cnn_forward(x, params))
    assert out.shape == (2, 10) and out.dtype == jnp.float32

    ref = jax.block_until_ready(_reference_forward(x, raw))
    err = float(jnp.max(jnp.abs(out - ref)))
    assert err < 5e-2, f"max abs error vs reference: {err}"

    print("KERNEL_OK")
</pallas_src>

<mosaic_0001>
module attributes {stable_mosaic.version = 11 : i64} {
  func.func @_fused_cnn_kernel(%arg0: i32, %arg1: memref<2x34x128xbf16, #tpu.memory_space<vmem>>, %arg2: memref<3x128x512xbf16, #tpu.memory_space<vmem>>, %arg3: memref<1x512xf32, #tpu.memory_space<vmem>>, %arg4: memref<3x256x512xbf16, #tpu.memory_space<vmem>>, %arg5: memref<1x512xf32, #tpu.memory_space<vmem>>, %arg6: memref<3x256x512xbf16, #tpu.memory_space<vmem>>, %arg7: memref<1x512xf32, #tpu.memory_space<vmem>>, %arg8: memref<4x256x128xbf16, #tpu.memory_space<vmem>>, %arg9: memref<1x128xf32, #tpu.memory_space<vmem>>, %arg10: memref<2x32x64xbf16, #tpu.memory_space<vmem>>, %arg11: memref<2x16x32xbf16, #tpu.memory_space<vmem>>, %arg12: memref<2x8x16xbf16, #tpu.memory_space<vmem>>, %arg13: memref<4x2x8xbf16, #tpu.memory_space<vmem>>, %arg14: memref<2x128xf32, #tpu.memory_space<vmem>>, %arg15: memref<2x18x256xbf16, #tpu.memory_space<vmem>>, %arg16: memref<2x10x256xbf16, #tpu.memory_space<vmem>>) attributes {dimension_semantics = [#tpu.dimension_semantics<parallel>], iteration_bounds = array<i64: 1>, scalar_prefetch = 0 : i64, scratch_operands = 2 : i64, tpu.core_type = #tpu.core_type<tc>, window_params = [{transform_indices = @transform_0, window_bounds = array<i64: 2, 34, 128>}, {pipeline_mode = #tpu.pipeline_mode<synchronous>, transform_indices = @transform_1, window_bounds = array<i64: 3, 128, 512>}, {pipeline_mode = #tpu.pipeline_mode<synchronous>, transform_indices = @transform_2, window_bounds = array<i64: 1, 512>}, {pipeline_mode = #tpu.pipeline_mode<synchronous>, transform_indices = @transform_3, window_bounds = array<i64: 3, 256, 512>}, {pipeline_mode = #tpu.pipeline_mode<synchronous>, transform_indices = @transform_4, window_bounds = array<i64: 1, 512>}, {pipeline_mode = #tpu.pipeline_mode<synchronous>, transform_indices = @transform_5, window_bounds = array<i64: 3, 256, 512>}, {pipeline_mode = #tpu.pipeline_mode<synchronous>, transform_indices = @transform_6, window_bounds = array<i64: 1, 512>}, {pipeline_mode = #tpu.pipeline_mode<synchronous>, transform_indices = @transform_7, window_bounds = array<i64: 4, 256, 128>}, {pipeline_mode = #tpu.pipeline_mode<synchronous>, transform_indices = @transform_8, window_bounds = array<i64: 1, 128>}, {pipeline_mode = #tpu.pipeline_mode<synchronous>, transform_indices = @transform_9, window_bounds = array<i64: 2, 32, 64>}, {pipeline_mode = #tpu.pipeline_mode<synchronous>, transform_indices = @transform_10, window_bounds = array<i64: 2, 16, 32>}, {pipeline_mode = #tpu.pipeline_mode<synchronous>, transform_indices = @transform_11, window_bounds = array<i64: 2, 8, 16>}, {pipeline_mode = #tpu.pipeline_mode<synchronous>, transform_indices = @transform_12, window_bounds = array<i64: 4, 2, 8>}, {transform_indices = @transform_13, window_bounds = array<i64: 2, 128>}]} {
    %cst = arith.constant 0.000000e+00 : bf16
    %0 = vector.broadcast %cst : bf16 to vector<2x1x256xbf16>
    %c0 = arith.constant 0 : index
    %c0_0 = arith.constant 0 : index
    %c0_1 = arith.constant 0 : index
    %1 = vector.load %arg1[%c0, %c0_0, %c0_1] : memref<2x34x128xbf16, #tpu.memory_space<vmem>>, vector<2x34x128xbf16>
    %cst_2 = arith.constant 0.000000e+00 : f32
    %2 = vector.broadcast %cst_2 : f32 to vector<64x512xf32>
    %3 = vector.extract_strided_slice %1 {offsets = [0, 0, 0], sizes = [2, 32, 128], strides = [1, 1, 1]} : vector<2x34x128xbf16> to vector<2x32x128xbf16>
    %4 = vector.shape_cast %3 : vector<2x32x128xbf16> to vector<64x128xbf16>
    %c0_3 = arith.constant 0 : index
    %c0_4 = arith.constant 0 : index
    %c0_5 = arith.constant 0 : index
    %5 = vector.load %arg2[%c0_3, %c0_4, %c0_5] : memref<3x128x512xbf16, #tpu.memory_space<vmem>>, vector<1x128x512xbf16>
    %6 = vector.shape_cast %5 : vector<1x128x512xbf16> to vector<128x512xbf16>
    %cst_6 = arith.constant dense<0.000000e+00> : vector<64x512xf32>
    %7 = tpu.matmul %4, %6, %cst_6 {dimension_numbers = #tpu.dot_dimension_numbers<[1], [0], [0], [1], [0, 0, 1, 1], [], []>} : vector<64x128xbf16>, vector<128x512xbf16>, vector<64x512xf32> -> vector<64x512xf32>
    %8 = arith.addf %2, %7 : vector<64x512xf32>
    %9 = vector.extract_strided_slice %1 {offsets = [0, 1, 0], sizes = [2, 32, 128], strides = [1, 1, 1]} : vector<2x34x128xbf16> to vector<2x32x128xbf16>
    %10 = vector.shape_cast %9 : vector<2x32x128xbf16> to vector<64x128xbf16>
    %c1 = arith.constant 1 : index
    %c0_7 = arith.constant 0 : index
    %c0_8 = arith.constant 0 : index
    %11 = vector.load %arg2[%c1, %c0_7, %c0_8] : memref<3x128x512xbf16, #tpu.memory_space<vmem>>, vector<1x128x512xbf16>
    %12 = vector.shape_cast %11 : vector<1x128x512xbf16> to vector<128x512xbf16>
    %cst_9 = arith.constant dense<0.000000e+00> : vector<64x512xf32>
    %13 = tpu.matmul %10, %12, %cst_9 {dimension_numbers = #tpu.dot_dimension_numbers<[1], [0], [0], [1], [0, 0, 1, 1], [], []>} : vector<64x128xbf16>, vector<128x512xbf16>, vector<64x512xf32> -> vector<64x512xf32>
    %14 = arith.addf %8, %13 : vector<64x512xf32>
    %15 = vector.extract_strided_slice %1 {offsets = [0, 2, 0], sizes = [2, 32, 128], strides = [1, 1, 1]} : vector<2x34x128xbf16> to vector<2x32x128xbf16>
    %16 = vector.shape_cast %15 : vector<2x32x128xbf16> to vector<64x128xbf16>
    %c2 = arith.constant 2 : index
    %c0_10 = arith.constant 0 : index
    %c0_11 = arith.constant 0 : index
    %17 = vector.load %arg2[%c2, %c0_10, %c0_11] : memref<3x128x512xbf16, #tpu.memory_space<vmem>>, vector<1x128x512xbf16>
    %18 = vector.shape_cast %17 : vector<1x128x512xbf16> to vector<128x512xbf16>
    %cst_12 = arith.constant dense<0.000000e+00> : vector<64x512xf32>
    %19 = tpu.matmul %16, %18, %cst_12 {dimension_numbers = #tpu.dot_dimension_numbers<[1], [0], [0], [1], [0, 0, 1, 1], [], []>} : vector<64x128xbf16>, vector<128x512xbf16>, vector<64x512xf32> -> vector<64x512xf32>
    %20 = arith.addf %14, %19 : vector<64x512xf32>
    %c0_13 = arith.constant 0 : index
    %c0_14 = arith.constant 0 : index
    %21 = vector.load %arg3[%c0_13, %c0_14] : memref<1x512xf32, #tpu.memory_space<vmem>>, vector<1x512xf32>
    %22 = vector.broadcast %21 : vector<1x512xf32> to vector<64x512xf32>
    %23 = arith.addf %20, %22 : vector<64x512xf32>
    %cst_15 = arith.constant 0.000000e+00 : f32
    %24 = vector.broadcast %cst_15 : f32 to vector<64x512xf32>
    %25 = arith.maximumf %23, %24 : vector<64x512xf32>
    %26 = vector.extract_strided_slice %25 {offsets = [0, 0], sizes = [64, 256], strides = [1, 1]} : vector<64x512xf32> to vector<64x256xf32>
    %27 = vector.extract_strided_slice %25 {offsets = [0, 256], sizes = [64, 256], strides = [1, 1]} : vector<64x512xf32> to vector<64x256xf32>
    %28 = arith.maximumf %26, %27 : vector<64x256xf32>
    %29 = arith.truncf %28 : vector<64x256xf32> to vector<64x256xbf16>
    %c0_16 = arith.constant 0 : index
    %c0_17 = arith.constant 0 : index
    %c0_18 = arith.constant 0 : index
    %30 = vector.load %arg10[%c0_16, %c0_17, %c0_18] : memref<2x32x64xbf16, #tpu.memory_space<vmem>>, vector<1x32x64xbf16>
    %31 = vector.shape_cast %30 : vector<1x32x64xbf16> to vector<32x64xbf16>
    %cst_19 = arith.constant dense<0.000000e+00> : vector<32x256xf32>
    %32 = tpu.matmul %31, %29, %cst_19 {dimension_numbers = #tpu.dot_dimension_numbers<[1], [0], [0], [1], [0, 0, 1, 1], [], []>} : vector<32x64xbf16>, vector<64x256xbf16>, vector<32x256xf32> -> vector<32x256xf32>
    %c1_20 = arith.constant 1 : index
    %c0_21 = arith.constant 0 : index
    %c0_22 = arith.constant 0 : index
    %33 = vector.load %arg10[%c1_20, %c0_21, %c0_22] : memref<2x32x64xbf16, #tpu.memory_space<vmem>>, vector<1x32x64xbf16>
    %34 = vector.shape_cast %33 : vector<1x32x64xbf16> to vector<32x64xbf16>
    %cst_23 = arith.constant dense<0.000000e+00> : vector<32x256xf32>
    %35 = tpu.matmul %34, %29, %cst_23 {dimension_numbers = #tpu.dot_dimension_numbers<[1], [0], [0], [1], [0, 0, 1, 1], [], []>} : vector<32x64xbf16>, vector<64x256xbf16>, vector<32x256xf32> -> vector<32x256xf32>
    %36 = arith.maximumf %32, %35 : vector<32x256xf32>
    %c0_24 = arith.constant 0 : index
    %c0_25 = arith.constant 0 : index
    %c0_26 = arith.constant 0 : index
    %37 = vector.load %arg15[%c0_24, %c0_25, %c0_26] : memref<2x18x256xbf16, #tpu.memory_space<vmem>>, vector<2x1x256xbf16>
    tpu.vector_store %arg15[%c0_24, %c0_25, %c0_26], %0 {strides = array<i32>} : memref<2x18x256xbf16, #tpu.memory_space<vmem>>, vector<2x1x256xbf16>,
    %c0_27 = arith.constant 0 : index
    %c17 = arith.constant 17 : index
    %c0_28 = arith.constant 0 : index
    %38 = vector.load %arg15[%c0_27, %c17, %c0_28] : memref<2x18x256xbf16, #tpu.memory_space<vmem>>, vector<2x1x256xbf16>
    tpu.vector_store %arg15[%c0_27, %c17, %c0_28], %0 {strides = array<i32>} : memref<2x18x256xbf16, #tpu.memory_space<vmem>>, vector<2x1x256xbf16>,
    %39 = vector.shape_cast %36 : vector<32x256xf32> to vector<2x16x256xf32>
    %40 = arith.truncf %39 : vector<2x16x256xf32> to vector<2x16x256xbf16>
    %c0_29 = arith.constant 0 : index
    %c1_30 = arith.constant 1 : index
    %c0_31 = arith.constant 0 : index
    %41 = vector.load %arg15[%c0_29, %c1_30, %c0_31] : memref<2x18x256xbf16, #tpu.memory_space<vmem>>, vector<2x16x256xbf16>
    tpu.vector_store %arg15[%c0_29, %c1_30, %c0_31], %40 {strides = array<i32>} : memref<2x18x256xbf16, #tpu.memory_space<vmem>>, vector<2x16x256xbf16>,
    %c0_32 = arith.constant 0 : index
    %c0_33 = arith.constant 0 : index
    %c0_34 = arith.constant 0 : index
    %42 = vector.load %arg15[%c0_32, %c0_33, %c0_34] : memref<2x18x256xbf16, #tpu.memory_space<vmem>>, vector<2x18x256xbf16>
    %cst_35 = arith.constant 0.000000e+00 : f32
    %43 = vector.broadcast %cst_35 : f32 to vector<32x512xf32>
    %44 = vector.extract_strided_slice %42 {offsets = [0, 0, 0], sizes = [2, 16, 256], strides = [1, 1, 1]} : vector<2x18x256xbf16> to vector<2x16x256xbf16>
    %45 = vector.shape_cast %44 : vector<2x16x256xbf16> to vector<32x256xbf16>
    %c0_36 = arith.constant 0 : index
    %c0_37 = arith.constant 0 : index
    %c0_38 = arith.constant 0 : index
    %46 = vector.load %arg4[%c0_36, %c0_37, %c0_38] : memref<3x256x512xbf16, #tpu.memory_space<vmem>>, vector<1x256x512xbf16>
    %47 = vector.shape_cast %46 : vector<1x256x512xbf16> to vector<256x512xbf16>
    %cst_39 = arith.constant dense<0.000000e+00> : vector<32x512xf32>
    %48 = tpu.matmul %45, %47, %cst_39 {dimension_numbers = #tpu.dot_dimension_numbers<[1], [0], [0], [1], [0, 0, 1, 1], [], []>} : vector<32x256xbf16>, vector<256x512xbf16>, vector<32x512xf32> -> vector<32x512xf32>
    %49 = arith.addf %43, %48 : vector<32x512xf32>
    %50 = vector.extract_strided_slice %42 {offsets = [0, 1, 0], sizes = [2, 16, 256], strides = [1, 1, 1]} : vector<2x18x256xbf16> to vector<2x16x256xbf16>
    %51 = vector.shape_cast %50 : vector<2x16x256xbf16> to vector<32x256xbf16>
    %c1_40 = arith.constant 1 : index
    %c0_41 = arith.constant 0 : index
    %c0_42 = arith.constant 0 : index
    %52 = vector.load %arg4[%c1_40, %c0_41, %c0_42] : memref<3x256x512xbf16, #tpu.memory_space<vmem>>, vector<1x256x512xbf16>
    %53 = vector.shape_cast %52 : vector<1x256x512xbf16> to vector<256x512xbf16>
    %cst_43 = arith.constant dense<0.000000e+00> : vector<32x512xf32>
    %54 = tpu.matmul %51, %53, %cst_43 {dimension_numbers = #tpu.dot_dimension_numbers<[1], [0], [0], [1], [0, 0, 1, 1], [], []>} : vector<32x256xbf16>, vector<256x512xbf16>, vector<32x512xf32> -> vector<32x512xf32>
    %55 = arith.addf %49, %54 : vector<32x512xf32>
    %56 = vector.extract_strided_slice %42 {offsets = [0, 2, 0], sizes = [2, 16, 256], strides = [1, 1, 1]} : vector<2x18x256xbf16> to vector<2x16x256xbf16>
    %57 = vector.shape_cast %56 : vector<2x16x256xbf16> to vector<32x256xbf16>
    %c2_44 = arith.constant 2 : index
    %c0_45 = arith.constant 0 : index
    %c0_46 = arith.constant 0 : index
    %58 = vector.load %arg4[%c2_44, %c0_45, %c0_46] : memref<3x256x512xbf16, #tpu.memory_space<vmem>>, vector<1x256x512xbf16>
    %59 = vector.shape_cast %58 : vector<1x256x512xbf16> to vector<256x512xbf16>
    %cst_47 = arith.constant dense<0.000000e+00> : vector<32x512xf32>
    %60 = tpu.matmul %57, %59, %cst_47 {dimension_numbers = #tpu.dot_dimension_numbers<[1], [0], [0], [1], [0, 0, 1, 1], [], []>} : vector<32x256xbf16>, vector<256x512xbf16>, vector<32x512xf32> -> vector<32x512xf32>
    %61 = arith.addf %55, %60 : vector<32x512xf32>
    %c0_48 = arith.constant 0 : index
    %c0_49 = arith.constant 0 : index
    %62 = vector.load %arg5[%c0_48, %c0_49] : memref<1x512xf32, #tpu.memory_space<vmem>>, vector<1x512xf32>
    %63 = vector.broadcast %62 : vector<1x512xf32> to vector<32x512xf32>
    %64 = arith.addf %61, %63 : vector<32x512xf32>
    %cst_50 = arith.constant 0.000000e+00 : f32
    %65 = vector.broadcast %cst_50 : f32 to vector<32x512xf32>
    %66 = arith.maximumf %64, %65 : vector<32x512xf32>
    %67 = vector.extract_strided_slice %66 {offsets = [0, 0], sizes = [32, 256], strides = [1, 1]} : vector<32x512xf32> to vector<32x256xf32>
    %68 = vector.extract_strided_slice %66 {offsets = [0, 256], sizes = [32, 256], strides = [1, 1]} : vector<32x512xf32> to vector<32x256xf32>
    %69 = arith.maximumf %67, %68 : vector<32x256xf32>
    %70 = arith.truncf %69 : vector<32x256xf32> to vector<32x256xbf16>
    %c0_51 = arith.constant 0 : index
    %c0_52 = arith.constant 0 : index
    %c0_53 = arith.constant 0 : index
    %71 = vector.load %arg11[%c0_51, %c0_52, %c0_53] : memref<2x16x32xbf16, #tpu.memory_space<vmem>>, vector<1x16x32xbf16>
    %72 = vector.shape_cast %71 : vector<1x16x32xbf16> to vector<16x32xbf16>
    %cst_54 = arith.constant dense<0.000000e+00> : vector<16x256xf32>
    %73 = tpu.matmul %72, %70, %cst_54 {dimension_numbers = #tpu.dot_dimension_numbers<[1], [0], [0], [1], [0, 0, 1, 1], [], []>} : vector<16x32xbf16>, vector<32x256xbf16>, vector<16x256xf32> -> vector<16x256xf32>
    %c1_55 = arith.constant 1 : index
    %c0_56 = arith.constant 0 : index
    %c0_57 = arith.constant 0 : index
    %74 = vector.load %arg11[%c1_55, %c0_56, %c0_57] : memref<2x16x32xbf16, #tpu.memory_space<vmem>>, vector<1x16x32xbf16>
    %75 = vector.shape_cast %74 : vector<1x16x32xbf16> to vector<16x32xbf16>
    %cst_58 = arith.constant dense<0.000000e+00> : vector<16x256xf32>
    %76 = tpu.matmul %75, %70, %cst_58 {dimension_numbers = #tpu.dot_dimension_numbers<[1], [0], [0], [1], [0, 0, 1, 1], [], []>} : vector<16x32xbf16>, vector<32x256xbf16>, vector<16x256xf32> -> vector<16x256xf32>
    %77 = arith.maximumf %73, %76 : vector<16x256xf32>
    %c0_59 = arith.constant 0 : index
    %c0_60 = arith.constant 0 : index
    %c0_61 = arith.constant 0 : index
    %78 = vector.load %arg16[%c0_59, %c0_60, %c0_61] : memref<2x10x256xbf16, #tpu.memory_space<vmem>>, vector<2x1x256xbf16>
    tpu.vector_store %arg16[%c0_59, %c0_60, %c0_61], %0 {strides = array<i32>} : memref<2x10x256xbf16, #tpu.memory_space<vmem>>, vector<2x1x256xbf16>,
    %c0_62 = arith.constant 0 : index
    %c9 = arith.constant 9 : index
    %c0_63 = arith.constant 0 : index
    %79 = vector.load %arg16[%c0_62, %c9, %c0_63] : memref<2x10x256xbf16, #tpu.memory_space<vmem>>, vector<2x1x256xbf16>
    tpu.vector_store %arg16[%c0_62, %c9, %c0_63], %0 {strides = array<i32>} : memref<2x10x256xbf16, #tpu.memory_space<vmem>>, vector<2x1x256xbf16>,
    %80 = vector.shape_cast %77 : vector<16x256xf32> to vector<2x8x256xf32>
    %81 = arith.truncf %80 : vector<2x8x256xf32> to vector<2x8x256xbf16>
    %c0_64 = arith.constant 0 : index
    %c1_65 = arith.constant 1 : index
    %c0_66 = arith.constant 0 : index
    %82 = vector.load %arg16[%c0_64, %c1_65, %c0_66] : memref<2x10x256xbf16, #tpu.memory_space<vmem>>, vector<2x8x256xbf16>
    tpu.vector_store %arg16[%c0_64, %c1_65, %c0_66], %81 {strides = array<i32>} : memref<2x10x256xbf16, #tpu.memory_space<vmem>>, vector<2x8x256xbf16>,
    %c0_67 = arith.constant 0 : index
    %c0_68 = arith.constant 0 : index
    %c0_69 = arith.constant 0 : index
    %83 = vector.load %arg16[%c0_67, %c0_68, %c0_69] : memref<2x10x256xbf16, #tpu.memory_space<vmem>>, vector<2x10x256xbf16>
    %cst_70 = arith.constant 0.000000e+00 : f32
    %84 = vector.broadcast %cst_70 : f32 to vector<16x512xf32>
    %85 = vector.extract_strided_slice %83 {offsets = [0, 0, 0], sizes = [2, 8, 256], strides = [1, 1, 1]} : vector<2x10x256xbf16> to vector<2x8x256xbf16>
    %86 = vector.shape_cast %85 : vector<2x8x256xbf16> to vector<16x256xbf16>
    %c0_71 = arith.constant 0 : index
    %c0_72 = arith.constant 0 : index
    %c0_73 = arith.constant 0 : index
    %87 = vector.load %arg6[%c0_71, %c0_72, %c0_73] : memref<3x256x512xbf16, #tpu.memory_space<vmem>>, vector<1x256x512xbf16>
    %88 = vector.shape_cast %87 : vector<1x256x512xbf16> to vector<256x512xbf16>
    %cst_74 = arith.constant dense<0.000000e+00> : vector<16x512xf32>
    %89 = tpu.matmul %86, %88, %cst_74 {dimension_numbers = #tpu.dot_dimension_numbers<[1], [0], [0], [1], [0, 0, 1, 1], [], []>} : vector<16x256xbf16>, vector<256x512xbf16>, vector<16x512xf32> -> vector<16x512xf32>
    %90 = arith.addf %84, %89 : vector<16x512xf32>
    %91 = vector.extract_strided_slice %83 {offsets = [0, 1, 0], sizes = [2, 8, 256], strides = [1, 1, 1]} : vector<2x10x256xbf16> to vector<2x8x256xbf16>
    %92 = vector.shape_cast %91 : vector<2x8x256xbf16> to vector<16x256xbf16>
    %c1_75 = arith.constant 1 : index
    %c0_76 = arith.constant 0 : index
    %c0_77 = arith.constant 0 : index
    %93 = vector.load %arg6[%c1_75, %c0_76, %c0_77] : memref<3x256x512xbf16, #tpu.memory_space<vmem>>, vector<1x256x512xbf16>
    %94 = vector.shape_cast %93 : vector<1x256x512xbf16> to vector<256x512xbf16>
    %cst_78 = arith.constant dense<0.000000e+00> : vector<16x512xf32>
    %95 = tpu.matmul %92, %94, %cst_78 {dimension_numbers = #tpu.dot_dimension_numbers<[1], [0], [0], [1], [0, 0, 1, 1], [], []>} : vector<16x256xbf16>, vector<256x512xbf16>, vector<16x512xf32> -> vector<16x512xf32>
    %96 = arith.addf %90, %95 : vector<16x512xf32>
    %97 = vector.extract_strided_slice %83 {offsets = [0, 2, 0], sizes = [2, 8, 256], strides = [1, 1, 1]} : vector<2x10x256xbf16> to vector<2x8x256xbf16>
    %98 = vector.shape_cast %97 : vector<2x8x256xbf16> to vector<16x256xbf16>
    %c2_79 = arith.constant 2 : index
    %c0_80 = arith.constant 0 : index
    %c0_81 = arith.constant 0 : index
    %99 = vector.load %arg6[%c2_79, %c0_80, %c0_81] : memref<3x256x512xbf16, #tpu.memory_space<vmem>>, vector<1x256x512xbf16>
    %100 = vector.shape_cast %99 : vector<1x256x512xbf16> to vector<256x512xbf16>
    %cst_82 = arith.constant dense<0.000000e+00> : vector<16x512xf32>
    %101 = tpu.matmul %98, %100, %cst_82 {dimension_numbers = #tpu.dot_dimension_numbers<[1], [0], [0], [1], [0, 0, 1, 1], [], []>} : vector<16x256xbf16>, vector<256x512xbf16>, vector<16x512xf32> -> vector<16x512xf32>
    %102 = arith.addf %96, %101 : vector<16x512xf32>
    %c0_83 = arith.constant 0 : index
    %c0_84 = arith.constant 0 : index
    %103 = vector.load %arg7[%c0_83, %c0_84] : memref<1x512xf32, #tpu.memory_space<vmem>>, vector<1x512xf32>
    %104 = vector.broadcast %103 : vector<1x512xf32> to vector<16x512xf32>
    %105 = arith.addf %102, %104 : vector<16x512xf32>
    %cst_85 = arith.constant 0.000000e+00 : f32
    %106 = vector.broadcast %cst_85 : f32 to vector<16x512xf32>
    %107 = arith.maximumf %105, %106 : vector<16x512xf32>
    %108 = vector.extract_strided_slice %107 {offsets = [0, 0], sizes = [16, 256], strides = [1, 1]} : vector<16x512xf32> to vector<16x256xf32>
    %109 = vector.extract_strided_slice %107 {offsets = [0, 256], sizes = [16, 256], strides = [1, 1]} : vector<16x512xf32> to vector<16x256xf32>
    %110 = arith.maximumf %108, %109 : vector<16x256xf32>
    %111 = arith.truncf %110 : vector<16x256xf32> to vector<16x256xbf16>
    %c0_86 = arith.constant 0 : index
    %c0_87 = arith.constant 0 : index
    %c0_88 = arith.constant 0 : index
    %112 = vector.load %arg12[%c0_86, %c0_87, %c0_88] : memref<2x8x16xbf16, #tpu.memory_space<vmem>>, vector<1x8x16xbf16>
    %113 = vector.shape_cast %112 : vector<1x8x16xbf16> to vector<8x16xbf16>
    %cst_89 = arith.constant dense<0.000000e+00> : vector<8x256xf32>
    %114 = tpu.matmul %113, %111, %cst_89 {dimension_numbers = #tpu.dot_dimension_numbers<[1], [0], [0], [1], [0, 0, 1, 1], [], []>} : vector<8x16xbf16>, vector<16x256xbf16>, vector<8x256xf32> -> vector<8x256xf32>
    %c1_90 = arith.constant 1 : index
    %c0_91 = arith.constant 0 : index
    %c0_92 = arith.constant 0 : index
    %115 = vector.load %arg12[%c1_90, %c0_91, %c0_92] : memref<2x8x16xbf16, #tpu.memory_space<vmem>>, vector<1x8x16xbf16>
    %116 = vector.shape_cast %115 : vector<1x8x16xbf16> to vector<8x16xbf16>
    %cst_93 = arith.constant dense<0.000000e+00> : vector<8x256xf32>
    %117 = tpu.matmul %116, %111, %cst_93 {dimension_numbers = #tpu.dot_dimension_numbers<[1], [0], [0], [1], [0, 0, 1, 1], [], []>} : vector<8x16xbf16>, vector<16x256xbf16>, vector<8x256xf32> -> vector<8x256xf32>
    %118 = arith.maximumf %114, %117 : vector<8x256xf32>
    %119 = arith.truncf %118 : vector<8x256xf32> to vector<8x256xbf16>
    %cst_94 = arith.constant 0.000000e+00 : f32
    %120 = vector.broadcast %cst_94 : f32 to vector<2x128xf32>
    %c0_95 = arith.constant 0 : index
    %c0_96 = arith.constant 0 : index
    %121 = vector.load %arg9[%c0_95, %c0_96] : memref<1x128xf32, #tpu.memory_space<vmem>>, vector<1x128xf32>
    %122 = vector.broadcast %121 : vector<1x128xf32> to vector<2x128xf32>
    %123 = arith.addf %120, %122 : vector<2x128xf32>
    %c0_97 = arith.constant 0 : index
    %c0_98 = arith.constant 0 : index
    %c0_99 = arith.constant 0 : index
    %124 = vector.load %arg13[%c0_97, %c0_98, %c0_99] : memref<4x2x8xbf16, #tpu.memory_space<vmem>>, vector<1x2x8xbf16>
    %125 = vector.shape_cast %124 : vector<1x2x8xbf16> to vector<2x8xbf16>
    %cst_100 = arith.constant dense<0.000000e+00> : vector<2x256xf32>
    %126 = tpu.matmul %125, %119, %cst_100 {dimension_numbers = #tpu.dot_dimension_numbers<[1], [0], [0], [1], [0, 0, 1, 1], [], []>} : vector<2x8xbf16>, vector<8x256xbf16>, vector<2x256xf32> -> vector<2x256xf32>
    %127 = arith.truncf %126 : vector<2x256xf32> to vector<2x256xbf16>
    %c0_101 = arith.constant 0 : index
    %c0_102 = arith.constant 0 : index
    %c0_103 = arith.constant 0 : index
    %128 = vector.load %arg8[%c0_101, %c0_102, %c0_103] : memref<4x256x128xbf16, #tpu.memory_space<vmem>>, vector<1x256x128xbf16>
    %129 = vector.shape_cast %128 : vector<1x256x128xbf16> to vector<256x128xbf16>
    %cst_104 = arith.constant dense<0.000000e+00> : vector<2x128xf32>
    %130 = tpu.matmul %127, %129, %cst_104 {dimension_numbers = #tpu.dot_dimension_numbers<[1], [0], [0], [1], [0, 0, 1, 1], [], []>} : vector<2x256xbf16>, vector<256x128xbf16>, vector<2x128xf32> -> vector<2x128xf32>
    %131 = arith.addf %123, %130 : vector<2x128xf32>
    %c1_105 = arith.constant 1 : index
    %c0_106 = arith.constant 0 : index
    %c0_107 = arith.constant 0 : index
    %132 = vector.load %arg13[%c1_105, %c0_106, %c0_107] : memref<4x2x8xbf16, #tpu.memory_space<vmem>>, vector<1x2x8xbf16>
    %133 = vector.shape_cast %132 : vector<1x2x8xbf16> to vector<2x8xbf16>
    %cst_108 = arith.constant dense<0.000000e+00> : vector<2x256xf32>
    %134 = tpu.matmul %133, %119, %cst_108 {dimension_numbers = #tpu.dot_dimension_numbers<[1], [0], [0], [1], [0, 0, 1, 1], [], []>} : vector<2x8xbf16>, vector<8x256xbf16>, vector<2x256xf32> -> vector<2x256xf32>
    %135 = arith.truncf %134 : vector<2x256xf32> to vector<2x256xbf16>
    %c1_109 = arith.constant 1 : index
    %c0_110 = arith.constant 0 : index
    %c0_111 = arith.constant 0 : index
    %136 = vector.load %arg8[%c1_109, %c0_110, %c0_111] : memref<4x256x128xbf16, #tpu.memory_space<vmem>>, vector<1x256x128xbf16>
    %137 = vector.shape_cast %136 : vector<1x256x128xbf16> to vector<256x128xbf16>
    %cst_112 = arith.constant dense<0.000000e+00> : vector<2x128xf32>
    %138 = tpu.matmul %135, %137, %cst_112 {dimension_numbers = #tpu.dot_dimension_numbers<[1], [0], [0], [1], [0, 0, 1, 1], [], []>} : vector<2x256xbf16>, vector<256x128xbf16>, vector<2x128xf32> -> vector<2x128xf32>
    %139 = arith.addf %131, %138 : vector<2x128xf32>
    %c2_113 = arith.constant 2 : index
    %c0_114 = arith.constant 0 : index
    %c0_115 = arith.constant 0 : index
    %140 = vector.load %arg13[%c2_113, %c0_114, %c0_115] : memref<4x2x8xbf16, #tpu.memory_space<vmem>>, vector<1x2x8xbf16>
    %141 = vector.shape_cast %140 : vector<1x2x8xbf16> to vector<2x8xbf16>
    %cst_116 = arith.constant dense<0.000000e+00> : vector<2x256xf32>
    %142 = tpu.matmul %141, %119, %cst_116 {dimension_numbers = #tpu.dot_dimension_numbers<[1], [0], [0], [1], [0, 0, 1, 1], [], []>} : vector<2x8xbf16>, vector<8x256xbf16>, vector<2x256xf32> -> vector<2x256xf32>
    %143 = arith.truncf %142 : vector<2x256xf32> to vector<2x256xbf16>
    %c2_117 = arith.constant 2 : index
    %c0_118 = arith.constant 0 : index
    %c0_119 = arith.constant 0 : index
    %144 = vector.load %arg8[%c2_117, %c0_118, %c0_119] : memref<4x256x128xbf16, #tpu.memory_space<vmem>>, vector<1x256x128xbf16>
    %145 = vector.shape_cast %144 : vector<1x256x128xbf16> to vector<256x128xbf16>
    %cst_120 = arith.constant dense<0.000000e+00> : vector<2x128xf32>
    %146 = tpu.matmul %143, %145, %cst_120 {dimension_numbers = #tpu.dot_dimension_numbers<[1], [0], [0], [1], [0, 0, 1, 1], [], []>} : vector<2x256xbf16>, vector<256x128xbf16>, vector<2x128xf32> -> vector<2x128xf32>
    %147 = arith.addf %139, %146 : vector<2x128xf32>
    %c3 = arith.constant 3 : index
    %c0_121 = arith.constant 0 : index
    %c0_122 = arith.constant 0 : index
    %148 = vector.load %arg13[%c3, %c0_121, %c0_122] : memref<4x2x8xbf16, #tpu.memory_space<vmem>>, vector<1x2x8xbf16>
    %149 = vector.shape_cast %148 : vector<1x2x8xbf16> to vector<2x8xbf16>
    %cst_123 = arith.constant dense<0.000000e+00> : vector<2x256xf32>
    %150 = tpu.matmul %149, %119, %cst_123 {dimension_numbers = #tpu.dot_dimension_numbers<[1], [0], [0], [1], [0, 0, 1, 1], [], []>} : vector<2x8xbf16>, vector<8x256xbf16>, vector<2x256xf32> -> vector<2x256xf32>
    %151 = arith.truncf %150 : vector<2x256xf32> to vector<2x256xbf16>
    %c3_124 = arith.constant 3 : index
    %c0_125 = arith.constant 0 : index
    %c0_126 = arith.constant 0 : index
    %152 = vector.load %arg8[%c3_124, %c0_125, %c0_126] : memref<4x256x128xbf16, #tpu.memory_space<vmem>>, vector<1x256x128xbf16>
    %153 = vector.shape_cast %152 : vector<1x256x128xbf16> to vector<256x128xbf16>
    %cst_127 = arith.constant dense<0.000000e+00> : vector<2x128xf32>
    %154 = tpu.matmul %151, %153, %cst_127 {dimension_numbers = #tpu.dot_dimension_numbers<[1], [0], [0], [1], [0, 0, 1, 1], [], []>} : vector<2x256xbf16>, vector<256x128xbf16>, vector<2x128xf32> -> vector<2x128xf32>
    %155 = arith.addf %147, %154 : vector<2x128xf32>
    %c0_128 = arith.constant 0 : index
    %c0_129 = arith.constant 0 : index
    %156 = vector.load %arg14[%c0_128, %c0_129] : memref<2x128xf32, #tpu.memory_space<vmem>>, vector<2x128xf32>
    tpu.vector_store %arg14[%c0_128, %c0_129], %155 {strides = array<i32>} : memref<2x128xf32, #tpu.memory_space<vmem>>, vector<2x128xf32>,
    return
  }
  func.func @transform_0(%arg0: i32) -> (i32, i32, i32) {
    %c0_i32 = arith.constant 0 : i32
    %c0_i32_0 = arith.constant 0 : i32
    %c0_i32_1 = arith.constant 0 : i32
    return %arg0, %c0_i32, %c0_i32_0 : i32, i32, i32
  }
  func.func @transform_1(%arg0: i32) -> (i32, i32, i32) {
    %c0_i32 = arith.constant 0 : i32
    %c0_i32_0 = arith.constant 0 : i32
    %c0_i32_1 = arith.constant 0 : i32
    %c0_i32_2 = arith.constant 0 : i32
    return %c0_i32, %c0_i32_0, %c0_i32_1 : i32, i32, i32
  }
  func.func @transform_2(%arg0: i32) -> (i32, i32) {
    %c0_i32 = arith.constant 0 : i32
    %c0_i32_0 = arith.constant 0 : i32
    %c0_i32_1 = arith.constant 0 : i32
    return %c0_i32, %c0_i32_0 : i32, i32
  }
  func.func @transform_3(%arg0: i32) -> (i32, i32, i32) {
    %c0_i32 = arith.constant 0 : i32
    %c0_i32_0 = arith.constant 0 : i32
    %c0_i32_1 = arith.constant 0 : i32
    %c0_i32_2 = arith.constant 0 : i32
    return %c0_i32, %c0_i32_0, %c0_i32_1 : i32, i32, i32
  }
  func.func @transform_4(%arg0: i32) -> (i32, i32) {
    %c0_i32 = arith.constant 0 : i32
    %c0_i32_0 = arith.constant 0 : i32
    %c0_i32_1 = arith.constant 0 : i32
    return %c0_i32, %c0_i32_0 : i32, i32
  }
  func.func @transform_5(%arg0: i32) -> (i32, i32, i32) {
    %c0_i32 = arith.constant 0 : i32
    %c0_i32_0 = arith.constant 0 : i32
    %c0_i32_1 = arith.constant 0 : i32
    %c0_i32_2 = arith.constant 0 : i32
    return %c0_i32, %c0_i32_0, %c0_i32_1 : i32, i32, i32
  }
  func.func @transform_6(%arg0: i32) -> (i32, i32) {
    %c0_i32 = arith.constant 0 : i32
    %c0_i32_0 = arith.constant 0 : i32
    %c0_i32_1 = arith.constant 0 : i32
    return %c0_i32, %c0_i32_0 : i32, i32
  }
  func.func @transform_7(%arg0: i32) -> (i32, i32, i32) {
    %c0_i32 = arith.constant 0 : i32
    %c0_i32_0 = arith.constant 0 : i32
    %c0_i32_1 = arith.constant 0 : i32
    %c0_i32_2 = arith.constant 0 : i32
    return %c0_i32, %c0_i32_0, %c0_i32_1 : i32, i32, i32
  }
  func.func @transform_8(%arg0: i32) -> (i32, i32) {
    %c0_i32 = arith.constant 0 : i32
    %c0_i32_0 = arith.constant 0 : i32
    %c0_i32_1 = arith.constant 0 : i32
    return %c0_i32, %c0_i32_0 : i32, i32
  }
  func.func @transform_9(%arg0: i32) -> (i32, i32, i32) {
    %c0_i32 = arith.constant 0 : i32
    %c0_i32_0 = arith.constant 0 : i32
    %c0_i32_1 = arith.constant 0 : i32
    %c0_i32_2 = arith.constant 0 : i32
    return %c0_i32, %c0_i32_0, %c0_i32_1 : i32, i32, i32
  }
  func.func @transform_10(%arg0: i32) -> (i32, i32, i32) {
    %c0_i32 = arith.constant 0 : i32
    %c0_i32_0 = arith.constant 0 : i32
    %c0_i32_1 = arith.constant 0 : i32
    %c0_i32_2 = arith.constant 0 : i32
    return %c0_i32, %c0_i32_0, %c0_i32_1 : i32, i32, i32
  }
  func.func @transform_11(%arg0: i32) -> (i32, i32, i32) {
    %c0_i32 = arith.constant 0 : i32
    %c0_i32_0 = arith.constant 0 : i32
    %c0_i32_1 = arith.constant 0 : i32
    %c0_i32_2 = arith.constant 0 : i32
    return %c0_i32, %c0_i32_0, %c0_i32_1 : i32, i32, i32
  }
  func.func @transform_12(%arg0: i32) -> (i32, i32, i32) {
    %c0_i32 = arith.constant 0 : i32
    %c0_i32_0 = arith.constant 0 : i32
    %c0_i32_1 = arith.constant 0 : i32
    %c0_i32_2 = arith.constant 0 : i32
    return %c0_i32, %c0_i32_0, %c0_i32_1 : i32, i32, i32
  }
  func.func @transform_13(%arg0: i32) -> (i32, i32) {
    %c0_i32 = arith.constant 0 : i32
    %c0_i32_0 = arith.constant 0 : i32
    return %arg0, %c0_i32 : i32, i32
  }
}

</mosaic_0001>

<bundles_post_ra>
// kernel: cifar_cnn_forward.1
= control target key start
LH: loop header
LB: loop body
LE: loop exit
PB: predicated region body
PF: predicated region fallthrough
CT: control target
= control target key end

     0   :  { %18 = vsyncpa [#allocation5], 0  ;;  %s10194_s0 = inlined_call_operand.vmem [shape: bf16[2,34,128], index: 0, kind: input, shape index: {}]   ;;  %s10195_s1 = inlined_call_operand.hbm [shape: bf16[3,128,512], index: 1, kind: input, shape index: {}]   ;;  %s10196_s2 = inlined_call_operand.vmem [shape: f32[1,512], index: 2, kind: input, shape index: {}]   ;;  %s10197_s3 = inlined_call_operand.hbm [shape: bf16[3,256,512], index: 3, kind: input, shape index: {}]   ;;  %s10198_s4 = inlined_call_operand.vmem [shape: f32[1,512], index: 4, kind: input, shape index: {}]   ;;  %s10199_s5 = inlined_call_operand.hbm [shape: bf16[3,256,512], index: 5, kind: input, shape index: {}]   ;;  %s10200_s6 = inlined_call_operand.vmem [shape: f32[1,512], index: 6, kind: input, shape index: {}]   ;;  %s10201_s7 = inlined_call_operand.vmem [shape: bf16[4,256,128], index: 7, kind: input, shape index: {}]   ;;  %s10202_s8 = inlined_call_operand.vmem [shape: f32[1,128], index: 8, kind: input, shape index: {}]   ;;  %s10203_s9 = inlined_call_operand.vmem [shape: bf16[2,32,64], index: 9, kind: input, shape index: {}]   ;;  %s10204_s10 = inlined_call_operand.vmem [shape: bf16[2,16,32], index: 10, kind: input, shape index: {}]   ;;  %s10205_s11 = inlined_call_operand.vmem [shape: bf16[2,8,16], index: 11, kind: input, shape index: {}]   ;;  %s10206_s12 = inlined_call_operand.vmem [shape: bf16[4,2,8], index: 12, kind: input, shape index: {}]   ;;  %s10207_s13 = inlined_call_operand.hbm [shape: f32[2,128], index: 13, kind: output, shape index: {}]  }
   0x1   :  { %19 = vsyncpa [#allocation8], 0 }
   0x2   :  { %20 = vsyncpa [#allocation6], 0  ;;  %s42_s27 = sshll.u32 %s10197_s3, 4  ;;  %s8985_s28 = smov [#allocation7]   ;;  %s43_s27 = int_to_ptr.hbm [resolvable:$true] %s42_s27 }
   0x3   :  { %s44_s29 = sshll.u32 %s8985_s28, 4  ;;  %s27_s15 = sshll.u32 %s10195_s1, 4  ;;  %s45_s29 = int_to_ptr.vmem [resolvable:$true] %s44_s29  ;;  %s28_s15 = int_to_ptr.hbm [resolvable:$true] %s27_s15 }
   0x4   :  { %s8986_s16 = smov 256   ;;  %s8987_s17 = smov 16  }
   0x5   :  { %50 = dma.hbm_to_vmem [thread:$0]  %s43_s27, 24576, %s45_s29, [#allocation8], %s8986_s16, %s8986_s16, %s8987_s17  }
   0x6   :  { %s8988_s18 = smov [#allocation4]   ;;  %s57_s22 = sshll.u32 %s10199_s5, 4  ;;  %s58_s22 = int_to_ptr.hbm [resolvable:$true] %s57_s22 }
   0x7   :  { %s29_s19 = sshll.u32 %s8988_s18, 4  ;;  %s8989_s3 = smov [#allocation9]   ;;  %s30_s19 = int_to_ptr.vmem [resolvable:$true] %s29_s19 }
   0x8   :  { %35 = dma.hbm_to_vmem [thread:$0]  %s28_s15, 12288, %s30_s19, [#allocation5], %s8986_s16, %s8986_s16, %s8987_s17  }
   0x9   :  { %s59_s23 = sshll.u32 %s8989_s3, 4  ;;  %s60_s23 = int_to_ptr.vmem [resolvable:$true] %s59_s23 }
   0xa   :  { %65 = dma.hbm_to_vmem [thread:$0]  %s58_s22, 24576, %s60_s23, [#allocation8], %s8986_s16, %s8986_s16, %s8987_s17  }
   0xb   :  { %8979 = dma.done.wait [#allocation5], 12288  }
   0xc   :  { %8980 = vsyncadd [#allocation5], 4294955008 }
   0xd   :  { %8981 = dma.done.wait [#allocation8], 49152  }
   0xe   :  { %8982 = vsyncadd [#allocation8], 4294918144  ;;  %v6046_v0 = vld [vmem:[#allocation4 + $0x1e0] sm:$0xf]  ;;  %v8374_v1 = vld [vmem:[#allocation4 + $0x1ec] sm:$0xf0] }
   0xf   :  { %v8372_v2 = vld [vmem:[#allocation4 + $0x1e4] sm:$0xf]  ;;  %v6047_v3 = vor.u32 %v8374_v1, %v6046_v0  ;;  %v6048_v4 = vld [vmem:[#allocation4 + $0x1f0] sm:$0xf0]  ;;  %v6054_v5 = vld [vmem:[#allocation4 + $0x1e8] sm:$0xf] }
  0x10   :  { %v8375_v6 = vld [vmem:[#allocation4 + $0x1f4] sm:$0xf0]  ;;  %v6051_v7 = vor.u32 %v8372_v2, %v6048_v4  ;;  %v8373_v9 = vld [vmem:[#allocation4 + $0x1ec] sm:$0xf]  ;;  %v6056_v10 = vld [vmem:[#allocation4 + $0x1f8] sm:$0xf0] }
  0x11   :  { %v6055_v8 = vor.u32 %v8375_v6, %v6054_v5  ;;  %v6030_v11 = vld [vmem:[#allocation4 + $0x1c0] sm:$0xf]  ;;  %435 = vmatpush.bf16.msra.mxu0 %v6047_v3  ;;  %v6059_v12 = vor.u32 %v8373_v9, %v6056_v10  ;;  %v8370_v13 = vld [vmem:[#allocation4 + $0x1cc] sm:$0xf0]  ;;  %v8368_v14 = vld [vmem:[#allocation4 + $0x1c4] sm:$0xf] }
  0x12   :  { %v6032_v15 = vld [vmem:[#allocation4 + $0x1d0] sm:$0xf0]  ;;  %464 = vmatpush.bf16.msra.mxu1 %v6051_v7  ;;  %v6031_v16 = vor.u32 %v8370_v13, %v6030_v11  ;;  %v6038_v18 = vld [vmem:[#allocation4 + $0x1c8] sm:$0xf]  ;;  %v8371_v19 = vld [vmem:[#allocation4 + $0x1d4] sm:$0xf0] }
  0x13   :  { %493 = vmatpush.bf16.msra.mxu2 %v6055_v8  ;;  %v6035_v17 = vor.u32 %v8368_v14, %v6032_v15  ;;  %v8369_v20 = vld [vmem:[#allocation4 + $0x1cc] sm:$0xf]  ;;  %522 = vmatpush.bf16.msra.mxu3 %v6059_v12  ;;  %v6039_v21 = vor.u32 %v8371_v19, %v6038_v18  ;;  %v6040_v22 = vld [vmem:[#allocation4 + $0x1d8] sm:$0xf0]  ;;  %v6014_v23 = vld [vmem:[#allocation4 + $0x1a0] sm:$0xf] }
  0x14   :  { %v8366_v24 = vld [vmem:[#allocation4 + $0x1ac] sm:$0xf0]  ;;  %v6043_v25 = vor.u32 %v8369_v20, %v6040_v22  ;;  %v8364_v26 = vld [vmem:[#allocation4 + $0x1a4] sm:$0xf]  ;;  %v6016_v27 = vld [vmem:[#allocation4 + $0x1b0] sm:$0xf0] }
  0x15   :  { %v6022_v28 = vld [vmem:[#allocation4 + $0x1a8] sm:$0xf]  ;;  %436 = vmatpush.bf16.msra.mxu0 %v6031_v16  ;;  %v6015_v29 = vor.u32 %v8366_v24, %v6014_v23  ;;  %v8367_v30 = vld [vmem:[#allocation4 + $0x1b4] sm:$0xf0]  ;;  %v8365_v31 = vld [vmem:[#allocation4 + $0x1ac] sm:$0xf]  ;;  %v6019_v33 = vor.u32 %v8364_v26, %v6016_v27 }
  0x16   :  { %v6024_v32 = vld [vmem:[#allocation4 + $0x1b8] sm:$0xf0]  ;;  %465 = vmatpush.bf16.msra.mxu1 %v6035_v17  ;;  %v6023_v34 = vor.u32 %v8367_v30, %v6022_v28  ;;  %v5998_v35 = vld [vmem:[#allocation4 + $0x180] sm:$0xf]  ;;  %v8362_v36 = vld [vmem:[#allocation4 + $0x18c] sm:$0xf0] }
  0x17   :  { %494 = vmatpush.bf16.msra.mxu2 %v6039_v21  ;;  %v8360_v37 = vld [vmem:[#allocation4 + $0x184] sm:$0xf]  ;;  %523 = vmatpush.bf16.msra.mxu3 %v6043_v25  ;;  %v6027_v38 = vor.u32 %v8365_v31, %v6024_v32  ;;  %v6000_v39 = vld [vmem:[#allocation4 + $0x190] sm:$0xf0]  ;;  %v6006_v40 = vld [vmem:[#allocation4 + $0x188] sm:$0xf]  ;;  %v5999_v44 = vor.u32 %v8362_v36, %v5998_v35 }
  0x18   :  { %v8363_v41 = vld [vmem:[#allocation4 + $0x194] sm:$0xf0]  ;;  %v8361_v42 = vld [vmem:[#allocation4 + $0x18c] sm:$0xf]  ;;  %v6008_v43 = vld [vmem:[#allocation4 + $0x198] sm:$0xf0]  ;;  %v6003_v45 = vor.u32 %v8360_v37, %v6000_v39 }
  0x19   :  { %437 = vmatpush.bf16.msra.mxu0 %v6015_v29  ;;  %v6007_v46 = vor.u32 %v8363_v41, %v6006_v40  ;;  %v5982_v47 = vld [vmem:[#allocation4 + $0x160] sm:$0xf]  ;;  %v8358_v48 = vld [vmem:[#allocation4 + $0x16c] sm:$0xf0]  ;;  %v8356_v49 = vld [vmem:[#allocation4 + $0x164] sm:$0xf]  ;;  %v6011_v50 = vor.u32 %v8361_v42, %v6008_v43 }
  0x1a   :  { %466 = vmatpush.bf16.msra.mxu1 %v6019_v33  ;;  %v5984_v51 = vld [vmem:[#allocation4 + $0x170] sm:$0xf0]  ;;  %v5990_v52 = vld [vmem:[#allocation4 + $0x168] sm:$0xf]  ;;  %v8359_v53 = vld [vmem:[#allocation4 + $0x174] sm:$0xf0]  ;;  %v5983_v56 = vor.u32 %v8358_v48, %v5982_v47 }
  0x1b   :  { %495 = vmatpush.bf16.msra.mxu2 %v6023_v34  ;;  %524 = vmatpush.bf16.msra.mxu3 %v6027_v38  ;;  %v8357_v54 = vld [vmem:[#allocation4 + $0x16c] sm:$0xf]  ;;  %v5992_v55 = vld [vmem:[#allocation4 + $0x178] sm:$0xf0]  ;;  %v5966_v57 = vld [vmem:[#allocation4 + $0x140] sm:$0xf]  ;;  %v5987_v58 = vor.u32 %v8356_v49, %v5984_v51  ;;  %v5991_v59 = vor.u32 %v8359_v53, %v5990_v52 }
  0x1c   :  { %v8354_v60 = vld [vmem:[#allocation4 + $0x14c] sm:$0xf0]  ;;  %v8352_v61 = vld [vmem:[#allocation4 + $0x144] sm:$0xf]  ;;  %v5968_v62 = vld [vmem:[#allocation4 + $0x150] sm:$0xf0]  ;;  %v5995_v63 = vor.u32 %v8357_v54, %v5992_v55 }
  0x1d   :  { %438 = vmatpush.bf16.msra.mxu0 %v5999_v44  ;;  %vm135_vm0 = vsmask.f32 3328  ;;  %vm136_vm1 = vsmask.f32 7440  ;;  %v5974_v0 = vld [vmem:[#allocation4 + $0x148] sm:$0xf]  ;;  %v5967_v6 = vor.u32 %v8354_v60, %v5966_v57  ;;  %v5971_v10 = vor.u32 %v8352_v61, %v5968_v62 }
  0x1e   :  { %467 = vmatpush.bf16.msra.mxu1 %v6003_v45  ;;  %v8355_v1 = vld [vmem:[#allocation4 + $0x154] sm:$0xf0]  ;;  %v8353_v2 = vld [vmem:[#allocation4 + $0x14c] sm:$0xf]  ;;  %v5976_v3 = vld [vmem:[#allocation4 + $0x158] sm:$0xf0] }
  0x1f   :  { %496 = vmatpush.bf16.msra.mxu2 %v6007_v46  ;;  %525 = vmatpush.bf16.msra.mxu3 %v6011_v50  ;;  %v5950_v4 = vld [vmem:[#allocation4 + $0x120] sm:$0xf]  ;;  %v8350_v5 = vld [vmem:[#allocation4 + $0x12c] sm:$0xf0]  ;;  %v8348_v7 = vld [vmem:[#allocation4 + $0x124] sm:$0xf]  ;;  %v5975_v11 = vor.u32 %v8355_v1, %v5974_v0  ;;  %v5979_v15 = vor.u32 %v8353_v2, %v5976_v3 }
  0x20   :  { %v5952_v8 = vld [vmem:[#allocation4 + $0x130] sm:$0xf0]  ;;  %v5958_v9 = vld [vmem:[#allocation4 + $0x128] sm:$0xf]  ;;  %v8351_v12 = vld [vmem:[#allocation4 + $0x134] sm:$0xf0]  ;;  %v5951_v20 = vor.u32 %v8350_v5, %v5950_v4 }
  0x21   :  { %439 = vmatpush.bf16.msra.mxu0 %v5983_v56  ;;  %v8349_v13 = vld [vmem:[#allocation4 + $0x12c] sm:$0xf]  ;;  %v5960_v14 = vld [vmem:[#allocation4 + $0x138] sm:$0xf0]  ;;  %v5934_v16 = vld [vmem:[#allocation4 + $0x100] sm:$0xf]  ;;  %v5955_v25 = vor.u32 %v8348_v7, %v5952_v8  ;;  %v5959_v26 = vor.u32 %v8351_v12, %v5958_v9 }
  0x22   :  { %468 = vmatpush.bf16.msra.mxu1 %v5987_v58  ;;  %v8346_v17 = vld [vmem:[#allocation4 + $0x10c] sm:$0xf0]  ;;  %v9078_v19 = vld [vmem:[%s10194_s0 + $0x4] sm:$0xf]  ;;  %v9083_v21 = vld [vmem:[%s10194_s0 + $0x8] sm:$0xf]  ;;  %v5963_v39 = vor.u32 %v8349_v13, %v5960_v14 }
  0x23   :  { %497 = vmatpush.bf16.msra.mxu2 %v5991_v59  ;;  %526 = vmatpush.bf16.msra.mxu3 %v5995_v63  ;;  %v9073_v18 = vld [vmem:[%s10194_s0] sm:$0xf]  ;;  %v148_v24 = vshll.u32 %v9078_v19, 16  ;;  %v8344_v27 = vld [vmem:[#allocation4 + $0x104] sm:$0xf]  ;;  %v152_v31 = vshrl.u32 %v9078_v19, 16  ;;  %v5935_v44 = vor.u32 %v8346_v17, %v5934_v16  ;;  %vm9110_vm2 = vmor %vm135_vm0, %vm136_vm1 }
  0x24   :  { %v139_v22 = vshrl.u32 %v9073_v18, 16  ;;  %v142_v23 = vshll.u32 %v9073_v18, 16  ;;  %v5936_v28 = vld [vmem:[#allocation4 + $0x110] sm:$0xf0]  ;;  %v5942_v29 = vld [vmem:[#allocation4 + $0x108] sm:$0xf] }
  0x25   :  { %440 = vmatpush.bf16.msra.mxu0 %v5967_v6  ;;  %v8347_v30 = vld [vmem:[#allocation4 + $0x114] sm:$0xf0]  ;;  %v158_v32 = vshll.u32 %v9083_v21, 16  ;;  %v9093_v33 = vld [vmem:[%s10194_s0 + $0xc] sm:$0xf]  ;;  %v150_v37 = vrot.slane %v148_v24, 5  ;;  %v5939_v54 = vor.u32 %v8344_v27, %v5936_v28 }
  0x26   :  { %469 = vmatpush.bf16.msra.mxu1 %v5971_v10  ;;  %v8345_v34 = vld [vmem:[#allocation4 + $0x10c] sm:$0xf]  ;;  %v141_v35 = vrot.slane %v139_v22, 4  ;;  %v144_v36 = vrot.slane %v142_v23, 5  ;;  %v162_v38 = vshrl.u32 %v9083_v21, 16  ;;  %v154_v41 = vrot.slane %v152_v31, 4 }
  0x27   :  { %498 = vmatpush.bf16.msra.mxu2 %v5975_v11  ;;  %527 = vmatpush.bf16.msra.mxu3 %v5979_v15  ;;  %v5944_v40 = vld [vmem:[#allocation4 + $0x118] sm:$0xf0]  ;;  %v168_v42 = vshll.u32 %v9093_v33, 16  ;;  %v172_v43 = vshrl.u32 %v9093_v33, 16  ;;  %v9101_v46 = vld [vmem:[%s10194_s0 + $0x10] sm:$0x1]  ;;  %v5943_v55 = vor.u32 %v8347_v30, %v5942_v29 }
  0x28   :  { %v145_v45 = vor.u32 %v144_v36, %v141_v35  ;;  %v164_v47 = vrot.slane %v162_v38, 4  ;;  %v9106_v48 = vld [vmem:[%s10194_s0 + $0x14] sm:$0xf]  ;;  %v10218_v49 = vmov 0  ;;  %v155_v50 = vor.u32 %v154_v41, %v150_v37  ;;  %v9120_v60 = vld [vmem:[%s10194_s0 + $0x18] sm:$0xf] }
  0x29   :  { %441 = vmatpush.bf16.msra.mxu0 %v5951_v20  ;;  %v10219_v49 = vsel %vm9110_vm2, 4294967295, %v10218_v49  ;;  %v160_v51 = vrot.slane %v158_v32, 5  ;;  %v9114_v52 = vrot.slane %v168_v42, 5  ;;  %v174_v53 = vrot.slane %v172_v43, 4  ;;  %v6190_v13 = vld [vmem:[#allocation4 + $0xe0] sm:$0xf] }
  0x2a   :  { %10220 = vst [vmem:[#allocation14_spill] sm:$0xff] %v10219_v49  ;;  %470 = vmatpush.bf16.msra.mxu1 %v5955_v25  ;;  %v146_v56 = vrot.slane %v145_v45, 4  ;;  %v5947_v57 = vor.u32 %v8345_v34, %v5944_v40  ;;  %v156_v58 = vrot.slane %v155_v50, 4  ;;  %v178_v59 = vshll.u32 %v9101_v46, 16  ;;  %v8342_v14 = vld [vmem:[#allocation4 + $0xec] sm:$0xf0] }
  0x2b   :  { %499 = vmatpush.bf16.msra.mxu2 %v5959_v26  ;;  %528 = vmatpush.bf16.msra.mxu3 %v5963_v39  ;;  %v183_v61 = vshrl.u32 %v9106_v48, 16  ;;  %v165_v63 = vor.u32 %v164_v47, %v160_v51  ;;  %v175_v0 = vor.u32 %v174_v53, %v9114_v52  ;;  %v186_v1 = vshll.u32 %v9106_v48, 16  ;;  %v8340_v15 = vld [vmem:[#allocation4 + $0xe4] sm:$0xf]  ;;  %v6192_v22 = vld [vmem:[#allocation4 + $0xf0] sm:$0xf0] }
  0x2c   :  { %v151_v62 = vsel %vm9110_vm2, %v146_v56, %v150_v37  ;;  %v161_v2 = vsel %vm9110_vm2, %v156_v58, %v160_v51  ;;  %v192_v5 = vshll.u32 %v9120_v60, 16  ;;  %v196_v6 = vshrl.u32 %v9120_v60, 16  ;;  %v6198_v23 = vld [vmem:[#allocation4 + $0xe8] sm:$0xf]  ;;  %v8343_v25 = vld [vmem:[#allocation4 + $0xf4] sm:$0xf0] }
  0x2d   :  { %442 = vmatpush.bf16.msra.mxu0 %v5935_v44  ;;  %v259_v3 = vunpack.c.l.b16 %v151_v62  ;;  %v260_v4 = vunpack.c.l.b16 %v161_v2  ;;  %v180_v7 = vrot.slane %v178_v59, 5  ;;  %v9131_v8 = vrot.slane %v183_v61, 4  ;;  %v8341_v26 = vld [vmem:[#allocation4 + $0xec] sm:$0xf]  ;;  %v6200_v27 = vld [vmem:[#allocation4 + $0xf8] sm:$0xf0] }
  0x2e   :  { %471 = vmatpush.bf16.msra.mxu1 %v5939_v54  ;;  %v166_v10 = vrot.slane %v165_v63, 4  ;;  %v176_v11 = vrot.slane %v175_v0, 4  ;;  %v9133_v12 = vrot.slane %v186_v1, 5  ;;  %v9135_v16 = vrot.slane %v192_v5, 5  ;;  %v6174_v30 = vld [vmem:[#allocation4 + $0xc0] sm:$0xf] }
  0x2f   :  { %500 = vmatpush.bf16.msra.mxu2 %v5943_v55  ;;  %529 = vmatpush.bf16.msra.mxu3 %v5947_v57  ;;  %v267_v9 = vpack.c.b16 %v260_v4, %v259_v3  ;;  %v9137_v17 = vrot.slane %v196_v6, 4  ;;  %v6191_v20 = vor.u32 %v8342_v14, %v6190_v13  ;;  %v6195_v24 = vor.u32 %v8340_v15, %v6192_v22  ;;  %v8338_v31 = vld [vmem:[#allocation4 + $0xcc] sm:$0xf0]  ;;  %v8336_v32 = vld [vmem:[#allocation4 + $0xc4] sm:$0xf]  ;;  %s5921_s29 = sshll.u32 %s10207_s13, 4  ;;  %s5922_s29 = int_to_ptr.hbm [resolvable:$true] %s5921_s29 }
  0x30   :  { %v6199_v28 = vor.u32 %v8343_v25, %v6198_v23  ;;  %v6203_v29 = vor.u32 %v8341_v26, %v6200_v27  ;;  %v6175_v34 = vor.u32 %v8338_v31, %v6174_v30  ;;  %v6176_v35 = vld [vmem:[#allocation4 + $0xd0] sm:$0xf0]  ;;  %v6182_v36 = vld [vmem:[#allocation4 + $0xc8] sm:$0xf]  ;;  %v8339_v37 = vld [vmem:[#allocation4 + $0xd4] sm:$0xf0]  ;;  %v171_v43 = vsel %vm9110_vm2, %v166_v10, %v9114_v52 }
  0x31   :  { %443 = vmatmul.bf16.vlgmr.msra.gmra.mxu0 %v267_v9  ;;  %472 = vmatmul.bf16.vlgmr.msra.gmra.mxu1 %v267_v9  ;;  %v6179_v38 = vor.u32 %v8336_v32, %v6176_v35  ;;  %v6183_v39 = vor.u32 %v8339_v37, %v6182_v36  ;;  %v8337_v40 = vld [vmem:[#allocation4 + $0xcc] sm:$0xf]  ;;  %v6184_v41 = vld [vmem:[#allocation4 + $0xd8] sm:$0xf0]  ;;  %v6158_v42 = vld [vmem:[#allocation4 + $0xa0] sm:$0xf]  ;;  %v181_v44 = vsel %vm9110_vm2, %v176_v11, %v180_v7  ;;  %v261_v62 = vunpack.c.l.b16 %v171_v43 }
  0x32   :  { %501 = vmatmul.bf16.vlgmr.msra.gmra.mxu2 %v267_v9  ;;  %530 = vmatmul.bf16.vlgmr.msra.gmra.mxu3 %v267_v9  ;;  %v9147_v45 = vld [vmem:[%s10194_s0 + $0x1c] sm:$0xf]  ;;  %v6187_v47 = vor.u32 %v8337_v40, %v6184_v41  ;;  %v8334_v50 = vld [vmem:[#allocation4 + $0xac] sm:$0xf0]  ;;  %v8332_v51 = vld [vmem:[#allocation4 + $0xa4] sm:$0xf]  ;;  %v262_v63 = vunpack.c.l.b16 %v181_v44  ;;  %v189_v4 = vor.u32 %v9133_v12, %v9131_v8  ;;  %v199_v15 = vor.u32 %v9137_v17, %v9135_v16 }
  0x33   :  { %735 = vmatpush.bf16.msrb.mxu0 %v6191_v20  ;;  %764 = vmatpush.bf16.msrb.mxu1 %v6195_v24  ;;  %v6160_v53 = vld [vmem:[#allocation4 + $0xb0] sm:$0xf0]  ;;  %v6159_v54 = vor.u32 %v8334_v50, %v6158_v42  ;;  %v6166_v55 = vld [vmem:[#allocation4 + $0xa8] sm:$0xf]  ;;  %v8335_v56 = vld [vmem:[#allocation4 + $0xb4] sm:$0xf0] }
  0x34   :  { %793 = vmatpush.bf16.msrb.mxu2 %v6199_v28  ;;  %822 = vmatpush.bf16.msrb.mxu3 %v6203_v29  ;;  %v8333_v57 = vld [vmem:[#allocation4 + $0xac] sm:$0xf]  ;;  %v6163_v58 = vor.u32 %v8332_v51, %v6160_v53  ;;  %v6168_v52 = vld [vmem:[#allocation4 + $0xb8] sm:$0xf0]  ;;  %v6142_v59 = vld [vmem:[#allocation4 + $0x80] sm:$0xf]  ;;  %v6167_v0 = vor.u32 %v8335_v56, %v6166_v55  ;;  %v268_v14 = vpack.c.b16 %v262_v63, %v261_v62 }
  0x35   :  { %v8330_v61 = vld [vmem:[#allocation4 + $0x8c] sm:$0xf0]  ;;  %v6171_v1 = vor.u32 %v8333_v57, %v6168_v52  ;;  %v8328_v2 = vld [vmem:[#allocation4 + $0x84] sm:$0xf]  ;;  %v6144_v3 = vld [vmem:[#allocation4 + $0x90] sm:$0xf0] }
  0x36   :  { %v202_v5 = vshll.u32 %v9147_v45, 16  ;;  %v6143_v6 = vor.u32 %v8330_v61, %v6142_v59  ;;  %v6150_v7 = vld [vmem:[#allocation4 + $0x88] sm:$0xf]  ;;  %v6147_v9 = vor.u32 %v8328_v2, %v6144_v3  ;;  %v8331_v10 = vld [vmem:[#allocation4 + $0x94] sm:$0xf0]  ;;  %v190_v20 = vrot.slane %v189_v4, 4 }
  0x37   :  { %736 = vmatpush.bf16.msrb.mxu0 %v6175_v34  ;;  %765 = vmatpush.bf16.msrb.mxu1 %v6179_v38  ;;  %v8329_v11 = vld [vmem:[#allocation4 + $0x8c] sm:$0xf]  ;;  %v6152_v13 = vld [vmem:[#allocation4 + $0x98] sm:$0xf0]  ;;  %v6151_v8 = vor.u32 %v8331_v10, %v6150_v7  ;;  %v9159_v23 = vld [vmem:[%s10194_s0 + $0x20] sm:$0xf] }
  0x38   :  { %794 = vmatpush.bf16.msrb.mxu2 %v6183_v39  ;;  %823 = vmatpush.bf16.msrb.mxu3 %v6187_v47  ;;  %v9154_v22 = vrot.slane %v202_v5, 5  ;;  %v6155_v12 = vor.u32 %v8329_v11, %v6152_v13  ;;  %v6126_v24 = vld [vmem:[#allocation4 + $0x60] sm:$0xf]  ;;  %v8326_v25 = vld [vmem:[#allocation4 + $0x6c] sm:$0xf0]  ;;  %v200_v17 = vrot.slane %v199_v15, 4  ;;  %v195_v55 = vsel %vm9110_vm2, %v190_v20, %v9135_v16 }
  0x39   :  { %v8324_v26 = vld [vmem:[#allocation4 + $0x64] sm:$0xf]  ;;  %v206_v27 = vshrl.u32 %v9147_v45, 16  ;;  %v6127_v28 = vor.u32 %v8326_v25, %v6126_v24  ;;  %v6128_v29 = vld [vmem:[#allocation4 + $0x70] sm:$0xf0]  ;;  %v212_v31 = vshll.u32 %v9159_v23, 16  ;;  %v263_v5 = vunpack.c.l.b16 %v195_v55 }
  0x3a   :  { %v6134_v30 = vld [vmem:[#allocation4 + $0x68] sm:$0xf]  ;;  %v216_v32 = vshrl.u32 %v9159_v23, 16  ;;  %v6131_v34 = vor.u32 %v8324_v26, %v6128_v29  ;;  %v8327_v35 = vld [vmem:[#allocation4 + $0x74] sm:$0xf0]  ;;  %v205_v56 = vsel %vm9110_vm2, %v200_v17, %v9154_v22  ;;  %vm853_vm3 = vcmask 1042432  }
  0x3b   :  { %737 = vmatpush.bf16.msrb.mxu0 %v6159_v54  ;;  %766 = vmatpush.bf16.msrb.mxu1 %v6163_v58  ;;  %v8325_v36 = vld [vmem:[#allocation4 + $0x6c] sm:$0xf]  ;;  %v6135_v37 = vor.u32 %v8327_v35, %v6134_v30  ;;  %v6136_v38 = vld [vmem:[#allocation4 + $0x78] sm:$0xf0]  ;;  %v6110_v39 = vld [vmem:[#allocation4 + $0x40] sm:$0xf] }
  0x3c   :  { %795 = vmatpush.bf16.msrb.mxu2 %v6167_v0  ;;  %824 = vmatpush.bf16.msrb.mxu3 %v6171_v1  ;;  %v8322_v40 = vld [vmem:[#allocation4 + $0x4c] sm:$0xf0]  ;;  %v6139_v41 = vor.u32 %v8325_v36, %v6136_v38  ;;  %v8320_v43 = vld [vmem:[#allocation4 + $0x44] sm:$0xf]  ;;  %v6112_v44 = vld [vmem:[#allocation4 + $0x50] sm:$0xf0] }
  0x3d   :  { %v6111_v42 = vor.u32 %v8322_v40, %v6110_v39  ;;  %v6118_v47 = vld [vmem:[#allocation4 + $0x48] sm:$0xf]  ;;  %v6115_v50 = vor.u32 %v8320_v43, %v6112_v44  ;;  %v8323_v51 = vld [vmem:[#allocation4 + $0x54] sm:$0xf0]  ;;  %v8321_v53 = vld [vmem:[#allocation4 + $0x4c] sm:$0xf] }
  0x3e   :  { %v6120_v54 = vld [vmem:[#allocation4 + $0x58] sm:$0xf0]  ;;  %v6094_v57 = vld [vmem:[#allocation4 + $0x20] sm:$0xf]  ;;  %v8318_v58 = vld [vmem:[#allocation4 + $0x2c] sm:$0xf0]  ;;  %v6119_v59 = vor.u32 %v8323_v51, %v6118_v47 }
  0x3f   :  { %738 = vmatpush.bf16.msrb.mxu0 %v6143_v6  ;;  %767 = vmatpush.bf16.msrb.mxu1 %v6147_v9  ;;  %v8316_v52 = vld [vmem:[#allocation4 + $0x24] sm:$0xf]  ;;  %v6123_v61 = vor.u32 %v8321_v53, %v6120_v54  ;;  %v6096_v62 = vld [vmem:[#allocation4 + $0x30] sm:$0xf0]  ;;  %v6102_v63 = vld [vmem:[#allocation4 + $0x28] sm:$0xf]  ;;  %v6095_v1 = vor.u32 %v8318_v58, %v6094_v57  ;;  %v264_v6 = vunpack.c.l.b16 %v205_v56 }
  0x40   :  { %796 = vmatpush.bf16.msrb.mxu2 %v6151_v8  ;;  %825 = vmatpush.bf16.msrb.mxu3 %v6155_v12  ;;  %v8319_v0 = vld [vmem:[#allocation4 + $0x34] sm:$0xf0]  ;;  %v6099_v2 = vor.u32 %v8316_v52, %v6096_v62  ;;  %v8317_v3 = vld [vmem:[#allocation4 + $0x2c] sm:$0xf]  ;;  %v6104_v16 = vld [vmem:[#allocation4 + $0x38] sm:$0xf0] }
  0x41   :  { %448 = vmatmul.bf16.gmra.mxu0 %v268_v14  ;;  %477 = vmatmul.bf16.gmra.mxu1 %v268_v14  ;;  %v6078_v4 = vld [vmem:[#allocation4] sm:$0xf]  ;;  %v8314_v7 = vld [vmem:[#allocation4 + $0xc] sm:$0xf0]  ;;  %v8312_v9 = vld [vmem:[#allocation4 + $0x4] sm:$0xf]  ;;  %v6103_v20 = vor.u32 %v8319_v0, %v6102_v63  ;;  %v6107_v8 = vor.u32 %v8317_v3, %v6104_v16 }
  0x42   :  { %506 = vmatmul.bf16.gmra.mxu2 %v268_v14  ;;  %535 = vmatmul.bf16.gmra.mxu3 %v268_v14  ;;  %v6080_v10 = vld [vmem:[#allocation4 + $0x10] sm:$0xf0]  ;;  %v208_v11 = vrot.slane %v206_v27, 4  ;;  %v214_v13 = vrot.slane %v212_v31, 5  ;;  %v218_v14 = vrot.slane %v216_v32, 4  ;;  %v6079_v24 = vor.u32 %v8314_v7, %v6078_v4 }
  0x43   :  { %739 = vmatpush.bf16.msrb.mxu0 %v6127_v28  ;;  %768 = vmatpush.bf16.msrb.mxu1 %v6131_v34  ;;  %v9173_v15 = vld [vmem:[%s10194_s0 + $0x24] sm:$0x1]  ;;  %v6086_v12 = vld [vmem:[#allocation4 + $0x8] sm:$0xf]  ;;  %v6083_v25 = vor.u32 %v8312_v9, %v6080_v10  ;;  %v8315_v26 = vld [vmem:[#allocation4 + $0x14] sm:$0xf0]  ;;  %v269_v27 = vpack.c.b16 %v264_v6, %v263_v5 }
  0x44   :  { %797 = vmatpush.bf16.msrb.mxu2 %v6135_v37  ;;  %826 = vmatpush.bf16.msrb.mxu3 %v6139_v41  ;;  %v8313_v17 = vld [vmem:[#allocation4 + $0xc] sm:$0xf]  ;;  %v6088_v28 = vld [vmem:[#allocation4 + $0x18] sm:$0xf0]  ;;  %v209_v29 = vor.u32 %v208_v11, %v9154_v22  ;;  %v219_v30 = vor.u32 %v218_v14, %v214_v13  ;;  %v222_v31 = vshll.u32 %v9173_v15, 16  ;;  %v6087_v32 = vor.u32 %v8315_v26, %v6086_v12 }
  0x45   :  { %v6091_v34 = vor.u32 %v8313_v17, %v6088_v28  ;;  %v6320_v43 = vld [vmem:[#allocation4 + $0x2e0] sm:$0xf]  ;;  %v8406_v44 = vld [vmem:[#allocation4 + $0x2ec] sm:$0xf0]  ;;  %v8404_v47 = vld [vmem:[#allocation4 + $0x2e4] sm:$0xf] }
  0x46   :  { %v210_v35 = vrot.slane %v209_v29, 4  ;;  %v220_v36 = vrot.slane %v219_v30, 4  ;;  %v224_v37 = vrot.slane %v222_v31, 5  ;;  %v6322_v51 = vld [vmem:[#allocation4 + $0x2f0] sm:$0xf0]  ;;  %vm854_vm4 = vcmask 1046532  }
  0x47   :  { %740 = vmatpush.bf16.msrb.mxu0 %v6111_v42  ;;  %769 = vmatpush.bf16.msrb.mxu1 %v6115_v50  ;;  %v8308_v42 = vld [vmem:[%s10194_s0] sm:$0xff]  ;;  %v6321_v50 = vor.u32 %v8406_v44, %v6320_v43  ;;  %v6328_v53 = vld [vmem:[#allocation4 + $0x2e8] sm:$0xf]  ;;  %v8407_v54 = vld [vmem:[#allocation4 + $0x2f4] sm:$0xf0]  ;;  %v9184_v55 = vor.u32 %v8404_v47, %v6322_v51  ;;  %vm1351_vm6 = vcmask 523264  }
  0x48   :  { %798 = vmatpush.bf16.msrb.mxu2 %v6119_v59  ;;  %827 = vmatpush.bf16.msrb.mxu3 %v6123_v61  ;;  %v215_v22 = vsel %vm9110_vm2, %v210_v35, %v214_v13  ;;  %v225_v38 = vsel %vm9110_vm2, %v220_v36, %v224_v37  ;;  %v6329_v56 = vor.u32 %v8407_v54, %v6328_v53  ;;  %v8405_v57 = vld [vmem:[#allocation4 + $0x2ec] sm:$0xf]  ;;  %v6330_v58 = vld [vmem:[#allocation4 + $0x2f8] sm:$0xf0]  ;;  %v6304_v52 = vld [vmem:[#allocation4 + $0x2c0] sm:$0xf] }
  0x49   :  { %v265_v39 = vunpack.c.l.b16 %v215_v22  ;;  %v266_v40 = vunpack.c.l.b16 %v225_v38  ;;  %v6333_v59 = vor.u32 %v8405_v57, %v6330_v58  ;;  %v8402_v61 = vld [vmem:[#allocation4 + $0x2cc] sm:$0xf0]  ;;  %v8400_v62 = vld [vmem:[#allocation4 + $0x2c4] sm:$0xf]  ;;  %v6306_v63 = vld [vmem:[#allocation4 + $0x2d0] sm:$0xf0] }
  0x4a   :  { %v6305_v0 = vor.u32 %v8402_v61, %v6304_v52  ;;  %v8403_v3 = vld [vmem:[#allocation4 + $0x2d4] sm:$0xf0]  ;;  %v8401_v16 = vld [vmem:[#allocation4 + $0x2cc] sm:$0xf]  ;;  %v6314_v5 = vld [vmem:[#allocation4 + $0x2d8] sm:$0xf0] }
  0x4b   :  { %741 = vmatpush.bf16.msrb.mxu0 %v6095_v1  ;;  %770 = vmatpush.bf16.msrb.mxu1 %v6099_v2  ;;  %v270_v41 = vpack.c.b16 %v266_v40, %v265_v39  ;;  %v9187_v1 = vor.u32 %v8400_v62, %v6306_v63  ;;  %v6312_v2 = vld [vmem:[#allocation4 + $0x2c8] sm:$0xf]  ;;  %v6288_v6 = vld [vmem:[#allocation4 + $0x2a0] sm:$0xf]  ;;  %v8398_v7 = vld [vmem:[#allocation4 + $0x2ac] sm:$0xf0]  ;;  %v6317_v9 = vor.u32 %v8401_v16, %v6314_v5 }
  0x4c   :  { %799 = vmatpush.bf16.msrb.mxu2 %v6103_v20  ;;  %828 = vmatpush.bf16.msrb.mxu3 %v6107_v8  ;;  %v6313_v4 = vor.u32 %v8403_v3, %v6312_v2  ;;  %v8396_v10 = vld [vmem:[#allocation4 + $0x2a4] sm:$0xf]  ;;  %v6290_v11 = vld [vmem:[#allocation4 + $0x2b0] sm:$0xf0]  ;;  %v6296_v13 = vld [vmem:[#allocation4 + $0x2a8] sm:$0xf]  ;;  %v6289_v14 = vor.u32 %v8398_v7, %v6288_v6 }
  0x4d   :  { %v8399_v20 = vld [vmem:[#allocation4 + $0x2b4] sm:$0xf0]  ;;  %v8397_v8 = vld [vmem:[#allocation4 + $0x2ac] sm:$0xf]  ;;  %v6298_v12 = vld [vmem:[#allocation4 + $0x2b8] sm:$0xf0] }
  0x4e   :  { %v6272_v26 = vld [vmem:[#allocation4 + $0x280] sm:$0xf]  ;;  %v8394_v17 = vld [vmem:[#allocation4 + $0x28c] sm:$0xf0]  ;;  %v8392_v28 = vld [vmem:[#allocation4 + $0x284] sm:$0xf] }
  0x4f   :  { %742 = vmatpush.bf16.msrb.mxu0 %v6079_v24  ;;  %771 = vmatpush.bf16.msrb.mxu1 %v6083_v25  ;;  %v9190_v24 = vor.u32 %v8396_v10, %v6290_v11  ;;  %v6297_v25 = vor.u32 %v8399_v20, %v6296_v13  ;;  %v6274_v29 = vld [vmem:[#allocation4 + $0x290] sm:$0xf0]  ;;  %v6280_v30 = vld [vmem:[#allocation4 + $0x288] sm:$0xf]  ;;  %v8395_v31 = vld [vmem:[#allocation4 + $0x294] sm:$0xf0] }
  0x50   :  { %800 = vmatpush.bf16.msrb.mxu2 %v6087_v32  ;;  %829 = vmatpush.bf16.msrb.mxu3 %v6091_v34  ;;  %v6273_v32 = vor.u32 %v8394_v17, %v6272_v26  ;;  %v9193_v34 = vor.u32 %v8392_v28, %v6274_v29  ;;  %v6281_v35 = vor.u32 %v8395_v31, %v6280_v30  ;;  %v8393_v36 = vld [vmem:[#allocation4 + $0x28c] sm:$0xf]  ;;  %v6282_v37 = vld [vmem:[#allocation4 + $0x298] sm:$0xf0]  ;;  %v6256_v39 = vld [vmem:[#allocation4 + $0x260] sm:$0xf] }
  0x51   :  { %453 = vmatmul.bf16.gmra.mxu0 %v269_v27  ;;  %482 = vmatmul.bf16.gmra.mxu1 %v269_v27  ;;  %v8309_v22 = vld [vmem:[%s10194_s0 + $0x8] sm:$0xff]  ;;  %v6285_v38 = vor.u32 %v8393_v36, %v6282_v37  ;;  %v8390_v40 = vld [vmem:[#allocation4 + $0x26c] sm:$0xf0]  ;;  %v6258_v43 = vld [vmem:[#allocation4 + $0x270] sm:$0xf0]  ;;  %vm1463_vm7 = vcmask 1040384  }
  0x52   :  { %511 = vmatmul.bf16.gmra.mxu2 %v269_v27  ;;  %540 = vmatmul.bf16.gmra.mxu3 %v269_v27  ;;  %v6301_v27 = vor.u32 %v8397_v8, %v6298_v12  ;;  %v6264_v44 = vld [vmem:[#allocation4 + $0x268] sm:$0xf]  ;;  %v8391_v47 = vld [vmem:[#allocation4 + $0x274] sm:$0xf0]  ;;  %v8389_v53 = vld [vmem:[#allocation4 + $0x26c] sm:$0xf] }
  0x53   :  { %1091 = vmatpush.bf16.msra.mxu0 %v6321_v50  ;;  %8868 = vmatpush.bf16.msra.mxu1 %v9184_v55  ;;  %v6265_v51 = vor.u32 %v8391_v47, %v6264_v44  ;;  %v6266_v54 = vld [vmem:[#allocation4 + $0x278] sm:$0xf0]  ;;  %v8386_v58 = vld [vmem:[#allocation4 + $0x24c] sm:$0xf0]  ;;  %v8384_v52 = vld [vmem:[#allocation4 + $0x244] sm:$0xf] }
  0x54   :  { %1149 = vmatpush.bf16.msra.mxu2 %v6329_v56  ;;  %1178 = vmatpush.bf16.msra.mxu3 %v6333_v59  ;;  %v6240_v56 = vld [vmem:[#allocation4 + $0x240] sm:$0xf]  ;;  %v6269_v57 = vor.u32 %v8389_v53, %v6266_v54  ;;  %v6242_v59 = vld [vmem:[#allocation4 + $0x250] sm:$0xf0]  ;;  %v6248_v63 = vld [vmem:[#allocation4 + $0x248] sm:$0xf] }
  0x55   :  { %v6241_v61 = vor.u32 %v8386_v58, %v6240_v56  ;;  %v9202_v62 = vor.u32 %v8384_v52, %v6242_v59  ;;  %v8385_v2 = vld [vmem:[#allocation4 + $0x24c] sm:$0xf]  ;;  %v6250_v16 = vld [vmem:[#allocation4 + $0x258] sm:$0xf0]  ;;  %v8382_v5 = vld [vmem:[#allocation4 + $0x22c] sm:$0xf0] }
  0x56   :  { %v8380_v6 = vld [vmem:[#allocation4 + $0x224] sm:$0xf]  ;;  %v6226_v7 = vld [vmem:[#allocation4 + $0x230] sm:$0xf0]  ;;  %v6253_v10 = vor.u32 %v8385_v2, %v6250_v16  ;;  %v8383_v13 = vld [vmem:[#allocation4 + $0x234] sm:$0xf0] }
  0x57   :  { %1092 = vmatpush.bf16.msra.mxu0 %v6305_v0  ;;  %8869 = vmatpush.bf16.msra.mxu1 %v9187_v1  ;;  %v8387_v0 = vld [vmem:[#allocation4 + $0x254] sm:$0xf0]  ;;  %v8381_v8 = vld [vmem:[#allocation4 + $0x22c] sm:$0xf]  ;;  %v6234_v12 = vld [vmem:[#allocation4 + $0x238] sm:$0xf0] }
  0x58   :  { %1150 = vmatpush.bf16.msra.mxu2 %v6313_v4  ;;  %1179 = vmatpush.bf16.msra.mxu3 %v6317_v9  ;;  %v6249_v3 = vor.u32 %v8387_v0, %v6248_v63  ;;  %v6224_v4 = vld [vmem:[#allocation4 + $0x220] sm:$0xf]  ;;  %v6232_v9 = vld [vmem:[#allocation4 + $0x228] sm:$0xf]  ;;  %v6237_v26 = vor.u32 %v8381_v8, %v6234_v12  ;;  %v8378_v28 = vld [vmem:[#allocation4 + $0x20c] sm:$0xf0] }
  0x59   :  { %v6225_v11 = vor.u32 %v8382_v5, %v6224_v4  ;;  %v6233_v20 = vor.u32 %v8383_v13, %v6232_v9  ;;  %v6208_v17 = vld [vmem:[#allocation4 + $0x200] sm:$0xf]  ;;  %v6210_v30 = vld [vmem:[#allocation4 + $0x210] sm:$0xf0]  ;;  %v6216_v31 = vld [vmem:[#allocation4 + $0x208] sm:$0xf] }
  0x5a   :  { %v6209_v29 = vor.u32 %v8378_v28, %v6208_v17  ;;  %v8377_v37 = vld [vmem:[#allocation4 + $0x20c] sm:$0xf]  ;;  %v867_v44 = vrot.slane %v9101_v46, 5  ;;  %vm9220_vm5 = vmor %vm853_vm3, %vm854_vm4  ;;  %v871_v58 = vrot.slane %v9120_v60, 5  ;;  %v6205_v52 = vrot.slane %v9106_v48, 9 }
  0x5b   :  { %1093 = vmatpush.bf16.msra.mxu0 %v6289_v14  ;;  %8870 = vmatpush.bf16.msra.mxu1 %v9190_v24  ;;  %v6229_v14 = vor.u32 %v8380_v6, %v6226_v7  ;;  %v877_v9 = vrot.slane %v9159_v23, 5  ;;  %v880_v13 = vrot.slane %v9173_v15, 5  ;;  %vm1464_vm8 = vsmask.f32 256 }
  0x5c   :  { %1151 = vmatpush.bf16.msra.mxu2 %v6297_v25  ;;  %1180 = vmatpush.bf16.msra.mxu3 %v6301_v27  ;;  %v8310_v25 = vld [vmem:[%s10194_s0 + $0x14] sm:$0xff]  ;;  %v873_v59 = vrot.slane %v871_v58, 4  ;;  %v872_v60 = vsel %vm9220_vm5, %v6205_v52, %v871_v58  ;;  %vm1466_vm9 = vcmask 1044484   ;;  %vm1467_vm10 = vsmask.f32 4352  ;;  %vm1465_vm11 = vmand %vm1463_vm7, %vm1464_vm8 }
  0x5d   :  { %v8376_v27 = vld [vmem:[#allocation4 + $0x204] sm:$0xf]  ;;  %v919_v16 = vunpack.c.l.b16 %v872_v60  ;;  %vm1468_vm12 = vmand %vm1466_vm9, %vm1467_vm10  ;;  %vm1476_vm13 = vsmask.f32 7938  ;;  %vm1478_vm14 = vsmask.f32 7954 }
  0x5e   :  { %vm9478_vm15 = vmor %vm1468_vm12, %vm1465_vm11  ;;  %vm1533_vm4 = vcmask 1043456   ;;  %vm1491_vm11 = vsmask.f32 4368 }
  0x5f   :  { %1094 = vmatpush.bf16.msra.mxu0 %v6273_v32  ;;  %8871 = vmatpush.bf16.msra.mxu1 %v9193_v34  ;;  %v8379_v32 = vld [vmem:[#allocation4 + $0x214] sm:$0xf0]  ;;  %vm1477_vm0 = vmand %vm1463_vm7, %vm1476_vm13 }
  0x60   :  { %1152 = vmatpush.bf16.msra.mxu2 %v6281_v35  ;;  %1181 = vmatpush.bf16.msra.mxu3 %v6285_v38  ;;  %v6213_v35 = vor.u32 %v8376_v27, %v6210_v30  ;;  %v6217_v36 = vor.u32 %v8379_v32, %v6216_v31  ;;  %vm1479_vm1 = vmand %vm1466_vm9, %vm1478_vm14 }
  0x61   :  { %458 = vmatmul.bf16.gmra.mxu0 %v270_v41  ;;  %487 = vmatmul.bf16.gmra.mxu1 %v270_v41  ;;  %vm9486_vm3 = vmor %vm1479_vm1, %vm1477_vm0 }
  0x62   :  { %516 = vmatmul.bf16.gmra.mxu2 %v270_v41  ;;  %545 = vmatmul.bf16.gmra.mxu3 %v270_v41  ;;  %v8388_v41 = vld [vmem:[#allocation4 + $0x264] sm:$0xf]  ;;  %vm9502_vm7 = vmand %vm1533_vm4, %vm1476_vm13 }
  0x63   :  { %v9199_v50 = vor.u32 %v8388_v41, %v6258_v43  ;;  %v861_v41 = vrot.slane %v9083_v21, 5  ;;  %vm9533_vm12 = vmor %vm1464_vm8, %vm1491_vm11  ;;  %vm3361_vm8 = vcmask 261120  }
  0x64   :  { %1153 = vmatpush.bf16.msra.mxu2 %v6265_v51  ;;  %1182 = vmatpush.bf16.msra.mxu3 %v6269_v57 }
  0x65   :  { %8872 = vmatpush.bf16.msra.mxu1 %v9199_v50 }
  0x68   :  { %1154 = vmatpush.bf16.msra.mxu2 %v6249_v3  ;;  %1183 = vmatpush.bf16.msra.mxu3 %v6253_v10 }
  0x69   :  { %8873 = vmatpush.bf16.msra.mxu1 %v9202_v62 }
  0x6c   :  { %1155 = vmatpush.bf16.msra.mxu2 %v6233_v20  ;;  %1184 = vmatpush.bf16.msra.mxu3 %v6237_v26 }
  0x6d   :  { %8874 = vmatpush.bf16.msra.mxu1 %v6229_v14 }
  0x70   :  { %1156 = vmatpush.bf16.msra.mxu2 %v6217_v36 }
  0x71   :  { %743 = vmatmul.bf16.vlgmr.msrb.gmra.mxu0 %v8308_v42  ;;  %772 = vmatmul.bf16.vlgmr.msrb.gmra.mxu1 %v8308_v42 }
  0x72   :  { %801 = vmatmul.bf16.vlgmr.msrb.gmra.mxu2 %v8308_v42  ;;  %830 = vmatmul.bf16.vlgmr.msrb.gmra.mxu3 %v8308_v42  ;;  %v6257_v42 = vor.u32 %v8390_v40, %v6256_v39  ;;  %v8311_v39 = vld [vmem:[%s10194_s0 + $0x1c] sm:$0xff]  ;;  %v858_v40 = vrot.slane %v9078_v19, 5  ;;  %v10221_v19 = vmov 0 }
  0x73   :  { %8875 = vmatpush.bf16.msra.mxu1 %v6213_v35  ;;  %v10222_v19 = vsel %vm9220_vm5, 4294967295, %v10221_v19 }
  0x74   :  { %1095 = vmatpush.bf16.msra.mxu0 %v6257_v42  ;;  %v864_v42 = vrot.slane %v9093_v33, 5  ;;  %10223 = vst [vmem:[#allocation15_spill] sm:$0xff] %v10222_v19 }
  0x76   :  { %v866_v43 = vrot.slane %v864_v42, 4 }
  0x78   :  { %1096 = vmatpush.bf16.msra.mxu0 %v6241_v61  ;;  %v874_v61 = vrot.slane %v9147_v45, 5 }
  0x7a   :  { %v875_v3 = vsel %vm9220_vm5, %v873_v59, %v874_v61  ;;  %v876_v10 = vrot.slane %v874_v61, 4 }
  0x7b   :  { %v920_v4 = vunpack.c.l.b16 %v875_v3 }
  0x7c   :  { %1097 = vmatpush.bf16.msra.mxu0 %v6225_v11  ;;  %v879_v11 = vrot.slane %v877_v9, 4 }
  0x7d   :  { %v925_v6 = vpack.c.b16 %v920_v4, %v919_v16 }
  0x7e   :  { %v881_v23 = vsel %vm9220_vm5, %v879_v11, %v880_v13 }
  0x7f   :  { %v922_v17 = vunpack.c.l.b16 %v881_v23 }
  0x80   :  { %1098 = vmatpush.bf16.msra.mxu0 %v6209_v29 }
  0x81   :  { %748 = vmatmul.bf16.gmra.mxu0 %v8309_v22  ;;  %777 = vmatmul.bf16.gmra.mxu1 %v8309_v22 }
  0x82   :  { %806 = vmatmul.bf16.gmra.mxu2 %v8309_v22  ;;  %835 = vmatmul.bf16.gmra.mxu3 %v8309_v22  ;;  %v6218_v22 = vld [vmem:[#allocation4 + $0x218] sm:$0xf0] }
  0x83   :  { %v6221_v38 = vor.u32 %v8377_v37, %v6218_v22 }
  0x84   :  { %1120 = vmatpush.bf16.msrb.mxu0 %v9184_v55  ;;  %v6204_v55 = vrot.slane %v9073_v18, 9 }
  0x85   :  { %1185 = vmatpush.bf16.msra.mxu3 %v6221_v38 }
  0x86   :  { %v859_v21 = vsel %vm9220_vm5, %v6204_v55, %v858_v40 }
  0x87   :  { %v915_v46 = vunpack.c.l.b16 %v859_v21 }
  0x88   :  { %1121 = vmatpush.bf16.msrb.mxu0 %v9187_v1  ;;  %v860_v1 = vrot.slane %v858_v40, 4 }
  0x8a   :  { %v862_v33 = vsel %vm9220_vm5, %v860_v1, %v861_v41 }
  0x8b   :  { %v916_v47 = vunpack.c.l.b16 %v862_v33 }
  0x8c   :  { %1122 = vmatpush.bf16.msrb.mxu0 %v9190_v24  ;;  %v863_v24 = vrot.slane %v861_v41, 4 }
  0x8e   :  { %v865_v18 = vsel %vm9220_vm5, %v863_v24, %v864_v42 }
  0x8f   :  { %v917_v51 = vunpack.c.l.b16 %v865_v18 }
  0x90   :  { %1123 = vmatpush.bf16.msrb.mxu0 %v9193_v34  ;;  %v868_v34 = vsel %vm9220_vm5, %v866_v43, %v867_v44 }
  0x91   :  { %753 = vmatmul.bf16.gmra.mxu0 %v8310_v25  ;;  %782 = vmatmul.bf16.gmra.mxu1 %v8310_v25  ;;  %v918_v53 = vunpack.c.l.b16 %v868_v34 }
  0x92   :  { %811 = vmatmul.bf16.gmra.mxu2 %v8310_v25  ;;  %840 = vmatmul.bf16.gmra.mxu3 %v8310_v25  ;;  %v878_v25 = vsel %vm9220_vm5, %v876_v10, %v877_v9 }
  0x93   :  { %v924_v54 = vpack.c.b16 %v918_v53, %v917_v51  ;;  %v921_v26 = vunpack.c.l.b16 %v878_v25 }
  0x94   :  { %1124 = vmatpush.bf16.msrb.mxu0 %v9199_v50  ;;  %v9234_v50 = vpack.c.b16 %v916_v47, %v915_v46 }
  0x95   :  { %v926_v29 = vpack.c.b16 %v922_v17, %v921_v26 }
  0x98   :  { %1125 = vmatpush.bf16.msrb.mxu0 %v9202_v62 }
  0x9c   :  { %1126 = vmatpush.bf16.msrb.mxu0 %v6229_v14 }
  0xa0   :  { %1127 = vmatpush.bf16.msrb.mxu0 %v6213_v35 }
  0xa1   :  { %758 = vmatmul.bf16.gmra.mxu0 %v8311_v39  ;;  %787 = vmatmul.bf16.gmra.mxu1 %v8311_v39 }
  0xa2   :  { %816 = vmatmul.bf16.gmra.mxu2 %v8311_v39  ;;  %845 = vmatmul.bf16.gmra.mxu3 %v8311_v39 }
  0xae   :  { %v9236_v56 = vpop.f32.mrf.mxu0  ;;  %v9238_v57 = vpop.f32.mrf.mxu1 }
  0xb1   :  { %1099 = vmatmul.bf16.vlgmr.msra.gmra.mxu0 %v9234_v50  ;;  %1133 = vmatmul.bf16.vlgmr.msra.gmra.mxu1 %v924_v54 }
  0xb2   :  { %1157 = vmatmul.bf16.vlgmr.msra.gmra.mxu2 %v9234_v50  ;;  %1186 = vmatmul.bf16.vlgmr.msra.gmra.mxu3 %v9234_v50 }
  0xb5   :  { %v502_v62 = vpop.f32.mrf.mxu2  ;;  %v531_v63 = vpop.f32.mrf.mxu3 }
  0xb6   :  { %v9246_v0 = vpop.f32.mrf.mxu0  ;;  %v9248_v2 = vpop.f32.mrf.mxu1 }
  0xb7   :  { %10224 = vst [vmem:[#allocation16_spill] sm:$0xff] %v9248_v2 }
  0xbd   :  { %v9254_v5 = vpop.f32.mrf.mxu2  ;;  %v9256_v48 = vpop.f32.mrf.mxu3 }
  0xbe   :  { %v449_v45 = vpop.f32.mrf.mxu0  ;;  %v478_v7 = vpop.f32.mrf.mxu1 }
  0xc1   :  { %1104 = vmatmul.bf16.gmra.mxu0 %v924_v54  ;;  %1138 = vmatmul.bf16.gmra.mxu1 %v925_v6 }
  0xc2   :  { %1162 = vmatmul.bf16.gmra.mxu2 %v924_v54  ;;  %1191 = vmatmul.bf16.gmra.mxu3 %v924_v54 }
  0xc5   :  { %v507_v14 = vpop.f32.mrf.mxu2  ;;  %v536_v20 = vpop.f32.mrf.mxu3 }
  0xc6   :  { %v9260_v8 = vpop.f32.mrf.mxu0  ;;  %v9262_v12 = vpop.f32.mrf.mxu1 }
  0xcd   :  { %v9268_v28 = vpop.f32.mrf.mxu2  ;;  %v9270_v27 = vpop.f32.mrf.mxu3 }
  0xce   :  { %v454_v15 = vpop.f32.mrf.mxu0  ;;  %v483_v30 = vpop.f32.mrf.mxu1 }
  0xd1   :  { %1109 = vmatmul.bf16.gmra.mxu0 %v925_v6  ;;  %1143 = vmatmul.bf16.gmra.mxu1 %v926_v29 }
  0xd2   :  { %1167 = vmatmul.bf16.gmra.mxu2 %v925_v6  ;;  %1196 = vmatmul.bf16.gmra.mxu3 %v925_v6 }
  0xd5   :  { %v512_v31 = vpop.f32.mrf.mxu2  ;;  %v541_v32 = vpop.f32.mrf.mxu3 }
  0xd6   :  { %v9272_v35 = vpop.f32.mrf.mxu0  ;;  %v9274_v36 = vpop.f32.mrf.mxu1 }
  0xdd   :  { %v9276_v37 = vpop.f32.mrf.mxu2  ;;  %v9278_v22 = vpop.f32.mrf.mxu3 }
  0xde   :  { %v459_v38 = vpop.f32.mrf.mxu0  ;;  %v9280_v39 = vpop.f32.mrf.mxu1 }
  0xe1   :  { %1114 = vmatmul.bf16.gmra.mxu0 %v926_v29 }
  0xe2   :  { %1172 = vmatmul.bf16.gmra.mxu2 %v926_v29  ;;  %1201 = vmatmul.bf16.gmra.mxu3 %v926_v29 }
  0xe5   :  { %v517_v40 = vpop.f32.mrf.mxu2  ;;  %v546_v41 = vpop.f32.mrf.mxu3 }
  0xe6   :  { %v9282_v42 = vpop.f32.mrf.mxu0  ;;  %v9284_v55 = vpop.f32.mrf.mxu1 }
  0xed   :  { %v9286_v1 = vpop.f32.mrf.mxu2  ;;  %v9288_v24 = vpop.f32.mrf.mxu3 }
  0xee   :  { %10225 = vst [vmem:[#allocation17_spill] sm:$0xff] %v9288_v24  ;;  %v744_v43 = vpop.f32.mrf.mxu0  ;;  %v773_v44 = vpop.f32.mrf.mxu1 }
  0xef   :  { %v745_v21 = vadd.f32 %v744_v43, %v9236_v56  ;;  %v9292_v33 = vadd.f32 %v773_v44, %v9238_v57 }
  0xf1   :  { %10226 = vst [vmem:[#allocation18_spill] sm:$0xff] %v9292_v33  ;;  %1128 = vmatmul.bf16.vlgmr.msrb.gmra.mxu0 %v9234_v50 }
  0xf5   :  { %v802_v18 = vpop.f32.mrf.mxu2  ;;  %v831_v34 = vpop.f32.mrf.mxu3 }
  0xf6   :  { %v803_v46 = vadd.f32 %v802_v18, %v502_v62  ;;  %v832_v47 = vadd.f32 %v831_v34, %v531_v63  ;;  %v746_v51 = vpop.f32.mrf.mxu0  ;;  %v9295_v53 = vpop.f32.mrf.mxu1 }
  0xf7   :  { %10227 = vst [vmem:[#allocation19_spill] sm:$0xff] %v9295_v53 }
  0xfd   :  { %v804_v54 = vpop.f32.mrf.mxu2  ;;  %v9297_v58 = vpop.f32.mrf.mxu3 }
  0xfe   :  { %v749_v52 = vpop.f32.mrf.mxu0  ;;  %v778_v59 = vpop.f32.mrf.mxu1  ;;  %v805_v53 = vadd.f32 %v804_v54, %v9254_v5 }
  0xff   :  { %v9299_v61 = vadd.f32 %v749_v52, %v449_v45  ;;  %v779_v56 = vadd.f32 %v778_v59, %v478_v7 }
 0x105   :  { %v807_v60 = vpop.f32.mrf.mxu2  ;;  %v836_v57 = vpop.f32.mrf.mxu3 }
 0x106   :  { %v9301_v3 = vadd.f32 %v807_v60, %v507_v14  ;;  %v9303_v50 = vadd.f32 %v836_v57, %v536_v20  ;;  %v9305_v16 = vpop.f32.mrf.mxu0  ;;  %v9307_v62 = vpop.f32.mrf.mxu1 }
 0x10d   :  { %v9309_v63 = vpop.f32.mrf.mxu2  ;;  %v9311_v4 = vpop.f32.mrf.mxu3 }
 0x10e   :  { %v754_v6 = vpop.f32.mrf.mxu0  ;;  %v783_v9 = vpop.f32.mrf.mxu1 }
 0x10f   :  { %v9313_v10 = vadd.f32 %v754_v6, %v454_v15  ;;  %v9315_v45 = vadd.f32 %v783_v9, %v483_v30 }
 0x115   :  { %v812_v7 = vpop.f32.mrf.mxu2  ;;  %v841_v11 = vpop.f32.mrf.mxu3 }
 0x116   :  { %v9317_v13 = vadd.f32 %v812_v7, %v512_v31  ;;  %v9319_v14 = vadd.f32 %v841_v11, %v541_v32  ;;  %v9321_v20 = vpop.f32.mrf.mxu0  ;;  %v9323_v25 = vpop.f32.mrf.mxu1 }
 0x11d   :  { %v9325_v23 = vpop.f32.mrf.mxu2  ;;  %v9327_v26 = vpop.f32.mrf.mxu3 }
 0x11e   :  { %v759_v17 = vpop.f32.mrf.mxu0  ;;  %v9331_v15 = vpop.f32.mrf.mxu1 }
 0x11f   :  { %v9329_v29 = vadd.f32 %v759_v17, %v459_v38  ;;  %v1239_v38 = vld [vmem:[%s10196_s2] sm:$0xf] }
 0x120   :  { %v9348_v57 = vperm.slane %v1239_v38, 0  ;;  %v9350_v6 = vperm.slane %v1239_v38, 2  ;;  %v9368_v54 = vperm.slane %v1239_v38, 3 }
 0x125   :  { %v817_v30 = vpop.f32.mrf.mxu2  ;;  %v846_v43 = vpop.f32.mrf.mxu3 }
 0x126   :  { %v9333_v44 = vadd.f32 %v817_v30, %v517_v40  ;;  %v9335_v31 = vadd.f32 %v846_v43, %v546_v41  ;;  %v9337_v32 = vpop.f32.mrf.mxu0  ;;  %v9339_v18 = vpop.f32.mrf.mxu1  ;;  %v747_v43 = vadd.f32 %v746_v51, %v9246_v0  ;;  %v9364_v51 = vperm.slane %v1239_v38, 1 }
 0x12d   :  { %v9341_v34 = vpop.f32.mrf.mxu2  ;;  %v9343_v52 = vpop.f32.mrf.mxu3 }
 0x12e   :  { %10228 = vst [vmem:[#allocation20_spill] sm:$0xff] %v9343_v52  ;;  %v1100_v59 = vpop.f32.mrf.mxu0  ;;  %v1134_v40 = vpop.f32.mrf.mxu1 }
 0x12f   :  { %v1207_v60 = vadd.f32 %v1100_v59, %v745_v21  ;;  %v1216_v0 = vadd.f32 %v1134_v40, %v779_v56 }
 0x131   :  { %v1249_v7 = vadd.f32 %v9348_v57, %v1207_v60 }
 0x133   :  { %v1281_v59 = vmax.f32 %v1249_v7, 0.0 }
 0x135   :  { %v1158_v41 = vpop.f32.mrf.mxu2  ;;  %v1187_v9 = vpop.f32.mrf.mxu3 }
 0x136   :  { %v1209_v11 = vadd.f32 %v1158_v41, %v803_v46  ;;  %v9353_v17 = vadd.f32 %v1187_v9, %v832_v47  ;;  %v1102_v30 = vpop.f32.mrf.mxu0  ;;  %v9361_v60 = vpop.f32.mrf.mxu1 }
 0x137   :  { %v1211_v19 = vadd.f32 %v1102_v30, %v747_v43 }
 0x138   :  { %v1251_v21 = vadd.f32 %v9350_v6, %v1209_v11 }
 0x139   :  { %v1253_v24 = vadd.f32 %v9348_v57, %v1211_v19 }
 0x13a   :  { %v1283_v49 = vmax.f32 %v1251_v21, 0.0 }
 0x13b   :  { %v1285_v9 = vmax.f32 %v1253_v24, 0.0 }
 0x13c   :  { %v1313_v2 = vmax.f32 %v1281_v59, %v1283_v49  ;;  %v1258_v49 = vadd.f32 %v9364_v51, %v1216_v0 }
 0x13d   :  { %v1160_v33 = vpop.f32.mrf.mxu2  ;;  %v9358_v52 = vpop.f32.mrf.mxu3 }
 0x13e   :  { %v1213_v46 = vadd.f32 %v1160_v33, %v805_v53  ;;  %v1105_v47 = vpop.f32.mrf.mxu0  ;;  %v1139_v24 = vpop.f32.mrf.mxu1  ;;  %v1290_v59 = vmax.f32 %v1258_v49, 0.0 }
 0x13f   :  { %v1215_v11 = vadd.f32 %v1105_v47, %v9299_v61 }
 0x140   :  { %v1255_v41 = vadd.f32 %v9350_v6, %v1213_v46 }
 0x141   :  { %v1257_v43 = vadd.f32 %v9348_v57, %v1215_v11 }
 0x142   :  { %v1287_v7 = vmax.f32 %v1255_v41, 0.0 }
 0x143   :  { %v1289_v38 = vmax.f32 %v1257_v43, 0.0 }
 0x144   :  { %v1315_v5 = vmax.f32 %v1285_v9, %v1287_v7 }
 0x145   :  { %v1163_v30 = vpop.f32.mrf.mxu2  ;;  %v1192_v19 = vpop.f32.mrf.mxu3 }
 0x146   :  { %v1217_v33 = vadd.f32 %v1163_v30, %v9301_v3  ;;  %v1218_v53 = vadd.f32 %v1192_v19, %v9303_v50  ;;  %v9373_v56 = vpop.f32.mrf.mxu0  ;;  %v9375_v40 = vpack.c.bf16 %v1315_v5, %v1313_v2  ;;  %v1224_v2 = vadd.f32 %v1139_v24, %v9315_v45  ;;  %v1141_v7 = vpop.f32.mrf.mxu1 }
 0x148   :  { %v1259_v61 = vadd.f32 %v9350_v6, %v1217_v33  ;;  %v1260_v21 = vadd.f32 %v9368_v54, %v1218_v53  ;;  %v1266_v49 = vadd.f32 %v9364_v51, %v1224_v2 }
 0x14a   :  { %v1291_v46 = vmax.f32 %v1259_v61, 0.0  ;;  %v1292_v47 = vmax.f32 %v1260_v21, 0.0 }
 0x14c   :  { %v9379_v41 = vmax.f32 %v1289_v38, %v1291_v46  ;;  %v9381_v0 = vmax.f32 %v1290_v59, %v1292_v47  ;;  %v1298_v59 = vmax.f32 %v1266_v49, 0.0  ;;  %v752_v49 = vadd.f32 %v9305_v16, %v9260_v8 }
 0x14d   :  { %v1165_v3 = vpop.f32.mrf.mxu2  ;;  %v9383_v9 = vpop.f32.mrf.mxu3 }
 0x14e   :  { %v1110_v50 = vpop.f32.mrf.mxu0 }
 0x14f   :  { %v1223_v11 = vadd.f32 %v1110_v50, %v9313_v10  ;;  %v1144_v10 = vpop.f32.mrf.mxu1 }
 0x151   :  { %v1265_v19 = vadd.f32 %v9348_v57, %v1223_v11 }
 0x153   :  { %v1297_v45 = vmax.f32 %v1265_v19, 0.0  ;;  %v781_v19 = vadd.f32 %v9307_v62, %v9262_v12  ;;  %v757_v12 = vadd.f32 %v9321_v20, %v9272_v35  ;;  %v844_v62 = vadd.f32 %v9327_v26, %v9278_v22 }
 0x155   :  { %v1168_v5 = vpop.f32.mrf.mxu2  ;;  %v1197_v30 = vpop.f32.mrf.mxu3 }
 0x156   :  { %v1225_v43 = vadd.f32 %v1168_v5, %v9317_v13  ;;  %v1226_v33 = vadd.f32 %v1197_v30, %v9319_v14  ;;  %v1112_v53 = vpop.f32.mrf.mxu0  ;;  %v789_v13 = vadd.f32 %v9331_v15, %v9280_v39  ;;  %v9402_v30 = vadd.f32 %v9297_v58, %v9256_v48 }
 0x157   :  { %v1146_v15 = vpop.f32.mrf.mxu1 }
 0x158   :  { %v1267_v61 = vadd.f32 %v9350_v6, %v1225_v43  ;;  %v1268_v21 = vadd.f32 %v9368_v54, %v1226_v33  ;;  %v1232_v14 = vadd.f32 %v1144_v10, %v789_v13  ;;  %v810_v43 = vadd.f32 %v9309_v63, %v9268_v28 }
 0x159   :  { %v815_v28 = vadd.f32 %v9325_v23, %v9276_v37  ;;  %v786_v63 = vadd.f32 %v9323_v25, %v9274_v36  ;;  %v10230_v36 = vld [vmem:[#allocation20_spill] sm:$0xff] }
 0x15a   :  { %v1299_v24 = vmax.f32 %v1267_v61, 0.0  ;;  %v1300_v38 = vmax.f32 %v1268_v21, 0.0  ;;  %v1274_v33 = vadd.f32 %v9364_v51, %v1232_v14 }
 0x15c   :  { %v9393_v46 = vmax.f32 %v1297_v45, %v1299_v24  ;;  %v9395_v47 = vmax.f32 %v1298_v59, %v1300_v38  ;;  %v1306_v35 = vmax.f32 %v1274_v33, 0.0  ;;  %v1221_v45 = vadd.f32 %v1165_v3, %v810_v43 }
 0x15d   :  { %v1170_v50 = vpop.f32.mrf.mxu2  ;;  %v1199_v2 = vpop.f32.mrf.mxu3  ;;  %v1227_v24 = vadd.f32 %v1112_v53, %v757_v12 }
 0x15e   :  { %v1115_v11 = vpop.f32.mrf.mxu0  ;;  %v1229_v21 = vadd.f32 %v1170_v50, %v815_v28  ;;  %v1230_v37 = vadd.f32 %v1199_v2, %v844_v62  ;;  %v1252_v50 = vadd.f32 %v9368_v54, %v9353_v17  ;;  %v1263_v33 = vadd.f32 %v9350_v6, %v1221_v45 }
 0x15f   :  { %v1231_v5 = vadd.f32 %v1115_v11, %v9329_v29  ;;  %v839_v29 = vadd.f32 %v9311_v4, %v9270_v27  ;;  %v791_v27 = vadd.f32 %v9339_v18, %v9284_v55  ;;  %v762_v4 = vadd.f32 %v9337_v32, %v9282_v42  ;;  %v10229_v18 = vld [vmem:[#allocation17_spill] sm:$0xff] }
 0x160   :  { %v820_v55 = vadd.f32 %v9341_v34, %v9286_v1  ;;  %v849_v25 = vadd.f32 %v10230_v36, %v10229_v18  ;;  %v1220_v42 = vadd.f32 %v9361_v60, %v781_v19  ;;  %v1228_v32 = vadd.f32 %v1141_v7, %v786_v63 }
 0x161   :  { %v1273_v48 = vadd.f32 %v9348_v57, %v1231_v5  ;;  %v1236_v20 = vadd.f32 %v1146_v15, %v791_v27  ;;  %v1222_v2 = vadd.f32 %v9383_v9, %v839_v29  ;;  %v1271_v13 = vadd.f32 %v9350_v6, %v1229_v21  ;;  %v10231_v9 = vld [vmem:[#allocation18_spill] sm:$0xff] }
 0x162   :  { %v1272_v14 = vadd.f32 %v9368_v54, %v1230_v37  ;;  %v1262_v5 = vadd.f32 %v9364_v51, %v1220_v42  ;;  %v1219_v19 = vadd.f32 %v9373_v56, %v752_v49  ;;  %v1270_v17 = vadd.f32 %v9364_v51, %v1228_v32 }
 0x163   :  { %v1305_v23 = vmax.f32 %v1273_v48, 0.0  ;;  %v1278_v11 = vadd.f32 %v9364_v51, %v1236_v20  ;;  %v1264_v15 = vadd.f32 %v9368_v54, %v1222_v2  ;;  %v1284_v28 = vmax.f32 %v1252_v50, 0.0  ;;  %v10233_v20 = vld [vmem:[#allocation19_spill] sm:$0xff] }
 0x164   :  { %v1214_v62 = vadd.f32 %v9358_v52, %v9402_v30  ;;  %v1261_v27 = vadd.f32 %v9348_v57, %v1219_v19  ;;  %v1295_v37 = vmax.f32 %v1263_v33, 0.0  ;;  %v1294_v52 = vmax.f32 %v1262_v5, 0.0  ;;  %v6604_v5 = vld [vmem:[#allocation7 + $0x3e0] sm:$0xf]  ;;  %v8542_v19 = vld [vmem:[#allocation7 + $0x3ec] sm:$0xf0] }
 0x165   :  { %v1173_v61 = vpop.f32.mrf.mxu2  ;;  %v1202_v39 = vpop.f32.mrf.mxu3  ;;  %v1310_v48 = vmax.f32 %v1278_v11, 0.0  ;;  %v8508_v33 = vld [vmem:[#allocation7 + $0x2e4] sm:$0xf] }
 0x166   :  { %v1233_v58 = vadd.f32 %v1173_v61, %v9333_v44  ;;  %v1234_v8 = vadd.f32 %v1202_v39, %v9335_v31  ;;  %v1117_v16 = vpop.f32.mrf.mxu0  ;;  %v1269_v61 = vadd.f32 %v9348_v57, %v1227_v24  ;;  %v1293_v30 = vmax.f32 %v1261_v27, 0.0  ;;  %v3442_v27 = vld [vmem:[#allocation3 + $0x8] sm:$0x11] }
 0x167   :  { %v1235_v26 = vadd.f32 %v1117_v16, %v762_v4  ;;  %v1304_v16 = vmax.f32 %v1272_v14, 0.0  ;;  %v1484_v14 = vld [vmem:[#allocation2 + $0x28] sm:$0x11] }
 0x168   :  { %v1275_v44 = vadd.f32 %v9350_v6, %v1233_v58  ;;  %v1276_v31 = vadd.f32 %v9368_v54, %v1234_v8  ;;  %v1303_v58 = vmax.f32 %v1271_v13, 0.0  ;;  %v1301_v4 = vmax.f32 %v1269_v61, 0.0  ;;  %v6478_v61 = vld [vmem:[#allocation7 + $0x2f0] sm:$0xf0] }
 0x169   :  { %v1277_v60 = vadd.f32 %v9348_v57, %v1235_v26  ;;  %v1256_v57 = vadd.f32 %v9368_v54, %v1214_v62  ;;  %v1319_v24 = vmax.f32 %v1293_v30, %v1295_v37  ;;  %v10234_v13 = vmov 0  ;;  %v6462_v62 = vld [vmem:[#allocation7 + $0x2d0] sm:$0xf0]  ;;  %v8502_v37 = vld [vmem:[#allocation7 + $0x2ac] sm:$0xf0] }
 0x16a   :  { %v1307_v59 = vmax.f32 %v1275_v44, 0.0  ;;  %v1308_v22 = vmax.f32 %v1276_v31, 0.0  ;;  %v1323_v18 = vmax.f32 %v1301_v4, %v1303_v58  ;;  %v10235_v13 = vsel %vm9478_vm15, 4294967295, %v10234_v13  ;;  %v6460_v58 = vld [vmem:[#allocation7 + $0x2c0] sm:$0xf] }
 0x16b   :  { %v1309_v56 = vmax.f32 %v1277_v60, 0.0  ;;  %v1288_v50 = vmax.f32 %v1256_v57, 0.0  ;;  %10236 = vst [vmem:[#allocation17_spill] sm:$0xff] %v10235_v13  ;;  %v6476_v60 = vld [vmem:[#allocation7 + $0x2e0] sm:$0xf]  ;;  %v3443_v4 = vsel %vm9486_vm3, 0, %v3442_v27 }
 0x16c   :  { %v1325_v38 = vmax.f32 %v1305_v23, %v1307_v59  ;;  %v1326_v10 = vmax.f32 %v1306_v35, %v1308_v22  ;;  %v10232_v35 = vld [vmem:[#allocation16_spill] sm:$0xff]  ;;  %v1296_v23 = vmax.f32 %v1264_v15, 0.0  ;;  %v1333_v32 = vpack.c.bf16 %v1323_v18, %v9393_v46  ;;  %3444 = vst [vmem:[#allocation3 + $0x8] sm:$0x11] %v3443_v4  ;;  %v6428_v57 = vld [vmem:[#allocation7 + $0x280] sm:$0xf] }
 0x16d   :  { %v1175_v1 = vpop.f32.mrf.mxu2  ;;  %v1204_v34 = vpop.f32.mrf.mxu3  ;;  %v776_v21 = vadd.f32 %v10233_v20, %v10232_v35  ;;  %v8408_v46 = vld [vmem:[%s10203_s9] sm:$0xff] }
 0x16e   :  { %v1237_v7 = vadd.f32 %v1175_v1, %v820_v55  ;;  %v1238_v3 = vadd.f32 %v1204_v34, %v849_v25  ;;  %v1129_v53 = vpop.f32.mrf.mxu0  ;;  %v1481_v34 = vld [vmem:[#allocation2 + $0x10] sm:$0x11]  ;;  %v6606_v15 = vld [vmem:[#allocation7 + $0x3f0] sm:$0xf0]  ;;  %v8498_v30 = vld [vmem:[#allocation7 + $0x28c] sm:$0xf0] }
 0x16f   :  { %v1208_v43 = vadd.f32 %v1129_v53, %v10231_v9  ;;  %v1485_v9 = vsel %vm9486_vm3, 0, %v1484_v14  ;;  %v6590_v35 = vld [vmem:[#allocation7 + $0x3d0] sm:$0xf0]  ;;  %v8492_v14 = vld [vmem:[#allocation7 + $0x264] sm:$0xf] }
 0x170   :  { %v1279_v39 = vadd.f32 %v9350_v6, %v1237_v7  ;;  %v1280_v29 = vadd.f32 %v9368_v54, %v1238_v3  ;;  %v1302_v6 = vmax.f32 %v1270_v17, 0.0  ;;  %v1331_v54 = vpack.c.bf16 %v1319_v24, %v9379_v41  ;;  %v8410_v41 = vld [vmem:[%s10203_s9 + $0x10] sm:$0xff]  ;;  %v8510_v7 = vld [vmem:[#allocation7 + $0x2ec] sm:$0xf0]  ;;  %1486 = vst [vmem:[#allocation2 + $0x28] sm:$0x11] %v1485_v9 }
 0x171   :  { %v1250_v8 = vadd.f32 %v9364_v51, %v1208_v43  ;;  %v6477_v53 = vor.u32 %v8510_v7, %v6476_v60  ;;  %v1482_v17 = vsel %vm9486_vm3, 0, %v1481_v34  ;;  %v6605_v43 = vor.u32 %v8542_v19, %v6604_v5  ;;  %v6446_v18 = vld [vmem:[#allocation7 + $0x2b0] sm:$0xf0]  ;;  %v6556_v24 = vld [vmem:[#allocation7 + $0x380] sm:$0xf] }
 0x172   :  { %v1311_v49 = vmax.f32 %v1279_v39, 0.0  ;;  %v1312_v12 = vmax.f32 %v1280_v29, 0.0  ;;  %v1324_v36 = vmax.f32 %v1302_v6, %v1304_v16  ;;  %1483 = vst [vmem:[#allocation2 + $0x10] sm:$0x11] %v1482_v17  ;;  %v6481_v39 = vor.u32 %v8508_v33, %v6478_v61  ;;  %v8540_v29 = vld [vmem:[#allocation7 + $0x3e4] sm:$0xf] }
 0x173   :  { %v1282_v63 = vmax.f32 %v1250_v8, 0.0  ;;  %v8506_v8 = vld [vmem:[#allocation7 + $0x2cc] sm:$0xf0]  ;;  %v6588_v16 = vld [vmem:[#allocation7 + $0x3c0] sm:$0xf] }
 0x174   :  { %v1327_v44 = vmax.f32 %v1309_v56, %v1311_v49  ;;  %v1328_v31 = vmax.f32 %v1310_v48, %v1312_v12  ;;  %v1334_v45 = vpack.c.bf16 %v1324_v36, %v9395_v47  ;;  %v8411_v47 = vld [vmem:[%s10203_s9 + $0x18] sm:$0xff]  ;;  %v6609_v48 = vor.u32 %v8540_v29, %v6606_v15  ;;  %v8538_v49 = vld [vmem:[#allocation7 + $0x3cc] sm:$0xf0]  ;;  %v8504_v12 = vld [vmem:[#allocation7 + $0x2c4] sm:$0xf] }
 0x175   :  { %v1314_v59 = vmax.f32 %v1282_v63, %v1284_v28  ;;  %v6461_v56 = vor.u32 %v8506_v8, %v6460_v58  ;;  %v6589_v28 = vor.u32 %v8538_v49, %v6588_v16  ;;  %v3445_v63 = vld [vmem:[#allocation3 + $0x18] sm:$0x11]  ;;  %v6465_v6 = vor.u32 %v8504_v12, %v6462_v62  ;;  %v8532_v36 = vld [vmem:[#allocation7 + $0x3a4] sm:$0xf]  ;;  %v8526_v34 = vld [vmem:[#allocation7 + $0x36c] sm:$0xf0] }
 0x176   :  { %v1131_v22 = vpop.f32.mrf.mxu0  ;;  %v1335_v26 = vpack.c.bf16 %v1327_v44, %v1325_v38  ;;  %v1336_v55 = vpack.c.bf16 %v1328_v31, %v1326_v10  ;;  %v1320_v38 = vmax.f32 %v1294_v52, %v1296_v23  ;;  %v3446_v44 = vsel %vm9486_vm3, 0, %v3445_v63  ;;  %v8536_v31 = vld [vmem:[#allocation7 + $0x3c4] sm:$0xf]  ;;  %v6574_v52 = vld [vmem:[#allocation7 + $0x3b0] sm:$0xf0] }
 0x177   :  { %v1212_v25 = vadd.f32 %v1131_v22, %v776_v21  ;;  %v6593_v20 = vor.u32 %v8536_v31, %v6590_v35  ;;  %v6444_v21 = vld [vmem:[#allocation7 + $0x2a0] sm:$0xf]  ;;  %3447 = vst [vmem:[#allocation3 + $0x18] sm:$0x11] %v3446_v44  ;;  %v8534_v22 = vld [vmem:[#allocation7 + $0x3ac] sm:$0xf0] }
 0x178   :  { %1362 = vmatpush.bf16.msra.mxu0 %v1335_v26  ;;  %1381 = vmatpush.bf16.msrb.mxu1 %v1336_v55  ;;  %v1332_v2 = vpack.c.bf16 %v1320_v38, %v9381_v0  ;;  %v8409_v0 = vld [vmem:[%s10203_s9 + $0x8] sm:$0xff]  ;;  %v6445_v23 = vor.u32 %v8502_v37, %v6444_v21  ;;  %v6414_v7 = vld [vmem:[#allocation7 + $0x270] sm:$0xf0]  ;;  %v8524_v3 = vld [vmem:[#allocation7 + $0x364] sm:$0xf] }
 0x179   :  { %v1254_v42 = vadd.f32 %v9364_v51, %v1212_v25  ;;  %1421 = vmatpush.bf16.msrb.mxu2 %v1335_v26  ;;  %1440 = vmatpush.bf16.msrb.mxu3 %v1336_v55  ;;  %v8500_v55 = vld [vmem:[#allocation7 + $0x2a4] sm:$0xf]  ;;  %v6417_v5 = vor.u32 %v8492_v14, %v6414_v7  ;;  %v6396_v17 = vld [vmem:[#allocation7 + $0x240] sm:$0xf]  ;;  %v8490_v9 = vld [vmem:[#allocation7 + $0x24c] sm:$0xf0] }
 0x17a   :  { %v6449_v25 = vor.u32 %v8500_v55, %v6446_v18  ;;  %v8522_v29 = vld [vmem:[#allocation7 + $0x34c] sm:$0xf0]  ;;  %v8488_v15 = vld [vmem:[#allocation7 + $0x244] sm:$0xf]  ;;  %v6526_v16 = vld [vmem:[#allocation7 + $0x350] sm:$0xf0] }
 0x17b   :  { %v1286_v10 = vmax.f32 %v1254_v42, 0.0  ;;  %v1473_v42 = vld [vmem:[#allocation2 + $0x18] sm:$0x11]  ;;  %v8520_v8 = vld [vmem:[#allocation7 + $0x344] sm:$0xf] }
 0x17c   :  { %1363 = vmatpush.bf16.msra.mxu0 %v1333_v32  ;;  %1382 = vmatpush.bf16.msrb.mxu1 %v1334_v45  ;;  %v1474_v38 = vsel %vm9478_vm15, 0, %v1473_v42  ;;  %v6529_v49 = vor.u32 %v8520_v8, %v6526_v16  ;;  %v6380_v12 = vld [vmem:[#allocation7 + $0x220] sm:$0xf]  ;;  %v8518_v63 = vld [vmem:[#allocation7 + $0x32c] sm:$0xf0] }
 0x17d   :  { %1422 = vmatpush.bf16.msrb.mxu2 %v1333_v32  ;;  %1441 = vmatpush.bf16.msrb.mxu3 %v1334_v45  ;;  %v1316_v11 = vmax.f32 %v1286_v10, %v1288_v50  ;;  %v6577_v32 = vor.u32 %v8532_v36, %v6574_v52  ;;  %v6429_v45 = vor.u32 %v8498_v30, %v6428_v57  ;;  %v8530_v10 = vld [vmem:[#allocation7 + $0x38c] sm:$0xf0]  ;;  %v8496_v50 = vld [vmem:[#allocation7 + $0x284] sm:$0xf]  ;;  %v6508_v62 = vld [vmem:[#allocation7 + $0x320] sm:$0xf] }
 0x17e   :  { %1475 = vst [vmem:[#allocation2 + $0x18] sm:$0x11] %v1474_v38  ;;  %v6382_v4 = vld [vmem:[#allocation7 + $0x230] sm:$0xf0]  ;;  %v6509_v44 = vor.u32 %v8518_v63, %v6508_v62  ;;  %v8516_v31 = vld [vmem:[#allocation7 + $0x324] sm:$0xf] }
 0x17f   :  { %v1330_v51 = vpack.c.bf16 %v1316_v11, %v1314_v59  ;;  %v6572_v59 = vld [vmem:[#allocation7 + $0x3a0] sm:$0xf]  ;;  %v8528_v11 = vld [vmem:[#allocation7 + $0x384] sm:$0xf]  ;;  %v6510_v35 = vld [vmem:[#allocation7 + $0x330] sm:$0xf0] }
 0x180   :  { %1364 = vmatpush.bf16.msra.mxu0 %v1331_v54  ;;  %1383 = vmatpush.bf16.msrb.mxu1 %v1332_v2  ;;  %v6573_v26 = vor.u32 %v8534_v22, %v6572_v59  ;;  %v6364_v59 = vld [vmem:[#allocation7 + $0x200] sm:$0xf]  ;;  %v8482_v22 = vld [vmem:[#allocation7 + $0x20c] sm:$0xf0]  ;;  %v8480_v52 = vld [vmem:[#allocation7 + $0x204] sm:$0xf] }
 0x181   :  { %1423 = vmatpush.bf16.msrb.mxu2 %v1331_v54  ;;  %1442 = vmatpush.bf16.msrb.mxu3 %v1332_v2  ;;  %v6557_v54 = vor.u32 %v8530_v10, %v6556_v24  ;;  %v6430_v2 = vld [vmem:[#allocation7 + $0x290] sm:$0xf0]  ;;  %v6365_v36 = vor.u32 %v8482_v22, %v6364_v59  ;;  %v8512_v42 = vld [vmem:[#allocation7 + $0x304] sm:$0xf]  ;;  %v6598_v63 = vld [vmem:[#allocation7 + $0x3d8] sm:$0xf0] }
 0x182   :  { %v6366_v57 = vld [vmem:[#allocation7 + $0x210] sm:$0xf0] }
 0x184   :  { %1365 = vmatpush.bf16.msra.mxu0 %v9375_v40  ;;  %1384 = vmatpush.bf16.msrb.mxu1 %v1330_v51 }
 0x185   :  { %1424 = vmatpush.bf16.msrb.mxu2 %v9375_v40  ;;  %1443 = vmatpush.bf16.msrb.mxu3 %v1330_v51  ;;  %v1470_v40 = vld [vmem:[#allocation2] sm:$0x11]  ;;  %v6433_v51 = vor.u32 %v8496_v50, %v6430_v2  ;;  %v6369_v50 = vor.u32 %v8480_v52, %v6366_v57  ;;  %v6454_v57 = vld [vmem:[#allocation7 + $0x2b8] sm:$0xf0] }
 0x186   :  { %v1471_v1 = vsel %vm9478_vm15, 0, %v1470_v40 }
 0x187   :  { %6342 = vmatmul.msk.bf16.vlgmr.msra.gmra.mxu0 %vm1351_vm6, %v8408_v46  ;;  %6344 = vmatmul.msk.bf16.vlgmr.msrb.gmra.mxu1 %vm1351_vm6, %v8408_v46  ;;  %1472 = vst [vmem:[#allocation2] sm:$0x11] %v1471_v1  ;;  %v6558_v46 = vld [vmem:[#allocation7 + $0x390] sm:$0xf0]  ;;  %v6540_v1 = vld [vmem:[#allocation7 + $0x360] sm:$0xf] }
 0x188   :  { %6358 = vmatmul.msk.bf16.vlgmr.msrb.gmra.mxu2 %vm1351_vm6, %v8410_v41  ;;  %6360 = vmatmul.msk.bf16.vlgmr.msrb.gmra.mxu3 %vm1351_vm6, %v8410_v41  ;;  %v6412_v41 = vld [vmem:[#allocation7 + $0x260] sm:$0xf]  ;;  %v6541_v60 = vor.u32 %v8526_v34, %v6540_v1  ;;  %v8509_v1 = vld [vmem:[#allocation7 + $0x2ec] sm:$0xf] }
 0x189   :  { %2071 = vmatpush.bf16.msrb.mxu0 %v6477_v53  ;;  %2090 = vmatpush.bf16.msra.mxu1 %v6605_v43  ;;  %v6542_v53 = vld [vmem:[#allocation7 + $0x370] sm:$0xf0]  ;;  %v6524_v43 = vld [vmem:[#allocation7 + $0x340] sm:$0xf] }
 0x18a   :  { %2109 = vmatpush.bf16.msra.mxu2 %v6481_v39  ;;  %2128 = vmatpush.bf16.msra.mxu3 %v6609_v48  ;;  %v6545_v19 = vor.u32 %v8524_v3, %v6542_v53  ;;  %v6397_v39 = vor.u32 %v8490_v9, %v6396_v17  ;;  %v6398_v48 = vld [vmem:[#allocation7 + $0x250] sm:$0xf0]  ;;  %v6525_v58 = vor.u32 %v8522_v29, %v6524_v43  ;;  %v6486_v3 = vld [vmem:[#allocation7 + $0x2f8] sm:$0xf0]  ;;  %v8541_v53 = vld [vmem:[#allocation7 + $0x3ec] sm:$0xf] }
 0x18b   :  { %v6489_v17 = vor.u32 %v8509_v1, %v6486_v3  ;;  %v6614_v9 = vld [vmem:[#allocation7 + $0x3f8] sm:$0xf0]  ;;  %v6468_v43 = vld [vmem:[#allocation7 + $0x2c8] sm:$0xf] }
 0x18d   :  { %2072 = vmatpush.bf16.msrb.mxu0 %v6461_v56  ;;  %2091 = vmatpush.bf16.msra.mxu1 %v6589_v28  ;;  %v6401_v56 = vor.u32 %v8488_v15, %v6398_v48  ;;  %v8486_v28 = vld [vmem:[#allocation7 + $0x22c] sm:$0xf0]  ;;  %v6596_v15 = vld [vmem:[#allocation7 + $0x3c8] sm:$0xf]  ;;  %v8539_v48 = vld [vmem:[#allocation7 + $0x3d4] sm:$0xf0] }
 0x18e   :  { %2110 = vmatpush.bf16.msra.mxu2 %v6465_v6  ;;  %2129 = vmatpush.bf16.msra.mxu3 %v6593_v20  ;;  %v6381_v27 = vor.u32 %v8486_v28, %v6380_v12  ;;  %v8484_v6 = vld [vmem:[#allocation7 + $0x224] sm:$0xf]  ;;  %v6597_v16 = vor.u32 %v8539_v48, %v6596_v15  ;;  %v8537_v12 = vld [vmem:[#allocation7 + $0x3cc] sm:$0xf] }
 0x18f   :  { %v6385_v20 = vor.u32 %v8484_v6, %v6382_v4  ;;  %v6452_v6 = vld [vmem:[#allocation7 + $0x2a8] sm:$0xf]  ;;  %v8503_v4 = vld [vmem:[#allocation7 + $0x2b4] sm:$0xf0] }
 0x191   :  { %2073 = vmatpush.bf16.msrb.mxu0 %v6445_v23  ;;  %2092 = vmatpush.bf16.msra.mxu1 %v6573_v26  ;;  %v6513_v23 = vor.u32 %v8516_v31, %v6510_v35  ;;  %v6492_v26 = vld [vmem:[#allocation7 + $0x300] sm:$0xf]  ;;  %v6601_v35 = vor.u32 %v8537_v12, %v6598_v63 }
 0x192   :  { %2111 = vmatpush.bf16.msra.mxu2 %v6449_v25  ;;  %2130 = vmatpush.bf16.msra.mxu3 %v6577_v32  ;;  %v8514_v25 = vld [vmem:[#allocation7 + $0x30c] sm:$0xf0]  ;;  %v6494_v32 = vld [vmem:[#allocation7 + $0x310] sm:$0xf0] }
 0x193   :  { %v6493_v30 = vor.u32 %v8514_v25, %v6492_v26  ;;  %v6497_v2 = vor.u32 %v8512_v42, %v6494_v32  ;;  %v8535_v26 = vld [vmem:[#allocation7 + $0x3b4] sm:$0xf0] }
 0x195   :  { %2074 = vmatpush.bf16.msrb.mxu0 %v6429_v45  ;;  %2093 = vmatpush.bf16.msra.mxu1 %v6557_v54 }
 0x196   :  { %2112 = vmatpush.bf16.msra.mxu2 %v6433_v51  ;;  %v6484_v51 = vld [vmem:[#allocation7 + $0x2e8] sm:$0xf] }
 0x197   :  { %6343 = vmatmul.msk.bf16.gmra.mxu0 %vm1351_vm6, %v8409_v0  ;;  %6345 = vmatmul.msk.bf16.gmra.mxu1 %vm1351_vm6, %v8409_v0  ;;  %v8494_v0 = vld [vmem:[#allocation7 + $0x26c] sm:$0xf0] }
 0x198   :  { %6359 = vmatmul.msk.bf16.gmra.mxu2 %vm1351_vm6, %v8411_v47  ;;  %6361 = vmatmul.msk.bf16.gmra.mxu3 %vm1351_vm6, %v8411_v47  ;;  %v6561_v47 = vor.u32 %v8528_v11, %v6558_v46  ;;  %v6413_v40 = vor.u32 %v8494_v0, %v6412_v41  ;;  %vm1535_vm6 = vcmask 1047556   ;;  %v8511_v46 = vld [vmem:[#allocation7 + $0x2f4] sm:$0xf0]  ;;  %v1538_v41 = vld [vmem:[#allocation2] sm:$0xff] }
 0x199   :  { %2094 = vmatpush.bf16.msra.mxu1 %v6541_v60  ;;  %vm9508_vm9 = vmand %vm1535_vm6, %vm1478_vm14  ;;  %v6485_v0 = vor.u32 %v8511_v46, %v6484_v51  ;;  %v10243_v60 = vmov 0  ;;  %v8499_v51 = vld [vmem:[#allocation7 + $0x294] sm:$0xf0]  ;;  %v6564_v46 = vld [vmem:[#allocation7 + $0x388] sm:$0xf] }
 0x19a   :  { %2131 = vmatpush.bf16.msra.mxu3 %v6561_v47  ;;  %2075 = vmatpush.bf16.msrb.mxu0 %v6413_v40  ;;  %v6612_v47 = vld [vmem:[#allocation7 + $0x3e8] sm:$0xf]  ;;  %v8543_v40 = vld [vmem:[#allocation7 + $0x3f4] sm:$0xf0]  ;;  %vm9518_vm10 = vmor %vm9508_vm9, %vm9502_vm7 }
 0x19b   :  { %2113 = vmatpush.bf16.msra.mxu2 %v6417_v5  ;;  %v10244_v60 = vsel %vm9518_vm10, 4294967295, %v10243_v60  ;;  %v6613_v7 = vor.u32 %v8543_v40, %v6612_v47 }
 0x19c   :  { %10245 = vst [vmem:[#allocation20_spill] sm:$0xff] %v10244_v60 }
 0x19d   :  { %2095 = vmatpush.bf16.msra.mxu1 %v6525_v58  ;;  %v6617_v58 = vor.u32 %v8541_v53, %v6614_v9 }
 0x19e   :  { %2132 = vmatpush.bf16.msra.mxu3 %v6545_v19  ;;  %2076 = vmatpush.bf16.msrb.mxu0 %v6397_v39 }
 0x19f   :  { %2114 = vmatpush.bf16.msra.mxu2 %v6401_v56  ;;  %v8505_v56 = vld [vmem:[#allocation7 + $0x2cc] sm:$0xf] }
 0x1a1   :  { %2096 = vmatpush.bf16.msra.mxu1 %v6509_v44 }
 0x1a2   :  { %2133 = vmatpush.bf16.msra.mxu3 %v6529_v49  ;;  %2077 = vmatpush.bf16.msrb.mxu0 %v6381_v27  ;;  %v6470_v49 = vld [vmem:[#allocation7 + $0x2d8] sm:$0xf0] }
 0x1a3   :  { %2115 = vmatpush.bf16.msra.mxu2 %v6385_v20  ;;  %v6473_v27 = vor.u32 %v8505_v56, %v6470_v49  ;;  %v6453_v20 = vor.u32 %v8503_v4, %v6452_v6  ;;  %v1545_v56 = vld [vmem:[#allocation2 + $0x18] sm:$0xff] }
 0x1a5   :  { %2097 = vmatpush.bf16.msra.mxu1 %v6493_v30  ;;  %v8533_v30 = vld [vmem:[#allocation7 + $0x3ac] sm:$0xf] }
 0x1a6   :  { %2134 = vmatpush.bf16.msra.mxu3 %v6513_v23  ;;  %2078 = vmatpush.bf16.msrb.mxu0 %v6365_v36 }
 0x1a7   :  { %2116 = vmatpush.bf16.msra.mxu2 %v6369_v50 }
 0x1a9   :  { %2166 = vmatpush.bf16.msrb.mxu1 %v6613_v7 }
 0x1aa   :  { %2135 = vmatpush.bf16.msra.mxu3 %v6497_v2  ;;  %2147 = vmatpush.bf16.msra.mxu0 %v6485_v0 }
 0x1ab   :  { %2185 = vmatpush.bf16.msrb.mxu2 %v6489_v17 }
 0x1ad   :  { %2167 = vmatpush.bf16.msrb.mxu1 %v6597_v16  ;;  %v6420_v16 = vld [vmem:[#allocation7 + $0x268] sm:$0xf] }
 0x1ae   :  { %2204 = vmatpush.bf16.msrb.mxu3 %v6617_v58 }
 0x1af   :  { %2186 = vmatpush.bf16.msrb.mxu2 %v6473_v27 }
 0x1b2   :  { %2205 = vmatpush.bf16.msrb.mxu3 %v6601_v35  ;;  %v8527_v35 = vld [vmem:[#allocation7 + $0x374] sm:$0xf0] }
 0x204   :  { %v1367_v33 = vpop.f32.mrf.mxu0  ;;  %v1386_v61 = vpop.f32.mrf.mxu1 }
 0x20b   :  { %v1426_v21 = vpop.f32.mrf.mxu2  ;;  %v1445_v37 = vpop.f32.mrf.mxu3 }
 0x20c   :  { %v1455_v55 = vmax.f32 %v1367_v33, %v1426_v21  ;;  %v1456_v18 = vmax.f32 %v1386_v61, %v1445_v37  ;;  %v1369_v38 = vpop.f32.mrf.mxu0  ;;  %v1388_v10 = vpop.f32.mrf.mxu1  ;;  %v8507_v33 = vld [vmem:[#allocation7 + $0x2d4] sm:$0xf0]  ;;  %v6580_v21 = vld [vmem:[#allocation7 + $0x3a8] sm:$0xf] }
 0x20d   :  { %v6469_v8 = vor.u32 %v8507_v33, %v6468_v43  ;;  %v6581_v52 = vor.u32 %v8535_v26, %v6580_v21 }
 0x20e   :  { %v1487_v45 = vpack.c.bf16 %v1456_v18, %v1455_v55  ;;  %v8501_v55 = vld [vmem:[#allocation7 + $0x2ac] sm:$0xf]  ;;  %v1542_v18 = vld [vmem:[#allocation2 + $0x10] sm:$0x11] }
 0x20f   :  { %2148 = vmatpush.bf16.msra.mxu0 %v6469_v8  ;;  %v6457_v24 = vor.u32 %v8501_v55, %v6454_v57  ;;  %2168 = vmatpush.bf16.msrb.mxu1 %v6581_v52 }
 0x210   :  { %v1494_v11 = vshrl.u32 %v1487_v45, 16  ;;  %v1497_v14 = vshll.u32 %v1487_v45, 16 }
 0x211   :  { %2187 = vmatpush.bf16.msrb.mxu2 %v6457_v24  ;;  %v8491_v24 = vld [vmem:[#allocation7 + $0x254] sm:$0xf0] }
 0x212   :  { %v9512_v34 = vrot.slane %v1494_v11, 7 }
 0x213   :  { %v1428_v5 = vpop.f32.mrf.mxu2  ;;  %v1447_v19 = vpop.f32.mrf.mxu3  ;;  %2149 = vmatpush.bf16.msra.mxu0 %v6453_v20  ;;  %v8493_v20 = vld [vmem:[#allocation7 + $0x26c] sm:$0xf] }
 0x214   :  { %v1499_v61 = vor.u32 %v1497_v14, %v9512_v34  ;;  %v1457_v39 = vmax.f32 %v1369_v38, %v1428_v5  ;;  %v1458_v29 = vmax.f32 %v1388_v10, %v1447_v19  ;;  %v1500_v37 = vrot.slane %v9512_v34, 4  ;;  %v1372_v59 = vpop.f32.mrf.mxu0  ;;  %v1391_v22 = vpop.f32.mrf.mxu1  ;;  %v6582_v38 = vld [vmem:[#allocation7 + $0x3b8] sm:$0xf0]  ;;  %v6436_v10 = vld [vmem:[#allocation7 + $0x288] sm:$0xf] }
 0x215   :  { %v6585_v11 = vor.u32 %v8533_v30, %v6582_v38  ;;  %v8497_v34 = vld [vmem:[#allocation7 + $0x28c] sm:$0xf]  ;;  %v6438_v14 = vld [vmem:[#allocation7 + $0x298] sm:$0xf0]  ;;  %v6437_v7 = vor.u32 %v8499_v51, %v6436_v10  ;;  %v8523_v51 = vld [vmem:[#allocation7 + $0x354] sm:$0xf0] }
 0x216   :  { %v9525_v28 = vsel %vm9518_vm10, %v1499_v61, %v1538_v41  ;;  %v1488_v62 = vpack.c.bf16 %v1458_v29, %v1457_v39  ;;  %v8531_v41 = vld [vmem:[#allocation7 + $0x394] sm:$0xf0]  ;;  %v6441_v53 = vor.u32 %v8497_v34, %v6438_v14  ;;  %v8529_v5 = vld [vmem:[#allocation7 + $0x38c] sm:$0xf]  ;;  %v6566_v19 = vld [vmem:[#allocation7 + $0x398] sm:$0xf0] }
 0x217   :  { %1540 = vst [vmem:[#allocation2] sm:$0xff] %v9525_v28  ;;  %v1623_v44 = vshrl.u32 %v9525_v28, 16  ;;  %v1626_v31 = vshll.u32 %v9525_v28, 16  ;;  %v6565_v3 = vor.u32 %v8531_v41, %v6564_v46  ;;  %v6890_v17 = vrot.slane %v9525_v28, 9  ;;  %2206 = vmatpush.bf16.msrb.mxu3 %v6585_v11  ;;  %2150 = vmatpush.bf16.msra.mxu0 %v6437_v7  ;;  %v8495_v28 = vld [vmem:[#allocation7 + $0x274] sm:$0xf0] }
 0x218   :  { %v1502_v23 = vshrl.u32 %v1488_v62, 16  ;;  %v1505_v45 = vshll.u32 %v1488_v62, 16  ;;  %v6569_v15 = vor.u32 %v8529_v5, %v6566_v19  ;;  %2188 = vmatpush.bf16.msrb.mxu2 %v6441_v53  ;;  %v6548_v62 = vld [vmem:[#allocation7 + $0x368] sm:$0xf]  ;;  %v8521_v34 = vld [vmem:[#allocation7 + $0x34c] sm:$0xf] }
 0x219   :  { %v1625_v36 = vrot.slane %v1623_v44, 4  ;;  %v1628_v25 = vrot.slane %v1626_v31, 5  ;;  %2169 = vmatpush.bf16.msrb.mxu1 %v6565_v3  ;;  %v6421_v31 = vor.u32 %v8495_v28, %v6420_v16  ;;  %v6549_v55 = vor.u32 %v8527_v35, %v6548_v62  ;;  %v6532_v11 = vld [vmem:[#allocation7 + $0x348] sm:$0xf]  ;;  %v8519_v28 = vld [vmem:[#allocation7 + $0x334] sm:$0xf0] }
 0x21a   :  { %v1504_v32 = vrot.slane %v1502_v23, 7  ;;  %v6533_v53 = vor.u32 %v8523_v51, %v6532_v11  ;;  %v6390_v35 = vld [vmem:[#allocation7 + $0x238] sm:$0xf0] }
 0x21b   :  { %v1431_v50 = vpop.f32.mrf.mxu2  ;;  %v1450_v54 = vpop.f32.mrf.mxu3  ;;  %v1629_v2 = vor.u32 %v1628_v25, %v1625_v36  ;;  %2207 = vmatpush.bf16.msrb.mxu3 %v6569_v15  ;;  %v8525_v36 = vld [vmem:[#allocation7 + $0x36c] sm:$0xf]  ;;  %v6550_v25 = vld [vmem:[#allocation7 + $0x378] sm:$0xf0]  ;;  %2151 = vmatpush.bf16.msra.mxu0 %v6421_v31 }
 0x21c   :  { %v1507_v0 = vor.u32 %v1505_v45, %v1504_v32  ;;  %v1509_v47 = vrot.slane %v1504_v32, 4  ;;  %v1459_v40 = vmax.f32 %v1372_v59, %v1431_v50  ;;  %v1460_v1 = vmax.f32 %v1391_v22, %v1450_v54  ;;  %v1374_v4 = vpop.f32.mrf.mxu0  ;;  %v1393_v44 = vpop.f32.mrf.mxu1  ;;  %v6404_v45 = vld [vmem:[#allocation7 + $0x248] sm:$0xf]  ;;  %v8485_v31 = vld [vmem:[#allocation7 + $0x22c] sm:$0xf] }
 0x21d   :  { %v1630_v61 = vrot.slane %v1629_v2, 4  ;;  %2170 = vmatpush.bf16.msrb.mxu1 %v6549_v55 }
 0x21e   :  { %v1508_v9 = vsel %vm9533_vm12, %v1500_v37, %v1507_v0  ;;  %v1543_v43 = vsel %vm9478_vm15, %v1509_v47, %v1542_v18  ;;  %v1489_v33 = vpack.c.bf16 %v1460_v1, %v1459_v40  ;;  %v6422_v18 = vld [vmem:[#allocation7 + $0x278] sm:$0xf0]  ;;  %v6553_v0 = vor.u32 %v8525_v36, %v6550_v25  ;;  %v8489_v40 = vld [vmem:[#allocation7 + $0x24c] sm:$0xf] }
 0x21f   :  { %1541 = vst [vmem:[#allocation2 + $0x8] sm:$0xff] %v1508_v9  ;;  %v1632_v39 = vshll.u32 %v1508_v9, 16  ;;  %v1636_v29 = vshrl.u32 %v1508_v9, 16  ;;  %v2719_v48 = vrot.slane %v1508_v9, 5  ;;  %v6425_v2 = vor.u32 %v8493_v20, %v6422_v18  ;;  %v6406_v1 = vld [vmem:[#allocation7 + $0x258] sm:$0xf0] }
 0x220   :  { %1544 = vst [vmem:[#allocation2 + $0x10] sm:$0x11] %v1543_v43  ;;  %v1511_v58 = vshrl.u32 %v1489_v33, 16  ;;  %v1514_v8 = vshll.u32 %v1489_v33, 16  ;;  %v6405_v47 = vor.u32 %v8491_v24, %v6404_v45  ;;  %v6409_v5 = vor.u32 %v8489_v40, %v6406_v1  ;;  %2208 = vmatpush.bf16.msrb.mxu3 %v6553_v0  ;;  %v6534_v43 = vld [vmem:[#allocation7 + $0x358] sm:$0xf0] }
 0x221   :  { %v1634_v49 = vrot.slane %v1632_v39, 5  ;;  %v1638_v12 = vrot.slane %v1636_v29, 4  ;;  %v9544_v63 = vsel %vm9220_vm5, %v6890_v17, %v2719_v48  ;;  %v2721_v21 = vrot.slane %v2719_v48, 4  ;;  %2189 = vmatpush.bf16.msrb.mxu2 %v6425_v2  ;;  %2171 = vmatpush.bf16.msrb.mxu1 %v6533_v53  ;;  %v8517_v20 = vld [vmem:[#allocation7 + $0x32c] sm:$0xf] }
 0x222   :  { %v9546_v6 = vrot.slane %v1511_v58, 7  ;;  %v2796_v52 = vunpack.c.l.b16 %v9544_v63  ;;  %v2797_v38 = vunpack.c.h.b16 %v9544_v63  ;;  %2152 = vmatpush.bf16.msra.mxu0 %v6405_v47  ;;  %v6537_v48 = vor.u32 %v8521_v34, %v6534_v43  ;;  %v6388_v58 = vld [vmem:[#allocation7 + $0x228] sm:$0xf]  ;;  %v6518_v25 = vld [vmem:[#allocation7 + $0x338] sm:$0xf0] }
 0x223   :  { %v1433_v37 = vpop.f32.mrf.mxu2  ;;  %v1452_v23 = vpop.f32.mrf.mxu3  ;;  %v9550_v22 = vsel %vm9110_vm2, %v1630_v61, %v1634_v49  ;;  %v1639_v26 = vor.u32 %v1638_v12, %v1634_v49  ;;  %v1549_v61 = vld [vmem:[#allocation2 + $0x28] sm:$0x11]  ;;  %v6516_v12 = vld [vmem:[#allocation7 + $0x328] sm:$0xf]  ;;  %v6393_v36 = vor.u32 %v8485_v31, %v6390_v35  ;;  %v6521_v45 = vor.u32 %v8517_v20, %v6518_v25  ;;  %v8481_v0 = vld [vmem:[#allocation7 + $0x20c] sm:$0xf] }
 0x224   :  { %v1516_v57 = vor.u32 %v1514_v8, %v9546_v6  ;;  %v1461_v30 = vmax.f32 %v1374_v4, %v1433_v37  ;;  %v1462_v32 = vmax.f32 %v1393_v44, %v1452_v23  ;;  %v1517_v10 = vrot.slane %v9546_v6, 4  ;;  %v8487_v8 = vld [vmem:[#allocation7 + $0x234] sm:$0xf0]  ;;  %2209 = vmatpush.bf16.msrb.mxu3 %v6537_v48  ;;  %v6500_v2 = vld [vmem:[#allocation7 + $0x308] sm:$0xf] }
 0x225   :  { %v1640_v50 = vrot.slane %v1639_v26, 4  ;;  %v1735_v54 = vunpack.c.l.b16 %v9550_v22  ;;  %v1736_v39 = vunpack.c.h.b16 %v9550_v22  ;;  %v6389_v49 = vor.u32 %v8487_v8, %v6388_v58  ;;  %2190 = vmatpush.bf16.msrb.mxu2 %v6409_v5  ;;  %v8483_v24 = vld [vmem:[#allocation7 + $0x214] sm:$0xf0]  ;;  %v6374_v47 = vld [vmem:[#allocation7 + $0x218] sm:$0xf0] }
 0x226   :  { %v9559_v46 = vsel %vm9518_vm10, %v1516_v57, %v1545_v56  ;;  %v1490_v41 = vpack.c.bf16 %v1462_v32, %v1461_v30  ;;  %v6517_v44 = vor.u32 %v8519_v28, %v6516_v12  ;;  %v6372_v57 = vld [vmem:[#allocation7 + $0x208] sm:$0xf]  ;;  %v8513_v34 = vld [vmem:[#allocation7 + $0x30c] sm:$0xf]  ;;  %v8478_v43 = vld [vmem:[#allocation7 + $0x1ec] sm:$0xf0] }
 0x227   :  { %1547 = vst [vmem:[#allocation2 + $0x18] sm:$0xff] %v9559_v46  ;;  %v1554_v14 = vld [vmem:[#allocation2 + $0x10] sm:$0x11]  ;;  %v1647_v7 = vshrl.u32 %v9559_v46, 16  ;;  %v1650_v3 = vshll.u32 %v9559_v46, 16  ;;  %2153 = vmatpush.bf16.msra.mxu0 %v6389_v49  ;;  %v6373_v51 = vor.u32 %v8483_v24, %v6372_v57 }
 0x228   :  { %v1519_v19 = vshrl.u32 %v1490_v41, 16  ;;  %v1522_v17 = vshll.u32 %v1490_v41, 16  ;;  %v1642_v9 = vshll.u32 %v1554_v14, 16  ;;  %v2722_v33 = vrot.slane %v1554_v14, 5  ;;  %2172 = vmatpush.bf16.msrb.mxu1 %v6517_v44  ;;  %v8515_v41 = vld [vmem:[#allocation7 + $0x314] sm:$0xf0]  ;;  %2210 = vmatpush.bf16.msrb.mxu3 %v6521_v45 }
 0x229   :  { %v1649_v29 = vrot.slane %v1647_v7, 4  ;;  %v1652_v15 = vrot.slane %v1650_v3, 5  ;;  %2191 = vmatpush.bf16.msrb.mxu2 %v6393_v36  ;;  %v6501_v14 = vor.u32 %v8515_v41, %v6500_v2  ;;  %v6502_v7 = vld [vmem:[#allocation7 + $0x318] sm:$0xf0]  ;;  %v6748_v3 = vld [vmem:[#allocation7 + $0xe0] sm:$0xf] }
 0x22a   :  { %v1521_v16 = vrot.slane %v1519_v19, 7  ;;  %v1644_v56 = vrot.slane %v1642_v9, 5  ;;  %v2723_v62 = vsel %vm9220_vm5, %v2721_v21, %v2722_v33  ;;  %v6505_v5 = vor.u32 %v8513_v34, %v6502_v7  ;;  %v8446_v19 = vld [vmem:[#allocation7 + $0xec] sm:$0xf0]  ;;  %v8444_v33 = vld [vmem:[#allocation7 + $0xe4] sm:$0xf] }
 0x22b   :  { %v1653_v4 = vor.u32 %v1652_v15, %v1649_v29  ;;  %v2798_v37 = vunpack.c.l.b16 %v2723_v62  ;;  %v2799_v23 = vunpack.c.h.b16 %v2723_v62  ;;  %2154 = vmatpush.bf16.msra.mxu0 %v6373_v51  ;;  %v6749_v9 = vor.u32 %v8446_v19, %v6748_v3  ;;  %v6878_v29 = vld [vmem:[#allocation7 + $0x1f0] sm:$0xf0]  ;;  %v6732_v15 = vld [vmem:[#allocation7 + $0xc0] sm:$0xf]  ;;  %v8442_v8 = vld [vmem:[#allocation7 + $0xcc] sm:$0xf0] }
 0x22c   :  { %v1524_v26 = vor.u32 %v1522_v17, %v1521_v16  ;;  %v1526_v55 = vrot.slane %v1521_v16, 4  ;;  %v1645_v18 = vsel %vm9110_vm2, %v1640_v50, %v1644_v56  ;;  %v6876_v17 = vld [vmem:[#allocation7 + $0x1e0] sm:$0xf]  ;;  %2173 = vmatpush.bf16.msrb.mxu1 %v6501_v14  ;;  %2211 = vmatpush.bf16.msrb.mxu3 %v6505_v5  ;;  %v8474_v56 = vld [vmem:[#allocation7 + $0x1cc] sm:$0xf0]  ;;  %v6733_v12 = vor.u32 %v8442_v8, %v6732_v15 }
 0x22d   :  { %v1737_v30 = vunpack.c.l.b16 %v1645_v18  ;;  %v1738_v21 = vunpack.c.h.b16 %v1645_v18  ;;  %v9569_v32 = vrot.slane %v1653_v4, 4  ;;  %v9581_v40 = vpack.c.b16 %v2798_v37, %v2796_v52  ;;  %v6860_v16 = vld [vmem:[#allocation7 + $0x1c0] sm:$0xf]  ;;  %v8440_v62 = vld [vmem:[#allocation7 + $0xc4] sm:$0xf] }
 0x22e   :  { %v9575_v11 = vsel %vm9533_vm12, %v1517_v10, %v1524_v26  ;;  %v1550_v50 = vsel %vm9478_vm15, %v1526_v55, %v1549_v61  ;;  %v6377_v52 = vor.u32 %v8481_v0, %v6374_v47  ;;  %v9594_v22 = vpack.c.b16 %v2799_v23, %v2797_v38  ;;  %v6750_v61 = vld [vmem:[#allocation7 + $0xf0] sm:$0xf0]  ;;  %v8472_v35 = vld [vmem:[#allocation7 + $0x1c4] sm:$0xf]  ;;  %v6716_v37 = vld [vmem:[#allocation7 + $0xa0] sm:$0xf] }
 0x22f   :  { %1548 = vst [vmem:[#allocation2 + $0x20] sm:$0xff] %v9575_v11  ;;  %v9586_v6 = vpack.c.b16 %v1737_v30, %v1735_v54  ;;  %v9588_v42 = vpack.c.b16 %v1738_v21, %v1736_v39  ;;  %v1656_v10 = vshll.u32 %v9575_v11, 16  ;;  %v1660_v1 = vshrl.u32 %v9575_v11, 16  ;;  %v8476_v39 = vld [vmem:[#allocation7 + $0x1e4] sm:$0xf] }
 0x230   :  { %1551 = vst [vmem:[#allocation2 + $0x28] sm:$0x11] %v1550_v50  ;;  %2192 = vmatpush.bf16.msrb.mxu2 %v6377_v52  ;;  %v6877_v38 = vor.u32 %v8478_v43, %v6876_v17  ;;  %v6753_v48 = vor.u32 %v8444_v33, %v6750_v61  ;;  %v6881_v58 = vor.u32 %v8476_v39, %v6878_v29  ;;  %v6734_v4 = vld [vmem:[#allocation7 + $0xd0] sm:$0xf0]  ;;  %v6891_v44 = vrot.slane %v9559_v46, 9 }
 0x231   :  { %2079 = vmatmul.bf16.vlgmr.msrb.gmra.mxu0 %v9586_v6  ;;  %2098 = vmatmul.bf16.vlgmr.msra.gmra.mxu1 %v9588_v42  ;;  %v1658_v54 = vrot.slane %v1656_v10, 5  ;;  %v1662_v53 = vrot.slane %v1660_v1, 4  ;;  %v6861_v28 = vor.u32 %v8474_v56, %v6860_v16  ;;  %v6737_v31 = vor.u32 %v8440_v62, %v6734_v4  ;;  %v6862_v20 = vld [vmem:[#allocation7 + $0x1d0] sm:$0xf0]  ;;  %v8438_v55 = vld [vmem:[#allocation7 + $0xac] sm:$0xf0] }
 0x232   :  { %2117 = vmatmul.bf16.vlgmr.msra.gmra.mxu2 %v9586_v6  ;;  %2136 = vmatmul.bf16.vlgmr.msra.gmra.mxu3 %v9588_v42  ;;  %v6865_v26 = vor.u32 %v8472_v35, %v6862_v20  ;;  %v6844_v18 = vld [vmem:[#allocation7 + $0x1a0] sm:$0xf]  ;;  %v6717_v25 = vor.u32 %v8438_v55, %v6716_v37  ;;  %v8470_v57 = vld [vmem:[#allocation7 + $0x1ac] sm:$0xf0]  ;;  %v8436_v30 = vld [vmem:[#allocation7 + $0xa4] sm:$0xf] }
 0x233   :  { %v1663_v63 = vor.u32 %v1662_v53, %v1658_v54  ;;  %2563 = vmatpush.bf16.msrb.mxu0 %v6749_v9  ;;  %2582 = vmatpush.bf16.msra.mxu1 %v6877_v38  ;;  %v2726_v21 = vrot.slane %v9575_v11, 5  ;;  %v1659_v46 = vsel %vm9110_vm2, %v9569_v32, %v1658_v54  ;;  %v6845_v45 = vor.u32 %v8470_v57, %v6844_v18  ;;  %v6718_v24 = vld [vmem:[#allocation7 + $0xb0] sm:$0xf0]  ;;  %v8468_v2 = vld [vmem:[#allocation7 + $0x1a4] sm:$0xf] }
 0x234   :  { %2601 = vmatpush.bf16.msra.mxu2 %v6753_v48  ;;  %2620 = vmatpush.bf16.msra.mxu3 %v6881_v58  ;;  %v6846_v50 = vld [vmem:[#allocation7 + $0x1b0] sm:$0xf0]  ;;  %v6721_v41 = vor.u32 %v8436_v30, %v6718_v24  ;;  %v6700_v47 = vld [vmem:[#allocation7 + $0x80] sm:$0xf]  ;;  %v8434_v10 = vld [vmem:[#allocation7 + $0x8c] sm:$0xf0]  ;;  %v1739_v54 = vunpack.c.l.b16 %v1659_v46  ;;  %v1740_v5 = vunpack.c.h.b16 %v1659_v46 }
 0x235   :  { %v1664_v49 = vrot.slane %v1663_v63, 4  ;;  %v6849_v0 = vor.u32 %v8468_v2, %v6846_v50  ;;  %v9612_v1 = vsel %vm9220_vm5, %v6891_v44, %v2726_v21  ;;  %v6828_v34 = vld [vmem:[#allocation7 + $0x180] sm:$0xf]  ;;  %v6701_v14 = vor.u32 %v8434_v10, %v6700_v47  ;;  %v8466_v52 = vld [vmem:[#allocation7 + $0x18c] sm:$0xf0] }
 0x236   :  { %v8432_v7 = vld [vmem:[#allocation7 + $0x84] sm:$0xf]  ;;  %v6702_v3 = vld [vmem:[#allocation7 + $0x90] sm:$0xf0]  ;;  %v6829_v61 = vor.u32 %v8466_v52, %v6828_v34  ;;  %v6684_v39 = vld [vmem:[#allocation7 + $0x60] sm:$0xf] }
 0x237   :  { %v9601_v23 = vld [vmem:[#allocation2 + $0x28] sm:$0x11]  ;;  %2564 = vmatpush.bf16.msrb.mxu0 %v6733_v12  ;;  %2583 = vmatpush.bf16.msra.mxu1 %v6861_v28  ;;  %v8464_v17 = vld [vmem:[#allocation7 + $0x184] sm:$0xf]  ;;  %v6830_v9 = vld [vmem:[#allocation7 + $0x190] sm:$0xf0]  ;;  %v6705_v63 = vor.u32 %v8432_v7, %v6702_v3 }
 0x238   :  { %v1666_v36 = vshll.u32 %v9601_v23, 16  ;;  %2602 = vmatpush.bf16.msra.mxu2 %v6737_v31  ;;  %2621 = vmatpush.bf16.msra.mxu3 %v6865_v26  ;;  %v6833_v38 = vor.u32 %v8464_v17, %v6830_v9  ;;  %v8430_v29 = vld [vmem:[#allocation7 + $0x6c] sm:$0xf0]  ;;  %v6812_v15 = vld [vmem:[#allocation7 + $0x160] sm:$0xf]  ;;  %v2728_v34 = vrot.slane %v2726_v21, 4  ;;  %v2800_v21 = vunpack.c.l.b16 %v9612_v1 }
 0x239   :  { %v6685_v48 = vor.u32 %v8430_v29, %v6684_v39  ;;  %v8462_v58 = vld [vmem:[#allocation7 + $0x16c] sm:$0xf0]  ;;  %v8428_v8 = vld [vmem:[#allocation7 + $0x64] sm:$0xf]  ;;  %v6686_v16 = vld [vmem:[#allocation7 + $0x70] sm:$0xf0] }
 0x23a   :  { %v1668_v51 = vrot.slane %v1666_v36, 5  ;;  %v8460_v56 = vld [vmem:[#allocation7 + $0x164] sm:$0xf]  ;;  %v6668_v12 = vld [vmem:[#allocation7 + $0x40] sm:$0xf]  ;;  %v6813_v28 = vor.u32 %v8462_v58, %v6812_v15  ;;  %v6689_v62 = vor.u32 %v8428_v8, %v6686_v16 }
 0x23b   :  { %2565 = vmatpush.bf16.msrb.mxu0 %v6717_v25  ;;  %2584 = vmatpush.bf16.msra.mxu1 %v6845_v45  ;;  %v8426_v4 = vld [vmem:[#allocation7 + $0x4c] sm:$0xf0]  ;;  %v6796_v44 = vld [vmem:[#allocation7 + $0x140] sm:$0xf]  ;;  %v8424_v37 = vld [vmem:[#allocation7 + $0x44] sm:$0xf] }
 0x23c   :  { %v1669_v32 = vsel %vm9110_vm2, %v1664_v49, %v1668_v51  ;;  %2603 = vmatpush.bf16.msra.mxu2 %v6721_v41  ;;  %2622 = vmatpush.bf16.msra.mxu3 %v6849_v0  ;;  %v6814_v49 = vld [vmem:[#allocation7 + $0x170] sm:$0xf0]  ;;  %v8458_v31 = vld [vmem:[#allocation7 + $0x14c] sm:$0xf0]  ;;  %v6669_v20 = vor.u32 %v8426_v4, %v6668_v12  ;;  %v8456_v55 = vld [vmem:[#allocation7 + $0x144] sm:$0xf] }
 0x23d   :  { %v1741_v53 = vunpack.c.l.b16 %v1669_v32  ;;  %v1742_v19 = vunpack.c.h.b16 %v1669_v32  ;;  %v6817_v35 = vor.u32 %v8460_v56, %v6814_v49  ;;  %v6670_v26 = vld [vmem:[#allocation7 + $0x50] sm:$0xf0]  ;;  %v6652_v36 = vld [vmem:[#allocation7 + $0x20] sm:$0xf]  ;;  %v8422_v25 = vld [vmem:[#allocation7 + $0x2c] sm:$0xf0]  ;;  %v6797_v57 = vor.u32 %v8458_v31, %v6796_v44 }
 0x23e   :  { %v6798_v18 = vld [vmem:[#allocation7 + $0x150] sm:$0xf0]  ;;  %v6673_v30 = vor.u32 %v8424_v37, %v6670_v26  ;;  %v6780_v46 = vld [vmem:[#allocation7 + $0x120] sm:$0xf]  ;;  %v8454_v45 = vld [vmem:[#allocation7 + $0x12c] sm:$0xf0]  ;;  %v6653_v2 = vor.u32 %v8422_v25, %v6652_v36 }
 0x23f   :  { %v9616_v43 = vpack.c.b16 %v1741_v53, %v1739_v54  ;;  %v9618_v33 = vpack.c.b16 %v1742_v19, %v1740_v5  ;;  %2566 = vmatpush.bf16.msrb.mxu0 %v6701_v14  ;;  %2585 = vmatpush.bf16.msra.mxu1 %v6829_v61  ;;  %v6801_v24 = vor.u32 %v8456_v55, %v6798_v18  ;;  %v8420_v50 = vld [vmem:[#allocation7 + $0x24] sm:$0xf]  ;;  %v6654_v51 = vld [vmem:[#allocation7 + $0x30] sm:$0xf0]  ;;  %v6636_v47 = vld [vmem:[#allocation7] sm:$0xf]  ;;  %v2801_v61 = vunpack.c.h.b16 %v9612_v1 }
 0x240   :  { %2604 = vmatpush.bf16.msra.mxu2 %v6705_v63  ;;  %2623 = vmatpush.bf16.msra.mxu3 %v6833_v38  ;;  %v8452_v41 = vld [vmem:[#allocation7 + $0x124] sm:$0xf]  ;;  %v6782_v0 = vld [vmem:[#allocation7 + $0x130] sm:$0xf0]  ;;  %v8418_v10 = vld [vmem:[#allocation7 + $0xc] sm:$0xf0]  ;;  %v6781_v14 = vor.u32 %v8454_v45, %v6780_v46  ;;  %v6657_v52 = vor.u32 %v8420_v50, %v6654_v51 }
 0x241   :  { %2084 = vmatmul.bf16.gmra.mxu0 %v9616_v43  ;;  %2103 = vmatmul.bf16.gmra.mxu1 %v9618_v33  ;;  %v2729_v32 = vrot.slane %v9601_v23, 5  ;;  %v6764_v7 = vld [vmem:[#allocation7 + $0x100] sm:$0xf]  ;;  %v8450_v3 = vld [vmem:[#allocation7 + $0x10c] sm:$0xf0]  ;;  %v6785_v54 = vor.u32 %v8452_v41, %v6782_v0  ;;  %v6637_v53 = vor.u32 %v8418_v10, %v6636_v47 }
 0x242   :  { %2122 = vmatmul.bf16.gmra.mxu2 %v9616_v43  ;;  %2141 = vmatmul.bf16.gmra.mxu3 %v9618_v33  ;;  %v8416_v5 = vld [vmem:[#allocation7 + $0x4] sm:$0xf]  ;;  %v6638_v19 = vld [vmem:[#allocation7 + $0x10] sm:$0xf0]  ;;  %v6765_v38 = vor.u32 %v8450_v3, %v6764_v7  ;;  %v6756_v1 = vld [vmem:[#allocation7 + $0xe8] sm:$0xf] }
 0x243   :  { %2567 = vmatpush.bf16.msrb.mxu0 %v6685_v48  ;;  %2586 = vmatpush.bf16.msra.mxu1 %v6813_v28  ;;  %v2730_v17 = vsel %vm9220_vm5, %v2728_v34, %v2729_v32  ;;  %v8448_v9 = vld [vmem:[#allocation7 + $0x104] sm:$0xf]  ;;  %v6766_v11 = vld [vmem:[#allocation7 + $0x110] sm:$0xf0]  ;;  %v6641_v39 = vor.u32 %v8416_v5, %v6638_v19  ;;  %v8447_v58 = vld [vmem:[#allocation7 + $0xf4] sm:$0xf0] }
 0x244   :  { %2605 = vmatpush.bf16.msra.mxu2 %v6689_v62  ;;  %2624 = vmatpush.bf16.msra.mxu3 %v6817_v35  ;;  %v2802_v23 = vunpack.c.l.b16 %v2730_v17  ;;  %v2803_v63 = vunpack.c.h.b16 %v2730_v17  ;;  %v6769_v48 = vor.u32 %v8448_v9, %v6766_v11  ;;  %v6884_v8 = vld [vmem:[#allocation7 + $0x1e8] sm:$0xf]  ;;  %v6757_v16 = vor.u32 %v8447_v58, %v6756_v1  ;;  %v8479_v56 = vld [vmem:[#allocation7 + $0x1f4] sm:$0xf0]  ;;  %v8445_v49 = vld [vmem:[#allocation7 + $0xec] sm:$0xf] }
 0x245   :  { %v6758_v12 = vld [vmem:[#allocation7 + $0xf8] sm:$0xf0]  ;;  %v6885_v28 = vor.u32 %v8479_v56, %v6884_v8  ;;  %v8477_v4 = vld [vmem:[#allocation7 + $0x1ec] sm:$0xf]  ;;  %v6740_v31 = vld [vmem:[#allocation7 + $0xc8] sm:$0xf] }
 0x246   :  { %v9631_v29 = vpack.c.b16 %v2802_v23, %v2800_v21  ;;  %v9633_v15 = vpack.c.b16 %v2803_v63, %v2801_v61  ;;  %v6761_v62 = vor.u32 %v8445_v49, %v6758_v12  ;;  %v6886_v44 = vld [vmem:[#allocation7 + $0x1f8] sm:$0xf0]  ;;  %v8441_v55 = vld [vmem:[#allocation7 + $0xcc] sm:$0xf]  ;;  %v8439_v46 = vld [vmem:[#allocation7 + $0xb4] sm:$0xf0] }
 0x247   :  { %2568 = vmatpush.bf16.msrb.mxu0 %v6669_v20  ;;  %2587 = vmatpush.bf16.msra.mxu1 %v6797_v57  ;;  %v6889_v35 = vor.u32 %v8477_v4, %v6886_v44  ;;  %v6868_v20 = vld [vmem:[#allocation7 + $0x1c8] sm:$0xf]  ;;  %v6742_v18 = vld [vmem:[#allocation7 + $0xd8] sm:$0xf0]  ;;  %v8473_v36 = vld [vmem:[#allocation7 + $0x1cc] sm:$0xf] }
 0x248   :  { %2606 = vmatpush.bf16.msra.mxu2 %v6673_v30  ;;  %2625 = vmatpush.bf16.msra.mxu3 %v6801_v24  ;;  %v6745_v25 = vor.u32 %v8441_v55, %v6742_v18  ;;  %v6870_v57 = vld [vmem:[#allocation7 + $0x1d8] sm:$0xf0]  ;;  %v6724_v30 = vld [vmem:[#allocation7 + $0xa8] sm:$0xf]  ;;  %v8437_v50 = vld [vmem:[#allocation7 + $0xac] sm:$0xf] }
 0x249   :  { %v6873_v45 = vor.u32 %v8473_v36, %v6870_v57  ;;  %v6852_v24 = vld [vmem:[#allocation7 + $0x1a8] sm:$0xf]  ;;  %v6725_v51 = vor.u32 %v8439_v46, %v6724_v30  ;;  %v6726_v41 = vld [vmem:[#allocation7 + $0xb8] sm:$0xf0]  ;;  %v8469_v0 = vld [vmem:[#allocation7 + $0x1ac] sm:$0xf] }
 0x24a   :  { %v6854_v47 = vld [vmem:[#allocation7 + $0x1b8] sm:$0xf0]  ;;  %v6729_v34 = vor.u32 %v8437_v50, %v6726_v41  ;;  %v6836_v7 = vld [vmem:[#allocation7 + $0x188] sm:$0xf]  ;;  %v8467_v3 = vld [vmem:[#allocation7 + $0x194] sm:$0xf0] }
 0x24b   :  { %2569 = vmatpush.bf16.msrb.mxu0 %v6653_v2  ;;  %2588 = vmatpush.bf16.msra.mxu1 %v6781_v14  ;;  %v8471_v2 = vld [vmem:[#allocation7 + $0x1b4] sm:$0xf0]  ;;  %v6857_v32 = vor.u32 %v8469_v0, %v6854_v47  ;;  %v6708_v14 = vld [vmem:[#allocation7 + $0x88] sm:$0xf]  ;;  %v8465_v5 = vld [vmem:[#allocation7 + $0x18c] sm:$0xf]  ;;  %v6837_v9 = vor.u32 %v8467_v3, %v6836_v7 }
 0x24c   :  { %2607 = vmatpush.bf16.msra.mxu2 %v6657_v52  ;;  %2626 = vmatpush.bf16.msra.mxu3 %v6785_v54  ;;  %v6853_v10 = vor.u32 %v8471_v2, %v6852_v24  ;;  %v8435_v52 = vld [vmem:[#allocation7 + $0x94] sm:$0xf0]  ;;  %v8433_v54 = vld [vmem:[#allocation7 + $0x8c] sm:$0xf]  ;;  %v6838_v19 = vld [vmem:[#allocation7 + $0x198] sm:$0xf0] }
 0x24d   :  { %v6709_v17 = vor.u32 %v8435_v52, %v6708_v14  ;;  %v6841_v21 = vor.u32 %v8465_v5, %v6838_v19  ;;  %v6692_v23 = vld [vmem:[#allocation7 + $0x68] sm:$0xf]  ;;  %v8431_v61 = vld [vmem:[#allocation7 + $0x74] sm:$0xf0]  ;;  %v6694_v1 = vld [vmem:[#allocation7 + $0x78] sm:$0xf0] }
 0x24e   :  { %v6820_v63 = vld [vmem:[#allocation7 + $0x168] sm:$0xf]  ;;  %v6822_v56 = vld [vmem:[#allocation7 + $0x178] sm:$0xf0]  ;;  %v8457_v44 = vld [vmem:[#allocation7 + $0x14c] sm:$0xf] }
 0x24f   :  { %2570 = vmatpush.bf16.msrb.mxu0 %v6637_v53  ;;  %2589 = vmatpush.bf16.msra.mxu1 %v6765_v38  ;;  %v6710_v53 = vld [vmem:[#allocation7 + $0x98] sm:$0xf0]  ;;  %v6693_v38 = vor.u32 %v8431_v61, %v6692_v23  ;;  %v6676_v49 = vld [vmem:[#allocation7 + $0x48] sm:$0xf]  ;;  %v8455_v18 = vld [vmem:[#allocation7 + $0x134] sm:$0xf0] }
 0x250   :  { %2608 = vmatpush.bf16.msra.mxu2 %v6641_v39  ;;  %2627 = vmatpush.bf16.msra.mxu3 %v6769_v48  ;;  %v6713_v11 = vor.u32 %v8433_v54, %v6710_v53  ;;  %v8463_v39 = vld [vmem:[#allocation7 + $0x174] sm:$0xf0]  ;;  %v8429_v48 = vld [vmem:[#allocation7 + $0x6c] sm:$0xf]  ;;  %v6678_v4 = vld [vmem:[#allocation7 + $0x58] sm:$0xf0] }
 0x251   :  { %2155 = vmatmul.bf16.vlgmr.msra.gmra.mxu0 %v9586_v6  ;;  %2174 = vmatmul.bf16.vlgmr.msrb.gmra.mxu1 %v9588_v42  ;;  %v6821_v58 = vor.u32 %v8463_v39, %v6820_v63  ;;  %v6697_v8 = vor.u32 %v8429_v48, %v6694_v1  ;;  %v6788_v55 = vld [vmem:[#allocation7 + $0x128] sm:$0xf]  ;;  %v8421_v36 = vld [vmem:[#allocation7 + $0x2c] sm:$0xf]  ;;  %v6790_v30 = vld [vmem:[#allocation7 + $0x138] sm:$0xf0] }
 0x252   :  { %2193 = vmatmul.bf16.vlgmr.msrb.gmra.mxu2 %v9586_v6  ;;  %2212 = vmatmul.bf16.vlgmr.msrb.gmra.mxu3 %v9588_v42  ;;  %v8443_v6 = vld [vmem:[#allocation7 + $0xd4] sm:$0xf0]  ;;  %v8453_v57 = vld [vmem:[#allocation7 + $0x12c] sm:$0xf]  ;;  %v6622_v24 = vld [vmem:[#allocation2 + $0x8] sm:$0xf0]  ;;  %v6789_v50 = vor.u32 %v8455_v18, %v6788_v55 }
 0x253   :  { %2639 = vmatpush.bf16.msra.mxu0 %v6757_v16  ;;  %v8475_v42 = vld [vmem:[#allocation7 + $0x1d4] sm:$0xf0]  ;;  %2658 = vmatpush.bf16.msrb.mxu1 %v6885_v28  ;;  %v6741_v37 = vor.u32 %v8443_v6, %v6740_v31  ;;  %v8461_v16 = vld [vmem:[#allocation7 + $0x16c] sm:$0xf]  ;;  %v6804_v28 = vld [vmem:[#allocation7 + $0x148] sm:$0xf]  ;;  %v6793_v47 = vor.u32 %v8453_v57, %v6790_v30 }
 0x254   :  { %2677 = vmatpush.bf16.msrb.mxu2 %v6761_v62  ;;  %v6869_v26 = vor.u32 %v8475_v42, %v6868_v20  ;;  %2696 = vmatpush.bf16.msrb.mxu3 %v6889_v35  ;;  %v6825_v12 = vor.u32 %v8461_v16, %v6822_v56  ;;  %v8425_v62 = vld [vmem:[#allocation7 + $0x4c] sm:$0xf]  ;;  %v6806_v6 = vld [vmem:[#allocation7 + $0x158] sm:$0xf0]  ;;  %v6660_v20 = vld [vmem:[#allocation7 + $0x28] sm:$0xf] }
 0x255   :  { %v8423_v42 = vld [vmem:[#allocation7 + $0x34] sm:$0xf0]  ;;  %v6646_v14 = vld [vmem:[#allocation7 + $0x18] sm:$0xf0]  ;;  %v8449_v52 = vld [vmem:[#allocation7 + $0x10c] sm:$0xf] }
 0x256   :  { %v8413_v46 = vld [vmem:[#allocation2 + $0x4] sm:$0xf0]  ;;  %v6661_v2 = vor.u32 %v8423_v42, %v6660_v20  ;;  %v6774_v7 = vld [vmem:[#allocation7 + $0x118] sm:$0xf0]  ;;  %v8412_v54 = vld [vmem:[#allocation2 + $0x4] sm:$0xf] }
 0x257   :  { %2640 = vmatpush.bf16.msra.mxu0 %v6741_v37  ;;  %2659 = vmatpush.bf16.msrb.mxu1 %v6869_v26  ;;  %v6681_v37 = vor.u32 %v8425_v62, %v6678_v4  ;;  %v6809_v26 = vor.u32 %v8457_v44, %v6806_v6  ;;  %v8419_v41 = vld [vmem:[#allocation7 + $0x14] sm:$0xf0]  ;;  %v9645_v53 = vor.u32 %v8412_v54, %v6622_v24  ;;  %v7134_v23 = vld [vmem:[#allocation7 + $0x5e0] sm:$0xf]  ;;  %v8606_v63 = vld [vmem:[#allocation7 + $0x5ec] sm:$0xf0] }
 0x258   :  { %2678 = vmatpush.bf16.msrb.mxu2 %v6745_v25  ;;  %2697 = vmatpush.bf16.msrb.mxu3 %v6873_v45  ;;  %v6662_v25 = vld [vmem:[#allocation7 + $0x38] sm:$0xf0]  ;;  %v6620_v45 = vld [vmem:[#allocation2] sm:$0xf]  ;;  %v7008_v39 = vld [vmem:[#allocation7 + $0x4f0] sm:$0xf0]  ;;  %v7135_v48 = vor.u32 %v8606_v63, %v7134_v23 }
 0x259   :  { %v6665_v0 = vor.u32 %v8421_v36, %v6662_v25  ;;  %v9643_v3 = vor.u32 %v8413_v46, %v6620_v45  ;;  %v6990_v16 = vld [vmem:[#allocation7 + $0x4c0] sm:$0xf]  ;;  %v8568_v62 = vld [vmem:[#allocation7 + $0x4c4] sm:$0xf]  ;;  %v6992_v4 = vld [vmem:[#allocation7 + $0x4d0] sm:$0xf0] }
 0x25a   :  { %v8600_v44 = vld [vmem:[#allocation7 + $0x5c4] sm:$0xf]  ;;  %v6974_v6 = vld [vmem:[#allocation7 + $0x4a0] sm:$0xf]  ;;  %v8566_v20 = vld [vmem:[#allocation7 + $0x4ac] sm:$0xf0] }
 0x25b   :  { %2641 = vmatpush.bf16.msra.mxu0 %v6725_v51  ;;  %2660 = vmatpush.bf16.msrb.mxu1 %v6853_v10  ;;  %v6644_v51 = vld [vmem:[#allocation7 + $0x8] sm:$0xf]  ;;  %v8564_v55 = vld [vmem:[#allocation7 + $0x4a4] sm:$0xf]  ;;  %v6975_v18 = vor.u32 %v8566_v20, %v6974_v6  ;;  %v6976_v36 = vld [vmem:[#allocation7 + $0x4b0] sm:$0xf0] }
 0x25c   :  { %2679 = vmatpush.bf16.msrb.mxu2 %v6729_v34  ;;  %2698 = vmatpush.bf16.msrb.mxu3 %v6857_v32  ;;  %v6772_v10 = vld [vmem:[#allocation7 + $0x108] sm:$0xf]  ;;  %v8451_v34 = vld [vmem:[#allocation7 + $0x114] sm:$0xf0]  ;;  %v8417_v32 = vld [vmem:[#allocation7 + $0xc] sm:$0xf]  ;;  %v6645_v5 = vor.u32 %v8419_v41, %v6644_v51  ;;  %v6979_v45 = vor.u32 %v8564_v55, %v6976_v36 }
 0x25d   :  { %v6773_v19 = vor.u32 %v8451_v34, %v6772_v10  ;;  %v8596_v25 = vld [vmem:[#allocation7 + $0x5a4] sm:$0xf]  ;;  %v7104_v57 = vld [vmem:[#allocation7 + $0x5b0] sm:$0xf0]  ;;  %v8415_v30 = vld [vmem:[#allocation2 + $0x1c] sm:$0xf0] }
 0x25e   :  { %v6630_v24 = vld [vmem:[#allocation2 + $0x20] sm:$0xf0]  ;;  %v8562_v51 = vld [vmem:[#allocation7 + $0x48c] sm:$0xf0]  ;;  %v7086_v41 = vld [vmem:[#allocation7 + $0x580] sm:$0xf] }
 0x25f   :  { %2642 = vmatpush.bf16.msra.mxu0 %v6709_v17  ;;  %2661 = vmatpush.bf16.msrb.mxu1 %v6837_v9  ;;  %v6649_v17 = vor.u32 %v8417_v32, %v6646_v14  ;;  %v6777_v9 = vor.u32 %v8449_v52, %v6774_v7  ;;  %v6960_v10 = vld [vmem:[#allocation7 + $0x490] sm:$0xf0]  ;;  %v8592_v34 = vld [vmem:[#allocation7 + $0x584] sm:$0xf]  ;;  %v6628_v14 = vld [vmem:[#allocation2 + $0x18] sm:$0xf] }
 0x260   :  { %2680 = vmatpush.bf16.msrb.mxu2 %v6713_v11  ;;  %2699 = vmatpush.bf16.msrb.mxu3 %v6841_v21  ;;  %v7006_v11 = vld [vmem:[#allocation7 + $0x4e0] sm:$0xf]  ;;  %v8574_v21 = vld [vmem:[#allocation7 + $0x4ec] sm:$0xf0]  ;;  %v7088_v32 = vld [vmem:[#allocation7 + $0x590] sm:$0xf0]  ;;  %v9651_v7 = vor.u32 %v8415_v30, %v6628_v14 }
 0x261   :  { %2160 = vmatmul.bf16.gmra.mxu0 %v9616_v43  ;;  %2179 = vmatmul.bf16.gmra.mxu1 %v9618_v33  ;;  %v7007_v61 = vor.u32 %v8574_v21, %v7006_v11  ;;  %v8414_v52 = vld [vmem:[#allocation2 + $0x1c] sm:$0xf]  ;;  %v6942_v11 = vld [vmem:[#allocation7 + $0x460] sm:$0xf]  ;;  %v8558_v21 = vld [vmem:[#allocation7 + $0x46c] sm:$0xf0] }
 0x262   :  { %2198 = vmatmul.bf16.gmra.mxu2 %v9616_v43  ;;  %2217 = vmatmul.bf16.gmra.mxu3 %v9618_v33  ;;  %v8427_v43 = vld [vmem:[#allocation7 + $0x54] sm:$0xf0]  ;;  %v9653_v54 = vor.u32 %v8414_v52, %v6630_v24  ;;  %v7070_v23 = vld [vmem:[#allocation7 + $0x560] sm:$0xf]  ;;  %v8590_v63 = vld [vmem:[#allocation7 + $0x56c] sm:$0xf0] }
 0x263   :  { %v8459_v33 = vld [vmem:[#allocation7 + $0x154] sm:$0xf0]  ;;  %2643 = vmatpush.bf16.msra.mxu0 %v6693_v38  ;;  %2662 = vmatpush.bf16.msrb.mxu1 %v6821_v58  ;;  %v6677_v31 = vor.u32 %v8427_v43, %v6676_v49  ;;  %v8572_v38 = vld [vmem:[#allocation7 + $0x4e4] sm:$0xf]  ;;  %v8570_v49 = vld [vmem:[#allocation7 + $0x4cc] sm:$0xf0] }
 0x264   :  { %v6805_v35 = vor.u32 %v8459_v33, %v6804_v28  ;;  %2681 = vmatpush.bf16.msrb.mxu2 %v6697_v8  ;;  %2700 = vmatpush.bf16.msrb.mxu3 %v6825_v12  ;;  %v7011_v1 = vor.u32 %v8572_v38, %v7008_v39  ;;  %v8604_v58 = vld [vmem:[#allocation7 + $0x5e4] sm:$0xf]  ;;  %v7136_v8 = vld [vmem:[#allocation7 + $0x5f0] sm:$0xf0]  ;;  %v7118_v12 = vld [vmem:[#allocation7 + $0x5c0] sm:$0xf]  ;;  %v6991_v28 = vor.u32 %v8570_v49, %v6990_v16 }
 0x265   :  { %v7139_v56 = vor.u32 %v8604_v58, %v7136_v8  ;;  %v8602_v43 = vld [vmem:[#allocation7 + $0x5cc] sm:$0xf0]  ;;  %v8556_v38 = vld [vmem:[#allocation7 + $0x464] sm:$0xf]  ;;  %v6944_v39 = vld [vmem:[#allocation7 + $0x470] sm:$0xf0] }
 0x266   :  { %v7119_v33 = vor.u32 %v8602_v43, %v7118_v12  ;;  %v8588_v58 = vld [vmem:[#allocation7 + $0x564] sm:$0xf]  ;;  %v7072_v8 = vld [vmem:[#allocation7 + $0x570] sm:$0xf0]  ;;  %v6926_v16 = vld [vmem:[#allocation7 + $0x440] sm:$0xf] }
 0x267   :  { %2644 = vmatpush.bf16.msra.mxu0 %v6677_v31  ;;  %2663 = vmatpush.bf16.msrb.mxu1 %v6805_v35  ;;  %v6995_v31 = vor.u32 %v8568_v62, %v6992_v4  ;;  %v7120_v35 = vld [vmem:[#allocation7 + $0x5d0] sm:$0xf0]  ;;  %v8554_v49 = vld [vmem:[#allocation7 + $0x44c] sm:$0xf0]  ;;  %v7054_v12 = vld [vmem:[#allocation7 + $0x540] sm:$0xf] }
 0x268   :  { %2682 = vmatpush.bf16.msrb.mxu2 %v6681_v37  ;;  %2701 = vmatpush.bf16.msrb.mxu3 %v6809_v26  ;;  %v7123_v42 = vor.u32 %v8600_v44, %v7120_v35  ;;  %v7102_v37 = vld [vmem:[#allocation7 + $0x5a0] sm:$0xf]  ;;  %v8598_v26 = vld [vmem:[#allocation7 + $0x5ac] sm:$0xf0]  ;;  %v8584_v62 = vld [vmem:[#allocation7 + $0x544] sm:$0xf]  ;;  %v6927_v4 = vor.u32 %v8554_v49, %v6926_v16 }
 0x269   :  { %v7103_v46 = vor.u32 %v8598_v26, %v7102_v37  ;;  %v8586_v43 = vld [vmem:[#allocation7 + $0x54c] sm:$0xf0]  ;;  %v6910_v35 = vld [vmem:[#allocation7 + $0x420] sm:$0xf]  ;;  %v8548_v55 = vld [vmem:[#allocation7 + $0x424] sm:$0xf] }
 0x26a   :  { %v7055_v44 = vor.u32 %v8586_v43, %v7054_v12  ;;  %v8550_v6 = vld [vmem:[#allocation7 + $0x42c] sm:$0xf0]  ;;  %v7038_v37 = vld [vmem:[#allocation7 + $0x520] sm:$0xf]  ;;  %v8580_v36 = vld [vmem:[#allocation7 + $0x524] sm:$0xf] }
 0x26b   :  { %2645 = vmatpush.bf16.msra.mxu0 %v6661_v2  ;;  %2664 = vmatpush.bf16.msrb.mxu1 %v6789_v50  ;;  %v7107_v2 = vor.u32 %v8596_v25, %v7104_v57  ;;  %v6958_v50 = vld [vmem:[#allocation7 + $0x480] sm:$0xf]  ;;  %v8582_v26 = vld [vmem:[#allocation7 + $0x52c] sm:$0xf0]  ;;  %v7040_v25 = vld [vmem:[#allocation7 + $0x530] sm:$0xf0]  ;;  %v6911_v57 = vor.u32 %v8550_v6, %v6910_v35 }
 0x26c   :  { %2683 = vmatpush.bf16.msrb.mxu2 %v6665_v0  ;;  %2702 = vmatpush.bf16.msrb.mxu3 %v6793_v47  ;;  %v8594_v0 = vld [vmem:[#allocation7 + $0x58c] sm:$0xf0]  ;;  %v8560_v47 = vld [vmem:[#allocation7 + $0x484] sm:$0xf]  ;;  %v7039_v30 = vor.u32 %v8582_v26, %v7038_v37  ;;  %v6894_v24 = vld [vmem:[#allocation7 + $0x400] sm:$0xf] }
 0x26d   :  { %v7024_v14 = vld [vmem:[#allocation7 + $0x510] sm:$0xf0]  ;;  %v8569_v16 = vld [vmem:[#allocation7 + $0x4cc] sm:$0xf] }
 0x26e   :  { %v8601_v43 = vld [vmem:[#allocation7 + $0x5cc] sm:$0xf] }
 0x26f   :  { %2646 = vmatpush.bf16.msra.mxu0 %v6645_v5  ;;  %2665 = vmatpush.bf16.msrb.mxu1 %v6773_v19  ;;  %v6959_v5 = vor.u32 %v8562_v51, %v6958_v50  ;;  %v7087_v19 = vor.u32 %v8594_v0, %v7086_v41  ;;  %v7022_v50 = vld [vmem:[#allocation7 + $0x500] sm:$0xf]  ;;  %v8578_v41 = vld [vmem:[#allocation7 + $0x50c] sm:$0xf0]  ;;  %v8544_v0 = vld [vmem:[#allocation7 + $0x404] sm:$0xf] }
 0x270   :  { %2684 = vmatpush.bf16.msrb.mxu2 %v6649_v17  ;;  %2703 = vmatpush.bf16.msrb.mxu3 %v6777_v9  ;;  %v6963_v17 = vor.u32 %v8560_v47, %v6960_v10  ;;  %v7091_v9 = vor.u32 %v8592_v34, %v7088_v32  ;;  %v6896_v47 = vld [vmem:[#allocation7 + $0x410] sm:$0xf0]  ;;  %v7023_v10 = vor.u32 %v8578_v41, %v7022_v50  ;;  %v8576_v32 = vld [vmem:[#allocation7 + $0x504] sm:$0xf]  ;;  %v8597_v37 = vld [vmem:[#allocation7 + $0x5ac] sm:$0xf] }
 0x271   :  { %2571 = vmatmul.bf16.vlgmr.msrb.gmra.mxu0 %v9643_v3  ;;  %2590 = vmatmul.bf16.vlgmr.msra.gmra.mxu1 %v9645_v53  ;;  %v6899_v34 = vor.u32 %v8544_v0, %v6896_v47  ;;  %v7027_v52 = vor.u32 %v8576_v32, %v7024_v14  ;;  %v7096_v41 = vld [vmem:[#allocation7 + $0x598] sm:$0xf0]  ;;  %v6950_v47 = vld [vmem:[#allocation7 + $0x468] sm:$0xf]  ;;  %v8591_v14 = vld [vmem:[#allocation7 + $0x574] sm:$0xf0] }
 0x272   :  { %2609 = vmatmul.bf16.vlgmr.msra.gmra.mxu2 %v9643_v3  ;;  %2628 = vmatmul.bf16.vlgmr.msra.gmra.mxu3 %v9645_v53 }
 0x273   :  { %3132 = vmatpush.bf16.msrb.mxu0 %v7007_v61  ;;  %3151 = vmatpush.bf16.msra.mxu1 %v7135_v48  ;;  %v6943_v61 = vor.u32 %v8558_v21, %v6942_v11  ;;  %v7071_v48 = vor.u32 %v8590_v63, %v7070_v23  ;;  %v8607_v11 = vld [vmem:[#allocation7 + $0x5f4] sm:$0xf0]  ;;  %v8573_v21 = vld [vmem:[#allocation7 + $0x4ec] sm:$0xf]  ;;  %v7016_v23 = vld [vmem:[#allocation7 + $0x4f8] sm:$0xf0] }
 0x274   :  { %3170 = vmatpush.bf16.msra.mxu2 %v7011_v1  ;;  %3189 = vmatpush.bf16.msra.mxu3 %v7139_v56  ;;  %v6947_v1 = vor.u32 %v8556_v38, %v6944_v39  ;;  %v7075_v56 = vor.u32 %v8588_v58, %v7072_v8  ;;  %v7019_v63 = vor.u32 %v8573_v21, %v7016_v23  ;;  %v8605_v38 = vld [vmem:[#allocation7 + $0x5ec] sm:$0xf]  ;;  %v7144_v39 = vld [vmem:[#allocation7 + $0x5f8] sm:$0xf0]  ;;  %v8603_v8 = vld [vmem:[#allocation7 + $0x5d4] sm:$0xf0] }
 0x275   :  { %v7062_v23 = vld [vmem:[#allocation7 + $0x548] sm:$0xf] }
 0x277   :  { %3133 = vmatpush.bf16.msrb.mxu0 %v6991_v28  ;;  %3152 = vmatpush.bf16.msra.mxu1 %v7119_v33  ;;  %v8552_v28 = vld [vmem:[#allocation7 + $0x444] sm:$0xf]  ;;  %v6928_v33 = vld [vmem:[#allocation7 + $0x450] sm:$0xf0] }
 0x278   :  { %3171 = vmatpush.bf16.msra.mxu2 %v6995_v31  ;;  %3190 = vmatpush.bf16.msra.mxu3 %v7123_v42  ;;  %v7056_v31 = vld [vmem:[#allocation7 + $0x550] sm:$0xf0]  ;;  %v6931_v20 = vor.u32 %v8552_v28, %v6928_v33  ;;  %v7128_v28 = vld [vmem:[#allocation7 + $0x5d8] sm:$0xf0]  ;;  %v6982_v33 = vld [vmem:[#allocation7 + $0x4a8] sm:$0xf] }
 0x279   :  { %v7059_v42 = vor.u32 %v8584_v62, %v7056_v31  ;;  %v7131_v62 = vor.u32 %v8601_v43, %v7128_v28  ;;  %v8599_v31 = vld [vmem:[#allocation7 + $0x5b4] sm:$0xf0]  ;;  %v8549_v28 = vld [vmem:[#allocation7 + $0x42c] sm:$0xf] }
 0x27b   :  { %3134 = vmatpush.bf16.msrb.mxu0 %v6975_v18  ;;  %3153 = vmatpush.bf16.msra.mxu1 %v7103_v46  ;;  %v6912_v18 = vld [vmem:[#allocation7 + $0x430] sm:$0xf0] }
 0x27c   :  { %3172 = vmatpush.bf16.msra.mxu2 %v6979_v45  ;;  %3191 = vmatpush.bf16.msra.mxu3 %v7107_v2  ;;  %v6915_v46 = vor.u32 %v8548_v55, %v6912_v18  ;;  %v7043_v45 = vor.u32 %v8580_v36, %v7040_v25  ;;  %v8546_v2 = vld [vmem:[#allocation7 + $0x40c] sm:$0xf0]  ;;  %v7112_v55 = vld [vmem:[#allocation7 + $0x5b8] sm:$0xf0]  ;;  %v6966_v36 = vld [vmem:[#allocation7 + $0x488] sm:$0xf] }
 0x27d   :  { %v6895_v51 = vor.u32 %v8546_v2, %v6894_v24  ;;  %v7115_v18 = vor.u32 %v8597_v37, %v7112_v55  ;;  %v8563_v25 = vld [vmem:[#allocation7 + $0x494] sm:$0xf0]  ;;  %v6968_v24 = vld [vmem:[#allocation7 + $0x498] sm:$0xf0] }
 0x27e   :  { %v8547_v37 = vld [vmem:[#allocation7 + $0x414] sm:$0xf0] }
 0x27f   :  { %3135 = vmatpush.bf16.msrb.mxu0 %v6959_v5  ;;  %3154 = vmatpush.bf16.msra.mxu1 %v7087_v19  ;;  %v7014_v5 = vld [vmem:[#allocation7 + $0x4e8] sm:$0xf]  ;;  %v8575_v19 = vld [vmem:[#allocation7 + $0x4f4] sm:$0xf0] }
 0x280   :  { %3173 = vmatpush.bf16.msra.mxu2 %v6963_v17  ;;  %3192 = vmatpush.bf16.msra.mxu3 %v7091_v9  ;;  %v7142_v17 = vld [vmem:[#allocation7 + $0x5e8] sm:$0xf]  ;;  %v7015_v9 = vor.u32 %v8575_v19, %v7014_v5  ;;  %v6952_v5 = vld [vmem:[#allocation7 + $0x478] sm:$0xf0] }
 0x281   :  { %2576 = vmatmul.bf16.gmra.mxu0 %v9651_v7  ;;  %2595 = vmatmul.bf16.gmra.mxu1 %v9653_v54 }
 0x282   :  { %2614 = vmatmul.bf16.gmra.mxu2 %v9651_v7  ;;  %2633 = vmatmul.bf16.gmra.mxu3 %v9653_v54 }
 0x283   :  { %3136 = vmatpush.bf16.msrb.mxu0 %v6943_v61  ;;  %3155 = vmatpush.bf16.msra.mxu1 %v7071_v48  ;;  %v7143_v61 = vor.u32 %v8607_v11, %v7142_v17  ;;  %v8571_v48 = vld [vmem:[#allocation7 + $0x4d4] sm:$0xf0]  ;;  %v7080_v11 = vld [vmem:[#allocation7 + $0x578] sm:$0xf0] }
 0x284   :  { %3174 = vmatpush.bf16.msra.mxu2 %v6947_v1  ;;  %3193 = vmatpush.bf16.msra.mxu3 %v7075_v56  ;;  %v7126_v1 = vld [vmem:[#allocation7 + $0x5c8] sm:$0xf]  ;;  %v7000_v56 = vld [vmem:[#allocation7 + $0x4d8] sm:$0xf0] }
 0x285   :  { %v7127_v49 = vor.u32 %v8603_v8, %v7126_v1  ;;  %v7003_v12 = vor.u32 %v8569_v16, %v7000_v56  ;;  %v7064_v1 = vld [vmem:[#allocation7 + $0x558] sm:$0xf0]  ;;  %v8551_v16 = vld [vmem:[#allocation7 + $0x434] sm:$0xf0]  ;;  %v7046_v56 = vld [vmem:[#allocation7 + $0x528] sm:$0xf] }
 0x287   :  { %3137 = vmatpush.bf16.msrb.mxu0 %v6927_v4  ;;  %3156 = vmatpush.bf16.msra.mxu1 %v7055_v44  ;;  %v8567_v4 = vld [vmem:[#allocation7 + $0x4b4] sm:$0xf0]  ;;  %v7110_v44 = vld [vmem:[#allocation7 + $0x5a8] sm:$0xf] }
 0x288   :  { %3175 = vmatpush.bf16.msra.mxu2 %v6931_v20  ;;  %3194 = vmatpush.bf16.msra.mxu3 %v7059_v42  ;;  %v6983_v35 = vor.u32 %v8567_v4, %v6982_v33  ;;  %v7111_v6 = vor.u32 %v8599_v31, %v7110_v44  ;;  %v8565_v20 = vld [vmem:[#allocation7 + $0x4ac] sm:$0xf]  ;;  %v6984_v42 = vld [vmem:[#allocation7 + $0x4b8] sm:$0xf0] }
 0x289   :  { %v6987_v26 = vor.u32 %v8565_v20, %v6984_v42  ;;  %v6920_v33 = vld [vmem:[#allocation7 + $0x438] sm:$0xf0]  ;;  %v6902_v42 = vld [vmem:[#allocation7 + $0x408] sm:$0xf] }
 0x28a   :  { %v6923_v4 = vor.u32 %v8549_v28, %v6920_v33  ;;  %v7048_v44 = vld [vmem:[#allocation7 + $0x538] sm:$0xf0]  ;;  %v6903_v55 = vor.u32 %v8547_v37, %v6902_v42 }
 0x28b   :  { %3138 = vmatpush.bf16.msrb.mxu0 %v6911_v57  ;;  %3157 = vmatpush.bf16.msra.mxu1 %v7039_v30  ;;  %v7094_v57 = vld [vmem:[#allocation7 + $0x588] sm:$0xf]  ;;  %v6967_v30 = vor.u32 %v8563_v25, %v6966_v36  ;;  %v8545_v36 = vld [vmem:[#allocation7 + $0x40c] sm:$0xf]  ;;  %v6904_v25 = vld [vmem:[#allocation7 + $0x418] sm:$0xf0] }
 0x28c   :  { %3176 = vmatpush.bf16.msra.mxu2 %v6915_v46  ;;  %3195 = vmatpush.bf16.msra.mxu3 %v7043_v45  ;;  %v8595_v46 = vld [vmem:[#allocation7 + $0x594] sm:$0xf0]  ;;  %v8561_v45 = vld [vmem:[#allocation7 + $0x48c] sm:$0xf] }
 0x28d   :  { %v7095_v2 = vor.u32 %v8595_v46, %v7094_v57  ;;  %v6971_v50 = vor.u32 %v8561_v45, %v6968_v24  ;;  %v8577_v46 = vld [vmem:[#allocation7 + $0x50c] sm:$0xf]  ;;  %v7032_v45 = vld [vmem:[#allocation7 + $0x518] sm:$0xf0] }
 0x28e   :  { %v7035_v24 = vor.u32 %v8577_v46, %v7032_v45 }
 0x28f   :  { %3139 = vmatpush.bf16.msrb.mxu0 %v6895_v51  ;;  %3158 = vmatpush.bf16.msra.mxu1 %v7023_v10  ;;  %v8593_v51 = vld [vmem:[#allocation7 + $0x58c] sm:$0xf]  ;;  %v8559_v10 = vld [vmem:[#allocation7 + $0x474] sm:$0xf0] }
 0x290   :  { %3177 = vmatpush.bf16.msra.mxu2 %v6899_v34  ;;  %3196 = vmatpush.bf16.msra.mxu3 %v7027_v52  ;;  %v7099_v0 = vor.u32 %v8593_v51, %v7096_v41  ;;  %v7078_v34 = vld [vmem:[#allocation7 + $0x568] sm:$0xf]  ;;  %v6951_v32 = vor.u32 %v8559_v10, %v6950_v47  ;;  %v8557_v52 = vld [vmem:[#allocation7 + $0x46c] sm:$0xf] }
 0x291   :  { %2647 = vmatmul.bf16.vlgmr.msra.gmra.mxu0 %v9643_v3  ;;  %2666 = vmatmul.bf16.vlgmr.msrb.gmra.mxu1 %v9645_v53  ;;  %v7079_v19 = vor.u32 %v8591_v14, %v7078_v34  ;;  %v6955_v17 = vor.u32 %v8557_v52, %v6952_v5 }
 0x292   :  { %2685 = vmatmul.bf16.vlgmr.msrb.gmra.mxu2 %v9643_v3  ;;  %2704 = vmatmul.bf16.vlgmr.msrb.gmra.mxu3 %v9645_v53  ;;  %v7147_v3 = vor.u32 %v8605_v38, %v7144_v39  ;;  %v6998_v53 = vld [vmem:[#allocation7 + $0x4c8] sm:$0xf]  ;;  %v8553_v38 = vld [vmem:[#allocation7 + $0x44c] sm:$0xf]  ;;  %v6936_v39 = vld [vmem:[#allocation7 + $0x458] sm:$0xf0] }
 0x293   :  { %3208 = vmatpush.bf16.msra.mxu0 %v7015_v9  ;;  %3227 = vmatpush.bf16.msrb.mxu1 %v7143_v61  ;;  %v6999_v58 = vor.u32 %v8571_v48, %v6998_v53  ;;  %v8589_v9 = vld [vmem:[#allocation7 + $0x56c] sm:$0xf]  ;;  %v6939_v53 = vor.u32 %v8553_v38, %v6936_v39 }
 0x294   :  { %3246 = vmatpush.bf16.msrb.mxu2 %v7019_v63  ;;  %3265 = vmatpush.bf16.msrb.mxu3 %v7147_v3  ;;  %v7083_v21 = vor.u32 %v8589_v9, %v7080_v11  ;;  %v8587_v63 = vld [vmem:[#allocation7 + $0x554] sm:$0xf0]  ;;  %v8585_v48 = vld [vmem:[#allocation7 + $0x54c] sm:$0xf] }
 0x295   :  { %v7063_v3 = vor.u32 %v8587_v63, %v7062_v23  ;;  %v7067_v8 = vor.u32 %v8585_v48, %v7064_v1 }
 0x297   :  { %3209 = vmatpush.bf16.msra.mxu0 %v6999_v58  ;;  %3228 = vmatpush.bf16.msrb.mxu1 %v7127_v49  ;;  %v6918_v58 = vld [vmem:[#allocation7 + $0x428] sm:$0xf]  ;;  %v8583_v49 = vld [vmem:[#allocation7 + $0x534] sm:$0xf0] }
 0x298   :  { %3247 = vmatpush.bf16.msrb.mxu2 %v7003_v12  ;;  %3266 = vmatpush.bf16.msrb.mxu3 %v7131_v62  ;;  %v6919_v12 = vor.u32 %v8551_v16, %v6918_v58  ;;  %v7047_v43 = vor.u32 %v8583_v49, %v7046_v56  ;;  %v8581_v62 = vld [vmem:[#allocation7 + $0x52c] sm:$0xf] }
 0x299   :  { %v7051_v31 = vor.u32 %v8581_v62, %v7048_v44 }
 0x29b   :  { %3210 = vmatpush.bf16.msra.mxu0 %v6983_v35  ;;  %3229 = vmatpush.bf16.msrb.mxu1 %v7111_v6 }
 0x29c   :  { %3248 = vmatpush.bf16.msrb.mxu2 %v6987_v26  ;;  %3267 = vmatpush.bf16.msrb.mxu3 %v7115_v18  ;;  %v7030_v26 = vld [vmem:[#allocation7 + $0x508] sm:$0xf]  ;;  %v8579_v18 = vld [vmem:[#allocation7 + $0x514] sm:$0xf0] }
 0x29d   :  { %v7031_v57 = vor.u32 %v8579_v18, %v7030_v26 }
 0x29f   :  { %3211 = vmatpush.bf16.msra.mxu0 %v6967_v30  ;;  %3230 = vmatpush.bf16.msrb.mxu1 %v7095_v2  ;;  %v6907_v30 = vor.u32 %v8545_v36, %v6904_v25 }
 0x2a0   :  { %3249 = vmatpush.bf16.msrb.mxu2 %v6971_v50  ;;  %3268 = vmatpush.bf16.msrb.mxu3 %v7099_v0 }
 0x2a1   :  { %2652 = vmatmul.bf16.gmra.mxu0 %v9651_v7  ;;  %2671 = vmatmul.bf16.gmra.mxu1 %v9653_v54 }
 0x2a2   :  { %2690 = vmatmul.bf16.gmra.mxu2 %v9651_v7  ;;  %2709 = vmatmul.bf16.gmra.mxu3 %v9653_v54  ;;  %v6934_v7 = vld [vmem:[#allocation7 + $0x448] sm:$0xf]  ;;  %v8555_v54 = vld [vmem:[#allocation7 + $0x454] sm:$0xf0] }
 0x2a3   :  { %3212 = vmatpush.bf16.msra.mxu0 %v6951_v32  ;;  %3231 = vmatpush.bf16.msrb.mxu1 %v7079_v19  ;;  %v6935_v61 = vor.u32 %v8555_v54, %v6934_v7 }
 0x2a4   :  { %3250 = vmatpush.bf16.msrb.mxu2 %v6955_v17  ;;  %3269 = vmatpush.bf16.msrb.mxu3 %v7083_v21 }
 0x2a7   :  { %3213 = vmatpush.bf16.msra.mxu0 %v6935_v61  ;;  %3232 = vmatpush.bf16.msrb.mxu1 %v7063_v3 }
 0x2a8   :  { %3251 = vmatpush.bf16.msrb.mxu2 %v6939_v53  ;;  %3270 = vmatpush.bf16.msrb.mxu3 %v7067_v8 }
 0x2ab   :  { %3214 = vmatpush.bf16.msra.mxu0 %v6919_v12  ;;  %3233 = vmatpush.bf16.msrb.mxu1 %v7047_v43 }
 0x2ac   :  { %3252 = vmatpush.bf16.msrb.mxu2 %v6923_v4  ;;  %3271 = vmatpush.bf16.msrb.mxu3 %v7051_v31 }
 0x2ae   :  { %v2080_v35 = vpop.f32.mrf.mxu0  ;;  %v2099_v6 = vpop.f32.mrf.mxu1 }
 0x2af   :  { %v9667_v20 = vadd.f32 %v2099_v6, %v2080_v35  ;;  %3215 = vmatpush.bf16.msra.mxu0 %v6903_v55  ;;  %3234 = vmatpush.bf16.msrb.mxu1 %v7031_v57 }
 0x2b0   :  { %3253 = vmatpush.bf16.msrb.mxu2 %v6907_v30  ;;  %3272 = vmatpush.bf16.msrb.mxu3 %v7035_v24 }
 0x2b1   :  { %3140 = vmatmul.bf16.vlgmr.msrb.gmra.mxu0 %v9581_v40  ;;  %3159 = vmatmul.bf16.vlgmr.msra.gmra.mxu1 %v9594_v22 }
 0x2b2   :  { %3178 = vmatmul.bf16.vlgmr.msra.gmra.mxu2 %v9581_v40  ;;  %3197 = vmatmul.bf16.vlgmr.msra.gmra.mxu3 %v9594_v22 }
 0x2b5   :  { %v2118_v2 = vpop.f32.mrf.mxu2  ;;  %v2137_v50 = vpop.f32.mrf.mxu3 }
 0x2b6   :  { %v2138_v51 = vadd.f32 %v2137_v50, %v2118_v2  ;;  %v9673_v41 = vpop.f32.mrf.mxu0  ;;  %v9675_v0 = vpop.f32.mrf.mxu1 }
 0x2bd   :  { %v9677_v47 = vpop.f32.mrf.mxu2  ;;  %v9679_v10 = vpop.f32.mrf.mxu3 }
 0x2be   :  { %v2085_v34 = vpop.f32.mrf.mxu0  ;;  %v2104_v32 = vpop.f32.mrf.mxu1 }
 0x2bf   :  { %v2105_v14 = vadd.f32 %v2104_v32, %v2085_v34 }
 0x2c1   :  { %3145 = vmatmul.bf16.gmra.mxu0 %v9631_v29  ;;  %3164 = vmatmul.bf16.gmra.mxu1 %v9633_v15 }
 0x2c2   :  { %3183 = vmatmul.bf16.gmra.mxu2 %v9631_v29  ;;  %3202 = vmatmul.bf16.gmra.mxu3 %v9633_v15 }
 0x2c5   :  { %v2123_v52 = vpop.f32.mrf.mxu2  ;;  %v2142_v5 = vpop.f32.mrf.mxu3 }
 0x2c6   :  { %v2143_v19 = vadd.f32 %v2142_v5, %v2123_v52  ;;  %v9685_v17 = vpop.f32.mrf.mxu0  ;;  %v9687_v9 = vpop.f32.mrf.mxu1 }
 0x2cd   :  { %v9689_v11 = vpop.f32.mrf.mxu2  ;;  %v9691_v21 = vpop.f32.mrf.mxu3 }
 0x2ce   :  { %v2156_v7 = vpop.f32.mrf.mxu0  ;;  %v2175_v54 = vpop.f32.mrf.mxu1 }
 0x2cf   :  { %v2176_v23 = vadd.f32 %v2175_v54, %v2156_v7 }
 0x2d1   :  { %3216 = vmatmul.bf16.vlgmr.msra.gmra.mxu0 %v9581_v40  ;;  %3235 = vmatmul.bf16.vlgmr.msrb.gmra.mxu1 %v9594_v22 }
 0x2d2   :  { %3254 = vmatmul.bf16.vlgmr.msrb.gmra.mxu2 %v9581_v40  ;;  %3273 = vmatmul.bf16.vlgmr.msrb.gmra.mxu3 %v9594_v22 }
 0x2d5   :  { %v2194_v61 = vpop.f32.mrf.mxu2  ;;  %v2213_v63 = vpop.f32.mrf.mxu3 }
 0x2d6   :  { %v2214_v38 = vadd.f32 %v2213_v63, %v2194_v61  ;;  %v9697_v39 = vpop.f32.mrf.mxu0  ;;  %v9699_v3 = vpop.f32.mrf.mxu1 }
 0x2dd   :  { %v9701_v53 = vpop.f32.mrf.mxu2  ;;  %v9703_v48 = vpop.f32.mrf.mxu3 }
 0x2de   :  { %v2161_v1 = vpop.f32.mrf.mxu0  ;;  %v2180_v58 = vpop.f32.mrf.mxu1 }
 0x2df   :  { %v2181_v8 = vadd.f32 %v2180_v58, %v2161_v1 }
 0x2e1   :  { %3221 = vmatmul.bf16.gmra.mxu0 %v9631_v29  ;;  %3240 = vmatmul.bf16.gmra.mxu1 %v9633_v15 }
 0x2e2   :  { %3259 = vmatmul.bf16.gmra.mxu2 %v9631_v29  ;;  %3278 = vmatmul.bf16.gmra.mxu3 %v9633_v15 }
 0x2e5   :  { %v2199_v40 = vpop.f32.mrf.mxu2  ;;  %v2218_v22 = vpop.f32.mrf.mxu3 }
 0x2e6   :  { %v2219_v16 = vadd.f32 %v2218_v22, %v2199_v40  ;;  %v9709_v56 = vpop.f32.mrf.mxu0  ;;  %v9711_v49 = vpop.f32.mrf.mxu1 }
 0x2ed   :  { %v9713_v12 = vpop.f32.mrf.mxu2  ;;  %v9715_v43 = vpop.f32.mrf.mxu3 }
 0x2ee   :  { %v2572_v28 = vpop.f32.mrf.mxu0  ;;  %v2591_v33 = vpop.f32.mrf.mxu1 }
 0x2ef   :  { %v2573_v62 = vadd.f32 %v2572_v28, %v9667_v20 }
 0x2f1   :  { %v2592_v4 = vadd.f32 %v2591_v33, %v2573_v62 }
 0x2f5   :  { %v2610_v44 = vpop.f32.mrf.mxu2  ;;  %v2629_v29 = vpop.f32.mrf.mxu3 }
 0x2f6   :  { %v2611_v31 = vadd.f32 %v2610_v44, %v2138_v51  ;;  %v9718_v15 = vpop.f32.mrf.mxu0  ;;  %v9720_v35 = vpop.f32.mrf.mxu1 }
 0x2f8   :  { %v9722_v6 = vadd.f32 %v2629_v29, %v2611_v31 }
 0x2fd   :  { %v9724_v42 = vpop.f32.mrf.mxu2  ;;  %v9726_v37 = vpop.f32.mrf.mxu3 }
 0x2fe   :  { %10250 = vst [vmem:[#allocation18_spill] sm:$0xff] %v9726_v37  ;;  %v2577_v26 = vpop.f32.mrf.mxu0  ;;  %v2596_v55 = vpop.f32.mrf.mxu1 }
 0x2ff   :  { %v2578_v18 = vadd.f32 %v2577_v26, %v2105_v14 }
 0x301   :  { %v9728_v36 = vadd.f32 %v2596_v55, %v2578_v18 }
 0x305   :  { %v2615_v20 = vpop.f32.mrf.mxu2  ;;  %v2634_v25 = vpop.f32.mrf.mxu3 }
 0x306   :  { %v2616_v57 = vadd.f32 %v2615_v20, %v2143_v19  ;;  %v9730_v30 = vpop.f32.mrf.mxu0  ;;  %v9732_v46 = vpop.f32.mrf.mxu1 }
 0x308   :  { %v9734_v45 = vadd.f32 %v2634_v25, %v2616_v57 }
 0x30d   :  { %v9736_v24 = vpop.f32.mrf.mxu2  ;;  %v9738_v2 = vpop.f32.mrf.mxu3 }
 0x30e   :  { %10251 = vst [vmem:[#allocation16_spill] sm:$0xff] %v9738_v2  ;;  %v2648_v50 = vpop.f32.mrf.mxu0  ;;  %v2667_v51 = vpop.f32.mrf.mxu1 }
 0x30f   :  { %v2649_v34 = vadd.f32 %v2648_v50, %v2176_v23 }
 0x311   :  { %v2668_v32 = vadd.f32 %v2667_v51, %v2649_v34 }
 0x315   :  { %v2686_v14 = vpop.f32.mrf.mxu2  ;;  %v2705_v52 = vpop.f32.mrf.mxu3 }
 0x316   :  { %v2687_v5 = vadd.f32 %v2686_v14, %v2214_v38  ;;  %v9740_v7 = vpop.f32.mrf.mxu0  ;;  %v9742_v19 = vpop.f32.mrf.mxu1 }
 0x318   :  { %v2706_v54 = vadd.f32 %v2705_v52, %v2687_v5 }
 0x31d   :  { %v9744_v61 = vpop.f32.mrf.mxu2  ;;  %v9746_v63 = vpop.f32.mrf.mxu3 }
 0x31e   :  { %10252 = vst [vmem:[#allocation19_spill] sm:$0xff] %v9746_v63  ;;  %v2653_v1 = vpop.f32.mrf.mxu0  ;;  %v2672_v58 = vpop.f32.mrf.mxu1 }
 0x31f   :  { %v2654_v40 = vadd.f32 %v2653_v1, %v2181_v8 }
 0x321   :  { %v9748_v22 = vadd.f32 %v2672_v58, %v2654_v40  ;;  %v3300_v58 = vld [vmem:[%s10198_s4] sm:$0xf] }
 0x322   :  { %v9777_v13 = vperm.slane %v3300_v58, 2 }
 0x325   :  { %v2691_v28 = vpop.f32.mrf.mxu2  ;;  %v2710_v23 = vpop.f32.mrf.mxu3 }
 0x326   :  { %v2692_v33 = vadd.f32 %v2691_v28, %v2219_v16  ;;  %v9750_v62 = vpop.f32.mrf.mxu0  ;;  %v9752_v38 = vpop.f32.mrf.mxu1  ;;  %v9771_v28 = vperm.slane %v3300_v58, 0 }
 0x328   :  { %v9754_v44 = vadd.f32 %v2710_v23, %v2692_v33 }
 0x32a   :  { %10253 = vst [vmem:[#allocation21_spill] sm:$0xff] %v9754_v44  ;;  %v9784_v44 = vperm.slane %v3300_v58, 3 }
 0x32d   :  { %v9756_v29 = vpop.f32.mrf.mxu2  ;;  %v9758_v31 = vpop.f32.mrf.mxu3 }
 0x32e   :  { %10254 = vst [vmem:[#allocation22_spill] sm:$0xff] %v9756_v29  ;;  %v3141_v26 = vpop.f32.mrf.mxu0  ;;  %v3160_v55 = vpop.f32.mrf.mxu1 }
 0x32f   :  { %10255 = vst [vmem:[#allocation23_spill] sm:$0xff] %v9758_v31  ;;  %v3161_v1 = vadd.f32 %v3160_v55, %v3141_v26 }
 0x331   :  { %v3284_v40 = vadd.f32 %v3161_v1, %v2592_v4  ;;  %v9782_v4 = vperm.slane %v3300_v58, 1 }
 0x333   :  { %v3310_v37 = vadd.f32 %v9771_v28, %v3284_v40 }
 0x335   :  { %v3179_v18 = vpop.f32.mrf.mxu2  ;;  %v3198_v20 = vpop.f32.mrf.mxu3  ;;  %v3326_v1 = vmax.f32 %v3310_v37, 0.0 }
 0x336   :  { %v9760_v8 = vpop.f32.mrf.mxu0  ;;  %v9762_v25 = vpop.f32.mrf.mxu1  ;;  %v3199_v31 = vadd.f32 %v3198_v20, %v3179_v18 }
 0x33d   :  { %v9764_v57 = vpop.f32.mrf.mxu2  ;;  %v9766_v16 = vpop.f32.mrf.mxu3 }
 0x33e   :  { %10256 = vst [vmem:[#allocation24_spill] sm:$0xff] %v9764_v57  ;;  %v3146_v50 = vpop.f32.mrf.mxu0  ;;  %v3165_v51 = vpop.f32.mrf.mxu1 }
 0x33f   :  { %10257 = vst [vmem:[#allocation25_spill] sm:$0xff] %v9766_v16  ;;  %v3285_v16 = vadd.f32 %v3199_v31, %v9722_v6  ;;  %v2107_v6 = vadd.f32 %v9687_v9, %v9685_v17 }
 0x341   :  { %v3311_v18 = vadd.f32 %v9782_v4, %v3285_v16 }
 0x343   :  { %v3327_v37 = vmax.f32 %v3311_v18, 0.0 }
 0x345   :  { %v3184_v34 = vpop.f32.mrf.mxu2  ;;  %v3203_v14 = vpop.f32.mrf.mxu3 }
 0x346   :  { %v3148_v52 = vpop.f32.mrf.mxu0  ;;  %v3167_v5 = vpop.f32.mrf.mxu1  ;;  %v3204_v9 = vadd.f32 %v3203_v14, %v3184_v34  ;;  %v2140_v14 = vadd.f32 %v9679_v10, %v9677_v47 }
 0x34d   :  { %v9773_v23 = vpop.f32.mrf.mxu2  ;;  %v9775_v33 = vpop.f32.mrf.mxu3 }
 0x34e   :  { %10258 = vst [vmem:[#allocation26_spill] sm:$0xff] %v9775_v33  ;;  %v3217_v27 = vpop.f32.mrf.mxu0  ;;  %v3236_v59 = vpop.f32.mrf.mxu1 }
 0x34f   :  { %v3237_v60 = vadd.f32 %v3236_v59, %v3217_v27 }
 0x351   :  { %v3286_v26 = vadd.f32 %v3237_v60, %v2668_v32  ;;  %v3166_v32 = vadd.f32 %v3165_v51, %v3146_v50 }
 0x353   :  { %v3312_v55 = vadd.f32 %v9777_v13, %v3286_v26  ;;  %v3168_v26 = vadd.f32 %v3167_v5, %v3148_v52 }
 0x355   :  { %v3328_v57 = vmax.f32 %v3312_v55, 0.0  ;;  %v3255_v29 = vpop.f32.mrf.mxu2  ;;  %v3274_v63 = vpop.f32.mrf.mxu3  ;;  %v10259_v18 = vld [vmem:[#allocation26_spill] sm:$0xff] }
 0x356   :  { %v3275_v2 = vadd.f32 %v3274_v63, %v3255_v29  ;;  %v3219_v27 = vpop.f32.mrf.mxu0  ;;  %v3238_v59 = vpop.f32.mrf.mxu1  ;;  %v2178_v63 = vadd.f32 %v9699_v3, %v9697_v39  ;;  %v3292_v29 = vadd.f32 %v3166_v32, %v9728_v36  ;;  %v2183_v39 = vadd.f32 %v9711_v49, %v9709_v56 }
 0x357   :  { %v9786_v33 = vmax.f32 %v3326_v1, %v3328_v57  ;;  %v2102_v57 = vadd.f32 %v9675_v0, %v9673_v41  ;;  %v3239_v55 = vadd.f32 %v3238_v59, %v3219_v27  ;;  %v2145_v0 = vadd.f32 %v9691_v21, %v9689_v11 }
 0x358   :  { %v3287_v60 = vadd.f32 %v3275_v2, %v2706_v54  ;;  %v2580_v2 = vadd.f32 %v9730_v30, %v2107_v6  ;;  %v2651_v17 = vadd.f32 %v9740_v7, %v2178_v63  ;;  %v3318_v36 = vadd.f32 %v9771_v28, %v3292_v29  ;;  %v10262_v63 = vld [vmem:[#allocation19_spill] sm:$0xff] }
 0x359   :  { %v2575_v3 = vadd.f32 %v9718_v15, %v2102_v57  ;;  %v2656_v7 = vadd.f32 %v9750_v62, %v2183_v39  ;;  %v3163_v56 = vadd.f32 %v9762_v25, %v9760_v8  ;;  %v3293_v49 = vadd.f32 %v3204_v9, %v9734_v45  ;;  %v10263_v57 = vld [vmem:[#allocation22_spill] sm:$0xff]  ;;  %v8706_v39 = vld [vmem:[#allocation9 + $0x2ec] sm:$0xf0] }
 0x35a   :  { %v3313_v20 = vadd.f32 %v9784_v44, %v3287_v60  ;;  %v2599_v30 = vadd.f32 %v9732_v46, %v2580_v2  ;;  %v2670_v34 = vadd.f32 %v9742_v19, %v2651_v17  ;;  %v2618_v21 = vadd.f32 %v9736_v24, %v2145_v0 }
 0x35b   :  { %v2594_v11 = vadd.f32 %v9720_v35, %v2575_v3  ;;  %v3334_v46 = vmax.f32 %v3318_v36, 0.0  ;;  %v2613_v45 = vadd.f32 %v9724_v42, %v2140_v14  ;;  %v2675_v1 = vadd.f32 %v9752_v38, %v2656_v7  ;;  %v10260_v42 = vld [vmem:[#allocation21_spill] sm:$0xff] }
 0x35c   :  { %v3329_v31 = vmax.f32 %v3313_v20, 0.0  ;;  %v3296_v62 = vadd.f32 %v3168_v26, %v2599_v30  ;;  %v3290_v19 = vadd.f32 %v3239_v55, %v2670_v34  ;;  %v2221_v59 = vadd.f32 %v9715_v43, %v9713_v12 }
 0x35d   :  { %v3257_v58 = vpop.f32.mrf.mxu2  ;;  %v3276_v40 = vpop.f32.mrf.mxu3  ;;  %v3206_v60 = vadd.f32 %v10259_v18, %v9773_v23  ;;  %v10266_v23 = vld [vmem:[#allocation18_spill] sm:$0xff]  ;;  %v7406_v18 = vld [vmem:[#allocation9 + $0x3f0] sm:$0xf0] }
 0x35e   :  { %v3222_v54 = vpop.f32.mrf.mxu0  ;;  %v3241_v16 = vpop.f32.mrf.mxu1  ;;  %v9798_v50 = vmax.f32 %v3327_v37, %v3329_v31  ;;  %v3277_v32 = vadd.f32 %v3276_v40, %v3257_v58  ;;  %v3322_v38 = vadd.f32 %v9771_v28, %v3296_v62  ;;  %v3316_v37 = vadd.f32 %v9777_v13, %v3290_v19 }
 0x35f   :  { %v3242_v51 = vadd.f32 %v3241_v16, %v3222_v54  ;;  %v2694_v2 = vadd.f32 %v10263_v57, %v2221_v59  ;;  %v10264_v54 = vld [vmem:[#allocation24_spill] sm:$0xff]  ;;  %v10265_v16 = vld [vmem:[#allocation25_spill] sm:$0xff]  ;;  %v2632_v58 = vadd.f32 %v10266_v23, %v2613_v45  ;;  %v8736_v59 = vld [vmem:[#allocation9 + $0x3e4] sm:$0xf] }
 0x360   :  { %v3201_v12 = vadd.f32 %v10265_v16, %v10264_v54  ;;  %v3332_v0 = vmax.f32 %v3316_v37, 0.0  ;;  %v7390_v54 = vld [vmem:[#allocation9 + $0x3d0] sm:$0xf0]  ;;  %v7244_v16 = vld [vmem:[#allocation9 + $0x2a0] sm:$0xf] }
 0x361   :  { %v3294_v41 = vadd.f32 %v3242_v51, %v9748_v22  ;;  %v2216_v22 = vadd.f32 %v9703_v48, %v9701_v53  ;;  %v3288_v53 = vadd.f32 %v3163_v56, %v2594_v11  ;;  %v3319_v48 = vadd.f32 %v9782_v4, %v3293_v49  ;;  %v7276_v51 = vld [vmem:[#allocation9 + $0x2e0] sm:$0xf]  ;;  %v10267_v56 = vld [vmem:[#allocation23_spill] sm:$0xff] }
 0x362   :  { %v7277_v55 = vor.u32 %v8706_v39, %v7276_v51  ;;  %v2713_v49 = vadd.f32 %v10267_v56, %v2694_v2  ;;  %v8732_v2 = vld [vmem:[#allocation9 + $0x3c4] sm:$0xf]  ;;  %v7372_v23 = vld [vmem:[#allocation9 + $0x3a0] sm:$0xf]  ;;  %v7246_v51 = vld [vmem:[#allocation9 + $0x2b0] sm:$0xf0] }
 0x363   :  { %v3320_v15 = vadd.f32 %v9777_v13, %v3294_v41  ;;  %v2689_v25 = vadd.f32 %v9744_v61, %v2216_v22  ;;  %v10261_v61 = vld [vmem:[#allocation16_spill] sm:$0xff]  ;;  %v3314_v40 = vadd.f32 %v9771_v28, %v3288_v53  ;;  %v3335_v17 = vmax.f32 %v3319_v48, 0.0  ;;  %v8728_v39 = vld [vmem:[#allocation9 + $0x3a4] sm:$0xf] }
 0x364   :  { %v2637_v6 = vadd.f32 %v10261_v61, %v2618_v21  ;;  %v3338_v41 = vmax.f32 %v3322_v38, 0.0  ;;  %3971 = vmatpush.bf16.msrb.mxu0 %v7277_v55  ;;  %v7278_v53 = vld [vmem:[#allocation9 + $0x2f0] sm:$0xf0]  ;;  %v7260_v61 = vld [vmem:[#allocation9 + $0x2c0] sm:$0xf] }
 0x365   :  { %v3336_v52 = vmax.f32 %v3320_v15, 0.0  ;;  %v3260_v5 = vpop.f32.mrf.mxu2  ;;  %v3279_v8 = vpop.f32.mrf.mxu3  ;;  %v2708_v29 = vadd.f32 %v10262_v63, %v2689_v25  ;;  %v3289_v15 = vadd.f32 %v3201_v12, %v2632_v58  ;;  %v3330_v28 = vmax.f32 %v3314_v40, 0.0  ;;  %v8608_v48 = vld [vmem:[%s10204_s10] sm:$0xff]  ;;  %v7388_v38 = vld [vmem:[#allocation9 + $0x3c0] sm:$0xf] }
 0x366   :  { %v3280_v47 = vadd.f32 %v3279_v8, %v3260_v5  ;;  %v3224_v10 = vpop.f32.mrf.mxu0  ;;  %v3243_v27 = vpop.f32.mrf.mxu1  ;;  %v3297_v3 = vadd.f32 %v3206_v60, %v2637_v6  ;;  %v8702_v6 = vld [vmem:[#allocation9 + $0x2cc] sm:$0xf0]  ;;  %v7262_v63 = vld [vmem:[#allocation9 + $0x2d0] sm:$0xf0]  ;;  %v7393_v12 = vor.u32 %v8732_v2, %v7390_v54  ;;  %v7228_v55 = vld [vmem:[#allocation9 + $0x280] sm:$0xf] }
 0x367   :  { %v3346_v35 = vmax.f32 %v3334_v46, %v3336_v52  ;;  %v3244_v24 = vadd.f32 %v3243_v27, %v3224_v10  ;;  %v3291_v36 = vadd.f32 %v3277_v32, %v2708_v29  ;;  %v3344_v19 = vmax.f32 %v3330_v28, %v3332_v0  ;;  %v8704_v27 = vld [vmem:[#allocation9 + $0x2e4] sm:$0xf]  ;;  %v8730_v58 = vld [vmem:[#allocation9 + $0x3ac] sm:$0xf0]  ;;  %v7356_v0 = vld [vmem:[#allocation9 + $0x380] sm:$0xf] }
 0x368   :  { %v3295_v20 = vadd.f32 %v3280_v47, %v10260_v42  ;;  %v3315_v52 = vadd.f32 %v9782_v4, %v3289_v15  ;;  %v7281_v60 = vor.u32 %v8704_v27, %v7278_v53  ;;  %v7409_v32 = vor.u32 %v8736_v59, %v7406_v18  ;;  %v7230_v56 = vld [vmem:[#allocation9 + $0x290] sm:$0xf0]  ;;  %v7212_v28 = vld [vmem:[#allocation9 + $0x260] sm:$0xf] }
 0x369   :  { %v3298_v31 = vadd.f32 %v3244_v24, %v2675_v1  ;;  %v3317_v21 = vadd.f32 %v9784_v44, %v3291_v36  ;;  %v3350_v1 = vpack.c.bf16 %v3344_v19, %v9786_v33  ;;  %v8738_v24 = vld [vmem:[#allocation9 + $0x3ec] sm:$0xf0]  ;;  %v7261_v37 = vor.u32 %v8702_v6, %v7260_v61  ;;  %v7374_v36 = vld [vmem:[#allocation9 + $0x3b0] sm:$0xf0]  ;;  %v7196_v53 = vld [vmem:[#allocation9 + $0x240] sm:$0xf] }
 0x36a   :  { %v3321_v43 = vadd.f32 %v9784_v44, %v3295_v20  ;;  %v3331_v47 = vmax.f32 %v3315_v52, 0.0  ;;  %v8609_v20 = vld [vmem:[%s10204_s10 + $0x8] sm:$0xff]  ;;  %v8688_v52 = vld [vmem:[#allocation9 + $0x264] sm:$0xf]  ;;  %v7198_v59 = vld [vmem:[#allocation9 + $0x250] sm:$0xf0] }
 0x36b   :  { %v3324_v9 = vadd.f32 %v9777_v13, %v3298_v31  ;;  %v3323_v13 = vadd.f32 %v9782_v4, %v3297_v3  ;;  %v3333_v45 = vmax.f32 %v3317_v21, 0.0  ;;  %v8700_v31 = vld [vmem:[#allocation9 + $0x2c4] sm:$0xf]  ;;  %3972 = vmatpush.bf16.msrb.mxu0 %v7261_v37  ;;  %v7340_v21 = vld [vmem:[#allocation9 + $0x360] sm:$0xf] }
 0x36c   :  { %v3337_v26 = vmax.f32 %v3321_v43, 0.0  ;;  %v7265_v57 = vor.u32 %v8700_v31, %v7262_v63  ;;  %v8698_v43 = vld [vmem:[#allocation9 + $0x2ac] sm:$0xf0]  ;;  %v8680_v63 = vld [vmem:[#allocation9 + $0x224] sm:$0xf] }
 0x36d   :  { %v3340_v30 = vmax.f32 %v3324_v9, 0.0  ;;  %v3262_v7 = vpop.f32.mrf.mxu2  ;;  %v3281_v34 = vpop.f32.mrf.mxu3  ;;  %v3339_v8 = vmax.f32 %v3323_v13, 0.0  ;;  %v7245_v40 = vor.u32 %v8698_v43, %v7244_v16  ;;  %v8696_v9 = vld [vmem:[#allocation9 + $0x2a4] sm:$0xf]  ;;  %v8690_v13 = vld [vmem:[#allocation9 + $0x26c] sm:$0xf0] }
 0x36e   :  { %v3347_v14 = vmax.f32 %v3335_v17, %v3337_v26  ;;  %v3282_v22 = vadd.f32 %v3281_v34, %v3262_v7  ;;  %v7373_v17 = vor.u32 %v8730_v58, %v7372_v23  ;;  %v7249_v3 = vor.u32 %v8696_v9, %v7246_v51  ;;  %v8726_v7 = vld [vmem:[#allocation9 + $0x38c] sm:$0xf0]  ;;  %v8692_v34 = vld [vmem:[#allocation9 + $0x284] sm:$0xf]  ;;  %v7310_v54 = vld [vmem:[#allocation9 + $0x330] sm:$0xf0] }
 0x36f   :  { %v3348_v11 = vmax.f32 %v3338_v41, %v3340_v30  ;;  %v7377_v26 = vor.u32 %v8728_v39, %v7374_v36  ;;  %3973 = vmatpush.bf16.msrb.mxu0 %v7245_v40  ;;  %v8694_v41 = vld [vmem:[#allocation9 + $0x28c] sm:$0xf0]  ;;  %v7233_v15 = vor.u32 %v8692_v34, %v7230_v56  ;;  %v7164_v23 = vld [vmem:[#allocation9 + $0x200] sm:$0xf]  ;;  %v8676_v51 = vld [vmem:[#allocation9 + $0x204] sm:$0xf] }
 0x370   :  { %v3299_v46 = vadd.f32 %v3282_v22, %v2713_v49  ;;  %v7229_v30 = vor.u32 %v8694_v41, %v7228_v55  ;;  %v7357_v49 = vor.u32 %v8726_v7, %v7356_v0  ;;  %v7358_v22 = vld [vmem:[#allocation9 + $0x390] sm:$0xf0]  ;;  %v8682_v6 = vld [vmem:[#allocation9 + $0x22c] sm:$0xf0]  ;;  %v7292_v40 = vld [vmem:[#allocation9 + $0x300] sm:$0xf] }
 0x371   :  { %v3352_v62 = vpack.c.bf16 %v3348_v11, %v3346_v35  ;;  %v7404_v35 = vld [vmem:[#allocation9 + $0x3e0] sm:$0xf]  ;;  %v8714_v37 = vld [vmem:[#allocation9 + $0x32c] sm:$0xf0]  ;;  %v7166_v39 = vld [vmem:[#allocation9 + $0x210] sm:$0xf0] }
 0x372   :  { %v3325_v5 = vadd.f32 %v9784_v44, %v3299_v46  ;;  %v3345_v44 = vmax.f32 %v3331_v47, %v3333_v45  ;;  %v7405_v33 = vor.u32 %v8738_v24, %v7404_v35  ;;  %v8722_v46 = vld [vmem:[#allocation9 + $0x36c] sm:$0xf0]  ;;  %v3436_v47 = vld [vmem:[#allocation3] sm:$0x11]  ;;  %v7169_v36 = vor.u32 %v8676_v51, %v7166_v39  ;;  %v7294_v55 = vld [vmem:[#allocation9 + $0x310] sm:$0xf0] }
 0x373   :  { %3371 = vmatpush.bf16.msra.mxu2 %v3352_v62  ;;  %3974 = vmatpush.bf16.msrb.mxu0 %v7229_v30  ;;  %v7341_v19 = vor.u32 %v8722_v46, %v7340_v21  ;;  %v3437_v27 = vsel %vm9478_vm15, 0, %v3436_v47  ;;  %v7324_v35 = vld [vmem:[#allocation9 + $0x340] sm:$0xf]  ;;  %v8684_v24 = vld [vmem:[#allocation9 + $0x244] sm:$0xf] }
 0x374   :  { %v3341_v25 = vmax.f32 %v3325_v5, 0.0  ;;  %v3351_v42 = vpack.c.bf16 %v3345_v44, %v9798_v50  ;;  %v8734_v50 = vld [vmem:[#allocation9 + $0x3cc] sm:$0xf0]  ;;  %v7214_v5 = vld [vmem:[#allocation9 + $0x270] sm:$0xf0] }
 0x375   :  { %v7389_v29 = vor.u32 %v8734_v50, %v7388_v38  ;;  %v7217_v45 = vor.u32 %v8688_v52, %v7214_v5  ;;  %3438 = vst [vmem:[#allocation3] sm:$0x11] %v3437_v27  ;;  %v8718_v44 = vld [vmem:[#allocation9 + $0x34c] sm:$0xf0]  ;;  %v7308_v38 = vld [vmem:[#allocation9 + $0x320] sm:$0xf] }
 0x376   :  { %v3349_v10 = vmax.f32 %v3339_v8, %v3341_v25  ;;  %v8720_v8 = vld [vmem:[#allocation9 + $0x364] sm:$0xf]  ;;  %v7342_v25 = vld [vmem:[#allocation9 + $0x370] sm:$0xf0]  ;;  %v7325_v18 = vor.u32 %v8718_v44, %v7324_v35  ;;  %v7309_v31 = vor.u32 %v8714_v37, %v7308_v38  ;;  %v8678_v58 = vld [vmem:[#allocation9 + $0x20c] sm:$0xf0] }
 0x377   :  { %3372 = vmatpush.bf16.msra.mxu2 %v3350_v1  ;;  %v3439_v16 = vld [vmem:[#allocation3 + $0x10] sm:$0x11]  ;;  %v7284_v41 = vld [vmem:[#allocation9 + $0x2e8] sm:$0xf]  ;;  %v8707_v7 = vld [vmem:[#allocation9 + $0x2f4] sm:$0xf0] }
 0x378   :  { %v3353_v4 = vpack.c.bf16 %v3349_v10, %v3347_v14  ;;  %v8724_v14 = vld [vmem:[#allocation9 + $0x384] sm:$0xf]  ;;  %v3440_v43 = vsel %vm9478_vm15, 0, %v3439_v16  ;;  %v8710_v9 = vld [vmem:[#allocation9 + $0x30c] sm:$0xf0] }
 0x379   :  { %v7361_v11 = vor.u32 %v8724_v14, %v7358_v22  ;;  %3441 = vst [vmem:[#allocation3 + $0x10] sm:$0x11] %v3440_v43  ;;  %v7412_v34 = vld [vmem:[#allocation9 + $0x3e8] sm:$0xf]  ;;  %v8739_v56 = vld [vmem:[#allocation9 + $0x3f4] sm:$0xf0] }
 0x37a   :  { %3385 = vmatpush.bf16.msra.mxu1 %v3353_v4  ;;  %3424 = vmatpush.bf16.msra.mxu3 %v3353_v4  ;;  %v8705_v14 = vld [vmem:[#allocation9 + $0x2ec] sm:$0xf]  ;;  %v7286_v22 = vld [vmem:[#allocation9 + $0x2f8] sm:$0xf0]  ;;  %v7268_v21 = vld [vmem:[#allocation9 + $0x2c8] sm:$0xf] }
 0x37b   :  { %3410 = vmatpush.bf16.msrb.mxu2 %v3352_v62  ;;  %v7213_v62 = vor.u32 %v8690_v13, %v7212_v28  ;;  %v8737_v28 = vld [vmem:[#allocation9 + $0x3ec] sm:$0xf]  ;;  %v7414_v13 = vld [vmem:[#allocation9 + $0x3f8] sm:$0xf0]  ;;  %v8703_v46 = vld [vmem:[#allocation9 + $0x2d4] sm:$0xf0] }
 0x37c   :  { %7152 = vmatmul.msk.bf16.vlgmr.msra.gmra.mxu2 %vm3361_vm8, %v8608_v48  ;;  %v7417_v52 = vor.u32 %v8737_v28, %v7414_v13  ;;  %v7269_v5 = vor.u32 %v8703_v46, %v7268_v21  ;;  %v7270_v47 = vld [vmem:[#allocation9 + $0x2d8] sm:$0xf0]  ;;  %v8733_v27 = vld [vmem:[#allocation9 + $0x3cc] sm:$0xf]  ;;  %v7252_v35 = vld [vmem:[#allocation9 + $0x2a8] sm:$0xf] }
 0x37d   :  { %3975 = vmatpush.bf16.msrb.mxu0 %v7213_v62  ;;  %v7238_v16 = vld [vmem:[#allocation9 + $0x298] sm:$0xf0]  ;;  %v7348_v39 = vld [vmem:[#allocation9 + $0x368] sm:$0xf]  ;;  %v8719_v13 = vld [vmem:[#allocation9 + $0x354] sm:$0xf0] }
 0x37e   :  { %3386 = vmatpush.bf16.msra.mxu1 %v3351_v42  ;;  %3425 = vmatpush.bf16.msra.mxu3 %v3351_v42  ;;  %v7180_v42 = vld [vmem:[#allocation9 + $0x220] sm:$0xf]  ;;  %v7366_v43 = vld [vmem:[#allocation9 + $0x398] sm:$0xf0]  ;;  %v3473_v46 = vld [vmem:[#allocation3 + $0x8] sm:$0x11] }
 0x37f   :  { %3411 = vmatpush.bf16.msrb.mxu2 %v3350_v1  ;;  %v7345_v1 = vor.u32 %v8720_v8, %v7342_v25  ;;  %v7181_v50 = vor.u32 %v8682_v6, %v7180_v42  ;;  %v7396_v8 = vld [vmem:[#allocation9 + $0x3c8] sm:$0xf]  ;;  %v7254_v42 = vld [vmem:[#allocation9 + $0x2b8] sm:$0xf0]  ;;  %v3470_v21 = vld [vmem:[#allocation3] sm:$0xff] }
 0x380   :  { %v7382_v6 = vld [vmem:[#allocation9 + $0x3b8] sm:$0xf0] }
 0x381   :  { %7161 = vmatmul.msk.bf16.vlgmr.msra.gmra.mxu3 %vm3361_vm8, %v8609_v20  ;;  %7153 = vmatmul.msk.bf16.vlgmr.msra.gmra.mxu1 %vm3361_vm8, %v8608_v48  ;;  %v8686_v48 = vld [vmem:[#allocation9 + $0x24c] sm:$0xf0] }
 0x382   :  { %3985 = vmatpush.bf16.msrb.mxu1 %v7405_v33  ;;  %4013 = vmatpush.bf16.msrb.mxu3 %v7409_v32  ;;  %v7197_v4 = vor.u32 %v8686_v48, %v7196_v53  ;;  %v8716_v33 = vld [vmem:[#allocation9 + $0x344] sm:$0xf]  ;;  %v7326_v32 = vld [vmem:[#allocation9 + $0x350] sm:$0xf0]  ;;  %v7398_v48 = vld [vmem:[#allocation9 + $0x3d8] sm:$0xf0] }
 0x383   :  { %3999 = vmatpush.bf16.msra.mxu2 %v7281_v60  ;;  %v7201_v60 = vor.u32 %v8684_v24, %v7198_v59  ;;  %v7329_v61 = vor.u32 %v8716_v33, %v7326_v32  ;;  %v7401_v44 = vor.u32 %v8733_v27, %v7398_v48  ;;  %v7380_v24 = vld [vmem:[#allocation9 + $0x3a8] sm:$0xf]  ;;  %v8731_v59 = vld [vmem:[#allocation9 + $0x3b4] sm:$0xf0]  ;;  %v8717_v48 = vld [vmem:[#allocation9 + $0x34c] sm:$0xf] }
 0x384   :  { %3976 = vmatpush.bf16.msrb.mxu0 %v7197_v4  ;;  %v8699_v4 = vld [vmem:[#allocation9 + $0x2b4] sm:$0xf0]  ;;  %v7381_v32 = vor.u32 %v8731_v59, %v7380_v24 }
 0x385   :  { %v7253_v33 = vor.u32 %v8699_v4, %v7252_v35  ;;  %v7334_v35 = vld [vmem:[#allocation9 + $0x358] sm:$0xf0]  ;;  %v8642_v4 = vld [vmem:[#allocation9 + $0xec] sm:$0xf0] }
 0x386   :  { %3986 = vmatpush.bf16.msrb.mxu1 %v7389_v29  ;;  %4014 = vmatpush.bf16.msrb.mxu3 %v7393_v12  ;;  %v7182_v29 = vld [vmem:[#allocation9 + $0x230] sm:$0xf0] }
 0x387   :  { %4000 = vmatpush.bf16.msra.mxu2 %v7265_v57  ;;  %v8712_v57 = vld [vmem:[#allocation9 + $0x324] sm:$0xf]  ;;  %v7185_v2 = vor.u32 %v8680_v63, %v7182_v29  ;;  %v7364_v63 = vld [vmem:[#allocation9 + $0x388] sm:$0xf] }
 0x388   :  { %v7313_v12 = vor.u32 %v8712_v57, %v7310_v54  ;;  %3977 = vmatpush.bf16.msrb.mxu0 %v7181_v50  ;;  %v7236_v50 = vld [vmem:[#allocation9 + $0x288] sm:$0xf]  ;;  %v8693_v54 = vld [vmem:[#allocation9 + $0x28c] sm:$0xf] }
 0x389   :  { %v7241_v51 = vor.u32 %v8693_v54, %v7238_v16  ;;  %v7172_v54 = vld [vmem:[#allocation9 + $0x208] sm:$0xf]  ;;  %v8679_v16 = vld [vmem:[#allocation9 + $0x214] sm:$0xf0] }
 0x38a   :  { %3987 = vmatpush.bf16.msrb.mxu1 %v7373_v17  ;;  %4015 = vmatpush.bf16.msrb.mxu3 %v7377_v26  ;;  %v7165_v17 = vor.u32 %v8678_v58, %v7164_v23  ;;  %v8708_v26 = vld [vmem:[#allocation9 + $0x304] sm:$0xf] }
 0x38b   :  { %4001 = vmatpush.bf16.msra.mxu2 %v7249_v3  ;;  %v7293_v3 = vor.u32 %v8710_v9, %v7292_v40  ;;  %v7297_v30 = vor.u32 %v8708_v26, %v7294_v55  ;;  %v8691_v9 = vld [vmem:[#allocation9 + $0x274] sm:$0xf0] }
 0x38c   :  { %7160 = vmatmul.msk.bf16.vlgmr.msrb.gmra.mxu2 %vm3361_vm8, %v8609_v20  ;;  %3978 = vmatpush.bf16.msrb.mxu0 %v7165_v17  ;;  %v7220_v17 = vld [vmem:[#allocation9 + $0x268] sm:$0xf] }
 0x38e   :  { %3988 = vmatpush.bf16.msrb.mxu1 %v7357_v49  ;;  %4016 = vmatpush.bf16.msrb.mxu3 %v7361_v11  ;;  %v7285_v49 = vor.u32 %v8707_v7, %v7284_v41  ;;  %v7289_v11 = vor.u32 %v8705_v14, %v7286_v22  ;;  %v8721_v7 = vld [vmem:[#allocation9 + $0x36c] sm:$0xf]  ;;  %v7221_v22 = vor.u32 %v8691_v9, %v7220_v17 }
 0x38f   :  { %4002 = vmatpush.bf16.msra.mxu2 %v7233_v15  ;;  %v7413_v15 = vor.u32 %v8739_v56, %v7412_v34  ;;  %v7350_v34 = vld [vmem:[#allocation9 + $0x378] sm:$0xf0]  ;;  %v7204_v56 = vld [vmem:[#allocation9 + $0x248] sm:$0xf] }
 0x390   :  { %4027 = vmatpush.bf16.msra.mxu0 %v7285_v49  ;;  %v8687_v49 = vld [vmem:[#allocation9 + $0x254] sm:$0xf0] }
 0x391   :  { %v7205_v27 = vor.u32 %v8687_v49, %v7204_v56 }
 0x392   :  { %3989 = vmatpush.bf16.msrb.mxu1 %v7341_v19  ;;  %4017 = vmatpush.bf16.msrb.mxu3 %v7345_v1  ;;  %v8701_v1 = vld [vmem:[#allocation9 + $0x2cc] sm:$0xf] }
 0x393   :  { %4003 = vmatpush.bf16.msra.mxu2 %v7217_v45  ;;  %v8735_v45 = vld [vmem:[#allocation9 + $0x3d4] sm:$0xf0]  ;;  %v7273_v53 = vor.u32 %v8701_v1, %v7270_v47  ;;  %v8685_v1 = vld [vmem:[#allocation9 + $0x24c] sm:$0xf]  ;;  %v7206_v47 = vld [vmem:[#allocation9 + $0x258] sm:$0xf0] }
 0x394   :  { %v7397_v25 = vor.u32 %v8735_v45, %v7396_v8  ;;  %4028 = vmatpush.bf16.msra.mxu0 %v7269_v5 }
 0x396   :  { %3990 = vmatpush.bf16.msrb.mxu1 %v7325_v18  ;;  %4018 = vmatpush.bf16.msrb.mxu3 %v7329_v61  ;;  %v8697_v18 = vld [vmem:[#allocation9 + $0x2ac] sm:$0xf] }
 0x397   :  { %4004 = vmatpush.bf16.msra.mxu2 %v7201_v60  ;;  %v8729_v61 = vld [vmem:[#allocation9 + $0x3ac] sm:$0xf]  ;;  %v7257_v37 = vor.u32 %v8697_v18, %v7254_v42  ;;  %v7188_v18 = vld [vmem:[#allocation9 + $0x228] sm:$0xf] }
 0x398   :  { %v7385_v57 = vor.u32 %v8729_v61, %v7382_v6  ;;  %4029 = vmatpush.bf16.msra.mxu0 %v7253_v33  ;;  %v7209_v33 = vor.u32 %v8685_v1, %v7206_v47  ;;  %v8681_v42 = vld [vmem:[#allocation9 + $0x22c] sm:$0xf]  ;;  %v7337_v6 = vor.u32 %v8717_v48, %v7334_v35  ;;  %v7540_v35 = vld [vmem:[#allocation9 + $0xe0] sm:$0xf] }
 0x39a   :  { %3991 = vmatpush.bf16.msrb.mxu1 %v7309_v31  ;;  %4019 = vmatpush.bf16.msrb.mxu3 %v7313_v12  ;;  %v8695_v31 = vld [vmem:[#allocation9 + $0x294] sm:$0xf0]  ;;  %v8725_v12 = vld [vmem:[#allocation9 + $0x38c] sm:$0xf] }
 0x39b   :  { %4005 = vmatpush.bf16.msra.mxu2 %v7185_v2  ;;  %v8727_v2 = vld [vmem:[#allocation9 + $0x394] sm:$0xf0]  ;;  %v7237_v58 = vor.u32 %v8695_v31, %v7236_v50  ;;  %v7369_v41 = vor.u32 %v8725_v12, %v7366_v43  ;;  %v8713_v50 = vld [vmem:[#allocation9 + $0x32c] sm:$0xf]  ;;  %v7318_v31 = vld [vmem:[#allocation9 + $0x338] sm:$0xf0] }
 0x39c   :  { %v7365_v40 = vor.u32 %v8727_v2, %v7364_v63  ;;  %v3476_v12 = vld [vmem:[#allocation3 + $0x10] sm:$0xff] }
 0x39d   :  { %4030 = vmatpush.bf16.msra.mxu0 %v7237_v58  ;;  %v8711_v58 = vld [vmem:[#allocation9 + $0x314] sm:$0xf0] }
 0x39e   :  { %3992 = vmatpush.bf16.msrb.mxu1 %v7293_v3  ;;  %4020 = vmatpush.bf16.msrb.mxu3 %v7297_v30  ;;  %v8723_v3 = vld [vmem:[#allocation9 + $0x374] sm:$0xf0]  ;;  %v7222_v30 = vld [vmem:[#allocation9 + $0x278] sm:$0xf0] }
 0x39f   :  { %4006 = vmatpush.bf16.msra.mxu2 %v7169_v36  ;;  %v8689_v36 = vld [vmem:[#allocation9 + $0x26c] sm:$0xf]  ;;  %v7349_v28 = vor.u32 %v8723_v3, %v7348_v39  ;;  %v7174_v3 = vld [vmem:[#allocation9 + $0x218] sm:$0xf0] }
 0x3a0   :  { %v8677_v39 = vld [vmem:[#allocation9 + $0x20c] sm:$0xf] }
 0x3a1   :  { %4031 = vmatpush.bf16.msra.mxu0 %v7221_v22 }
 0x3a2   :  { %4041 = vmatpush.bf16.msra.mxu1 %v7413_v15  ;;  %4069 = vmatpush.bf16.msra.mxu3 %v7417_v52  ;;  %v7225_v52 = vor.u32 %v8689_v36, %v7222_v30 }
 0x3a3   :  { %4055 = vmatpush.bf16.msrb.mxu2 %v7289_v11  ;;  %v7332_v11 = vld [vmem:[#allocation9 + $0x348] sm:$0xf] }
 0x3a5   :  { %4032 = vmatpush.bf16.msra.mxu0 %v7205_v27 }
 0x3a6   :  { %4042 = vmatpush.bf16.msra.mxu1 %v7397_v25  ;;  %4070 = vmatpush.bf16.msra.mxu3 %v7401_v44  ;;  %v7353_v25 = vor.u32 %v8721_v7, %v7350_v34  ;;  %v7177_v34 = vor.u32 %v8677_v39, %v7174_v3 }
 0x3a7   :  { %4056 = vmatpush.bf16.msrb.mxu2 %v7273_v53  ;;  %v7333_v53 = vor.u32 %v8719_v13, %v7332_v11 }
 0x3aa   :  { %4043 = vmatpush.bf16.msra.mxu1 %v7381_v32  ;;  %4071 = vmatpush.bf16.msra.mxu3 %v7385_v57  ;;  %v8715_v32 = vld [vmem:[#allocation9 + $0x334] sm:$0xf0] }
 0x3ab   :  { %4057 = vmatpush.bf16.msrb.mxu2 %v7257_v37  ;;  %v3479_v37 = vld [vmem:[#allocation3 + $0x18] sm:$0x11] }
 0x3ae   :  { %4044 = vmatpush.bf16.msra.mxu1 %v7365_v40  ;;  %4072 = vmatpush.bf16.msra.mxu3 %v7369_v41 }
 0x3af   :  { %4058 = vmatpush.bf16.msrb.mxu2 %v7241_v51  ;;  %v7321_v51 = vor.u32 %v8713_v50, %v7318_v31  ;;  %v7541_v50 = vor.u32 %v8642_v4, %v7540_v35  ;;  %v7478_v35 = vld [vmem:[#allocation9 + $0x70] sm:$0xf0]  ;;  %v8656_v4 = vld [vmem:[#allocation9 + $0x164] sm:$0xf] }
 0x3b2   :  { %4045 = vmatpush.bf16.msra.mxu1 %v7349_v28  ;;  %4073 = vmatpush.bf16.msra.mxu3 %v7353_v25 }
 0x3b3   :  { %4059 = vmatpush.bf16.msrb.mxu2 %v7225_v52 }
 0x3b6   :  { %4046 = vmatpush.bf16.msra.mxu1 %v7333_v53  ;;  %4074 = vmatpush.bf16.msra.mxu3 %v7337_v6  ;;  %v7670_v6 = vld [vmem:[#allocation9 + $0x1f0] sm:$0xf0]  ;;  %v8612_v53 = vld [vmem:[#allocation9 + $0x4] sm:$0xf] }
 0x3b7   :  { %4060 = vmatpush.bf16.msrb.mxu2 %v7209_v33 }
 0x3ba   :  { %4075 = vmatpush.bf16.msra.mxu3 %v7321_v51  ;;  %v8634_v51 = vld [vmem:[#allocation9 + $0xac] sm:$0xf0] }
 0x3fe   :  { %v3388_v62 = vpop.f32.mrf.mxu1 }
 0x3ff   :  { %v9860_v20 = vpop.f32.mrf.mxu2 }
 0x404   :  { %v3427_v19 = vpop.f32.mrf.mxu3 }
 0x405   :  { %v3433_v60 = vmax.f32 %v3388_v62, %v3427_v19 }
 0x407   :  { %v9864_v0 = vpop.f32.mrf.mxu2 }
 0x40c   :  { %v3429_v55 = vpop.f32.mrf.mxu3 }
 0x40f   :  { %v3413_v38 = vpop.f32.mrf.mxu2 }
 0x410   :  { %v3432_v29 = vmax.f32 %v9860_v20, %v3413_v38  ;;  %v3390_v20 = vpop.f32.mrf.mxu1  ;;  %v7190_v38 = vld [vmem:[#allocation9 + $0x238] sm:$0xf0] }
 0x411   :  { %v3435_v62 = vmax.f32 %v3390_v20, %v3429_v55  ;;  %v7193_v43 = vor.u32 %v8681_v42, %v7190_v38  ;;  %v7173_v20 = vor.u32 %v8679_v16, %v7172_v54  ;;  %v7302_v55 = vld [vmem:[#allocation9 + $0x318] sm:$0xf0]  ;;  %v7542_v42 = vld [vmem:[#allocation9 + $0xf0] sm:$0xf0]  ;;  %v7652_v54 = vld [vmem:[#allocation9 + $0x1c0] sm:$0xf] }
 0x412   :  { %v3448_v23 = vpack.c.bf16 %v3433_v60, %v3432_v29  ;;  %v7316_v60 = vld [vmem:[#allocation9 + $0x328] sm:$0xf]  ;;  %v8670_v16 = vld [vmem:[#allocation9 + $0x1cc] sm:$0xf0] }
 0x413   :  { %v7317_v2 = vor.u32 %v8715_v32, %v7316_v60  ;;  %4061 = vmatpush.bf16.msrb.mxu2 %v7193_v43  ;;  %v7526_v43 = vld [vmem:[#allocation9 + $0xd0] sm:$0xf0] }
 0x414   :  { %v3451_v26 = vshrl.u32 %v3448_v23, 16  ;;  %v3454_v14 = vshll.u32 %v3448_v23, 16  ;;  %v7300_v23 = vld [vmem:[#allocation9 + $0x308] sm:$0xf] }
 0x415   :  { %4047 = vmatpush.bf16.msra.mxu1 %v7317_v2  ;;  %v7301_v7 = vor.u32 %v8711_v58, %v7300_v23  ;;  %v8668_v23 = vld [vmem:[#allocation9 + $0x1c4] sm:$0xf]  ;;  %v7654_v58 = vld [vmem:[#allocation9 + $0x1d0] sm:$0xf0] }
 0x416   :  { %v3453_v15 = vrot.slane %v3451_v26, 7  ;;  %v8709_v26 = vld [vmem:[#allocation9 + $0x30c] sm:$0xf]  ;;  %v7657_v3 = vor.u32 %v8668_v23, %v7654_v58  ;;  %v8650_v58 = vld [vmem:[#allocation9 + $0x12c] sm:$0xf0] }
 0x417   :  { %v3415_v19 = vpop.f32.mrf.mxu2  ;;  %4062 = vmatpush.bf16.msrb.mxu2 %v7177_v34 }
 0x418   :  { %v3456_v5 = vor.u32 %v3454_v14, %v3453_v15  ;;  %v3457_v8 = vrot.slane %v3453_v15, 4  ;;  %v3434_v45 = vmax.f32 %v9864_v0, %v3415_v19  ;;  %v8683_v0 = vld [vmem:[#allocation9 + $0x234] sm:$0xf0]  ;;  %v7305_v14 = vor.u32 %v8709_v26, %v7302_v55  ;;  %v8632_v26 = vld [vmem:[#allocation9 + $0xa4] sm:$0xf] }
 0x419   :  { %v7189_v57 = vor.u32 %v8683_v0, %v7188_v18  ;;  %4048 = vmatpush.bf16.msra.mxu1 %v7301_v7  ;;  %v8674_v18 = vld [vmem:[#allocation9 + $0x1ec] sm:$0xf0]  ;;  %v8640_v0 = vld [vmem:[#allocation9 + $0xe4] sm:$0xf]  ;;  %v7510_v55 = vld [vmem:[#allocation9 + $0xb0] sm:$0xf0] }
 0x41a   :  { %v9870_v44 = vsel %vm9518_vm10, %v3456_v5, %v3470_v21  ;;  %v3474_v24 = vsel %vm9478_vm15, %v3457_v8, %v3473_v46  ;;  %v3449_v59 = vpack.c.bf16 %v3435_v62, %v3434_v45  ;;  %4076 = vmatpush.bf16.msra.mxu3 %v7305_v14  ;;  %v7638_v7 = vld [vmem:[#allocation9 + $0x1b0] sm:$0xf0]  ;;  %v7513_v14 = vor.u32 %v8632_v26, %v7510_v55  ;;  %v8614_v55 = vld [vmem:[#allocation9 + $0xc] sm:$0xf0] }
 0x41b   :  { %3472 = vst [vmem:[#allocation3] sm:$0xff] %v9870_v44  ;;  %v3551_v40 = vshrl.u32 %v9870_v44, 16  ;;  %v3554_v36 = vshll.u32 %v9870_v44, 16  ;;  %4033 = vmatpush.bf16.msra.mxu0 %v7189_v57  ;;  %v7682_v8 = vrot.slane %v9870_v44, 9  ;;  %v7545_v57 = vor.u32 %v8640_v0, %v7542_v42  ;;  %v7460_v0 = vld [vmem:[#allocation9 + $0x40] sm:$0xf] }
 0x41c   :  { %3475 = vst [vmem:[#allocation3 + $0x8] sm:$0x11] %v3474_v24  ;;  %v3459_v61 = vshrl.u32 %v3449_v59, 16  ;;  %v3462_v29 = vshll.u32 %v3449_v59, 16  ;;  %v7668_v59 = vld [vmem:[#allocation9 + $0x1e0] sm:$0xf] }
 0x41d   :  { %v3553_v22 = vrot.slane %v3551_v40, 4  ;;  %v3556_v28 = vrot.slane %v3554_v36, 5  ;;  %v7669_v31 = vor.u32 %v8674_v18, %v7668_v59  ;;  %v7636_v36 = vld [vmem:[#allocation9 + $0x1a0] sm:$0xf]  ;;  %v8654_v42 = vld [vmem:[#allocation9 + $0x14c] sm:$0xf0] }
 0x41e   :  { %v3461_v63 = vrot.slane %v3459_v61, 7  ;;  %v8672_v61 = vld [vmem:[#allocation9 + $0x1e4] sm:$0xf] }
 0x41f   :  { %4034 = vmatpush.bf16.msra.mxu0 %v7173_v20  ;;  %v3557_v21 = vor.u32 %v3556_v28, %v3553_v22  ;;  %v7673_v2 = vor.u32 %v8672_v61, %v7670_v6  ;;  %v8666_v20 = vld [vmem:[#allocation9 + $0x1ac] sm:$0xf0]  ;;  %v7620_v28 = vld [vmem:[#allocation9 + $0x180] sm:$0xf]  ;;  %v8620_v61 = vld [vmem:[#allocation9 + $0x44] sm:$0xf] }
 0x420   :  { %v3464_v17 = vor.u32 %v3462_v29, %v3461_v63  ;;  %v3465_v9 = vrot.slane %v3461_v63, 4  ;;  %v7524_v63 = vld [vmem:[#allocation9 + $0xc0] sm:$0xf]  ;;  %v8638_v29 = vld [vmem:[#allocation9 + $0xcc] sm:$0xf0] }
 0x421   :  { %v3558_v52 = vrot.slane %v3557_v21, 4  ;;  %v7525_v40 = vor.u32 %v8638_v29, %v7524_v63  ;;  %v8660_v21 = vld [vmem:[#allocation9 + $0x184] sm:$0xf]  ;;  %v7462_v6 = vld [vmem:[#allocation9 + $0x50] sm:$0xf0] }
 0x422   :  { %v9879_v41 = vsel %vm9518_vm10, %v3464_v17, %v3476_v12  ;;  %v3480_v30 = vsel %vm9478_vm15, %v3465_v9, %v3479_v37  ;;  %v8636_v12 = vld [vmem:[#allocation9 + $0xc4] sm:$0xf]  ;;  %v7653_v17 = vor.u32 %v8670_v16, %v7652_v54  ;;  %v7508_v9 = vld [vmem:[#allocation9 + $0xa0] sm:$0xf] }
 0x423   :  { %3478 = vst [vmem:[#allocation3 + $0x10] sm:$0xff] %v9879_v41  ;;  %v3483_v56 = vld [vmem:[#allocation3 + $0x8] sm:$0x11]  ;;  %v3565_v49 = vshrl.u32 %v9879_v41, 16  ;;  %v3568_v15 = vshll.u32 %v9879_v41, 16  ;;  %v7529_v39 = vor.u32 %v8636_v12, %v7526_v43  ;;  %v7509_v34 = vor.u32 %v8634_v51, %v7508_v9 }
 0x424   :  { %3481 = vst [vmem:[#allocation3 + $0x18] sm:$0x11] %v3480_v30  ;;  %v3560_v10 = vshll.u32 %v3483_v56, 16  ;;  %v4529_v45 = vrot.slane %v3483_v56, 5  ;;  %v8664_v30 = vld [vmem:[#allocation9 + $0x1a4] sm:$0xf]  ;;  %v7637_v56 = vor.u32 %v8666_v20, %v7636_v36  ;;  %v7465_v43 = vor.u32 %v8620_v61, %v7462_v6 }
 0x425   :  { %v3567_v11 = vrot.slane %v3565_v49, 4  ;;  %v3570_v13 = vrot.slane %v3568_v15, 5  ;;  %v7492_v49 = vld [vmem:[#allocation9 + $0x80] sm:$0xf]  ;;  %v8630_v15 = vld [vmem:[#allocation9 + $0x8c] sm:$0xf0]  ;;  %v7641_v22 = vor.u32 %v8664_v30, %v7638_v7 }
 0x426   :  { %v3562_v46 = vrot.slane %v3560_v10, 5  ;;  %v9894_v48 = vsel %vm9220_vm5, %v7682_v8, %v4529_v45  ;;  %v8662_v10 = vld [vmem:[#allocation9 + $0x18c] sm:$0xf0]  ;;  %v7444_v63 = vld [vmem:[#allocation9 + $0x20] sm:$0xf]  ;;  %v7683_v16 = vrot.slane %v9879_v41, 9 }
 0x427   :  { %v3571_v62 = vor.u32 %v3570_v13, %v3567_v11  ;;  %v8628_v11 = vld [vmem:[#allocation9 + $0x84] sm:$0xf]  ;;  %v7494_v13 = vld [vmem:[#allocation9 + $0x90] sm:$0xf0]  ;;  %v8626_v8 = vld [vmem:[#allocation9 + $0x6c] sm:$0xf0]  ;;  %v4601_v41 = vunpack.c.h.b16 %v9894_v48 }
 0x428   :  { %v3563_v1 = vsel %vm9110_vm2, %v3558_v52, %v3562_v46  ;;  %v7622_v46 = vld [vmem:[#allocation9 + $0x190] sm:$0xf0]  ;;  %v7621_v52 = vor.u32 %v8662_v10, %v7620_v28  ;;  %v7497_v45 = vor.u32 %v8628_v11, %v7494_v13  ;;  %v7572_v54 = vld [vmem:[#allocation9 + $0x120] sm:$0xf]  ;;  %v8646_v7 = vld [vmem:[#allocation9 + $0x10c] sm:$0xf0] }
 0x429   :  { %v3572_v47 = vrot.slane %v3571_v62, 4  ;;  %v3643_v60 = vunpack.c.l.b16 %v3563_v1  ;;  %v3644_v33 = vunpack.c.h.b16 %v3563_v1  ;;  %v7493_v62 = vor.u32 %v8630_v15, %v7492_v49  ;;  %v7604_v1 = vld [vmem:[#allocation9 + $0x160] sm:$0xf]  ;;  %v8644_v49 = vld [vmem:[#allocation9 + $0x104] sm:$0xf] }
 0x42a   :  { %v7625_v25 = vor.u32 %v8660_v21, %v7622_v46  ;;  %v7428_v51 = vld [vmem:[#allocation9] sm:$0xf]  ;;  %v7573_v20 = vor.u32 %v8650_v58, %v7572_v54  ;;  %v8643_v28 = vld [vmem:[#allocation9 + $0xf4] sm:$0xf0]  ;;  %v7676_v10 = vld [vmem:[#allocation9 + $0x1e8] sm:$0xf] }
 0x42b   :  { %v9886_v19 = vld [vmem:[#allocation3 + $0x18] sm:$0x11]  ;;  %v7556_v30 = vld [vmem:[#allocation9 + $0x100] sm:$0xf]  ;;  %v8641_v13 = vld [vmem:[#allocation9 + $0xec] sm:$0xf]  ;;  %v7429_v21 = vor.u32 %v8614_v55, %v7428_v51 }
 0x42c   :  { %v3574_v5 = vshll.u32 %v9886_v19, 16  ;;  %v4533_v12 = vrot.slane %v9886_v19, 5  ;;  %v8675_v11 = vld [vmem:[#allocation9 + $0x1f4] sm:$0xf0]  ;;  %v7557_v46 = vor.u32 %v8646_v7, %v7556_v30  ;;  %v8610_v6 = vld [vmem:[#allocation3 + $0x4] sm:$0xf] }
 0x42d   :  { %v8665_v58 = vld [vmem:[#allocation9 + $0x1ac] sm:$0xf]  ;;  %v7484_v7 = vld [vmem:[#allocation9 + $0x68] sm:$0xf] }
 0x42e   :  { %v3576_v27 = vrot.slane %v3574_v5, 5  ;;  %v7476_v5 = vld [vmem:[#allocation9 + $0x60] sm:$0xf]  ;;  %v4534_v9 = vsel %vm9220_vm5, %v7683_v16, %v4533_v12  ;;  %v7644_v16 = vld [vmem:[#allocation9 + $0x1a8] sm:$0xf]  ;;  %vm5152_vm5 = vcmask 64512  }
 0x42f   :  { %v7477_v59 = vor.u32 %v8626_v8, %v7476_v5  ;;  %v4603_v36 = vunpack.c.h.b16 %v4534_v9  ;;  %v7678_v5 = vld [vmem:[#allocation9 + $0x1f8] sm:$0xf0]  ;;  %v8667_v12 = vld [vmem:[#allocation9 + $0x1b4] sm:$0xf0] }
 0x430   :  { %v3577_v24 = vsel %vm9110_vm2, %v3572_v47, %v3576_v27  ;;  %v8658_v47 = vld [vmem:[#allocation9 + $0x16c] sm:$0xf0]  ;;  %v8624_v27 = vld [vmem:[#allocation9 + $0x64] sm:$0xf]  ;;  %vm5081_vm2 = vcmask 130048  }
 0x431   :  { %v3645_v44 = vunpack.c.l.b16 %v3577_v24  ;;  %v3646_v32 = vunpack.c.h.b16 %v3577_v24  ;;  %v7606_v24 = vld [vmem:[#allocation9 + $0x170] sm:$0xf0]  ;;  %v7605_v18 = vor.u32 %v8658_v47, %v7604_v1  ;;  %v7677_v47 = vor.u32 %v8675_v11, %v7676_v10  ;;  %v8657_v10 = vld [vmem:[#allocation9 + $0x16c] sm:$0xf]  ;;  %v7614_v11 = vld [vmem:[#allocation9 + $0x178] sm:$0xf0] }
 0x433   :  { %v9898_v38 = vpack.c.b16 %v3645_v44, %v3643_v60  ;;  %v9900_v37 = vpack.c.b16 %v3646_v32, %v3644_v33  ;;  %v8622_v60 = vld [vmem:[#allocation9 + $0x4c] sm:$0xf0]  ;;  %v7481_v44 = vor.u32 %v8624_v27, %v7478_v35  ;;  %v7609_v33 = vor.u32 %v8656_v4, %v7606_v24  ;;  %v7588_v32 = vld [vmem:[#allocation9 + $0x140] sm:$0xf]  ;;  %v7422_v35 = vld [vmem:[#allocation3 + $0x10] sm:$0xf0] }
 0x434   :  { %v7461_v29 = vor.u32 %v8622_v60, %v7460_v0  ;;  %v7420_v27 = vld [vmem:[#allocation3] sm:$0xf]  ;;  %v7532_v4 = vld [vmem:[#allocation9 + $0xc8] sm:$0xf]  ;;  %v8639_v24 = vld [vmem:[#allocation9 + $0xd4] sm:$0xf0] }
 0x435   :  { %3979 = vmatmul.bf16.vlgmr.msrb.gmra.mxu0 %v9898_v38  ;;  %3993 = vmatmul.bf16.vlgmr.msrb.gmra.mxu1 %v9900_v37  ;;  %v7660_v0 = vld [vmem:[#allocation9 + $0x1c8] sm:$0xf]  ;;  %v8671_v60 = vld [vmem:[#allocation9 + $0x1d4] sm:$0xf0] }
 0x436   :  { %4007 = vmatmul.bf16.vlgmr.msra.gmra.mxu2 %v9898_v38  ;;  %4021 = vmatmul.bf16.vlgmr.msrb.gmra.mxu3 %v9900_v37 }
 0x437   :  { %4413 = vmatpush.bf16.msrb.mxu0 %v7541_v50  ;;  %4427 = vmatpush.bf16.msrb.mxu1 %v7669_v31  ;;  %v8652_v50 = vld [vmem:[#allocation9 + $0x144] sm:$0xf]  ;;  %v7590_v31 = vld [vmem:[#allocation9 + $0x150] sm:$0xf0] }
 0x438   :  { %4441 = vmatpush.bf16.msra.mxu2 %v7545_v57  ;;  %4455 = vmatpush.bf16.msrb.mxu3 %v7673_v2  ;;  %v7589_v57 = vor.u32 %v8654_v42, %v7588_v32  ;;  %v8618_v2 = vld [vmem:[#allocation9 + $0x2c] sm:$0xf0]  ;;  %v7593_v23 = vor.u32 %v8652_v50, %v7590_v31  ;;  %v8669_v32 = vld [vmem:[#allocation9 + $0x1cc] sm:$0xf]  ;;  %v7662_v42 = vld [vmem:[#allocation9 + $0x1d8] sm:$0xf0]  ;;  %v9922_v50 = vor.u32 %v8610_v6, %v7422_v35 }
 0x439   :  { %v7445_v19 = vor.u32 %v8618_v2, %v7444_v63  ;;  %v7533_v31 = vor.u32 %v8639_v24, %v7532_v4  ;;  %v7661_v63 = vor.u32 %v8671_v60, %v7660_v0  ;;  %v7665_v54 = vor.u32 %v8669_v32, %v7662_v42  ;;  %v7452_v24 = vld [vmem:[#allocation9 + $0x28] sm:$0xf]  ;;  %v7454_v32 = vld [vmem:[#allocation9 + $0x38] sm:$0xf0]  ;;  %v8649_v42 = vld [vmem:[#allocation9 + $0x12c] sm:$0xf] }
 0x43a   :  { %v7580_v60 = vld [vmem:[#allocation9 + $0x128] sm:$0xf]  ;;  %v7582_v6 = vld [vmem:[#allocation9 + $0x138] sm:$0xf0] }
 0x43b   :  { %4414 = vmatpush.bf16.msrb.mxu0 %v7525_v40  ;;  %4428 = vmatpush.bf16.msrb.mxu1 %v7653_v17  ;;  %v8616_v40 = vld [vmem:[#allocation9 + $0x24] sm:$0xf] }
 0x43c   :  { %4442 = vmatpush.bf16.msra.mxu2 %v7529_v39  ;;  %4456 = vmatpush.bf16.msrb.mxu3 %v7657_v3  ;;  %v8648_v17 = vld [vmem:[#allocation9 + $0x124] sm:$0xf]  ;;  %v4600_v39 = vunpack.c.l.b16 %v9894_v48  ;;  %v4602_v3 = vunpack.c.l.b16 %v4534_v9  ;;  %v7558_v48 = vld [vmem:[#allocation9 + $0x110] sm:$0xf0]  ;;  %v8631_v9 = vld [vmem:[#allocation9 + $0x94] sm:$0xf0] }
 0x43e   :  { %v9916_v15 = vpack.c.b16 %v4602_v3, %v4600_v39  ;;  %v7628_v3 = vld [vmem:[#allocation9 + $0x188] sm:$0xf] }
 0x43f   :  { %4415 = vmatpush.bf16.msrb.mxu0 %v7509_v34  ;;  %4429 = vmatpush.bf16.msrb.mxu1 %v7637_v56  ;;  %v7430_v56 = vld [vmem:[#allocation9 + $0x10] sm:$0xf0] }
 0x440   :  { %4443 = vmatpush.bf16.msra.mxu2 %v7513_v14  ;;  %4457 = vmatpush.bf16.msrb.mxu3 %v7641_v22  ;;  %v9918_v14 = vpack.c.b16 %v4603_v36, %v4601_v41  ;;  %v7548_v22 = vld [vmem:[#allocation9 + $0xe8] sm:$0xf]  ;;  %v7433_v8 = vor.u32 %v8612_v53, %v7430_v56  ;;  %v8663_v41 = vld [vmem:[#allocation9 + $0x194] sm:$0xf0]  ;;  %v8629_v36 = vld [vmem:[#allocation9 + $0x8c] sm:$0xf] }
 0x441   :  { %v7549_v1 = vor.u32 %v8643_v28, %v7548_v22  ;;  %v7629_v30 = vor.u32 %v8663_v41, %v7628_v3  ;;  %v8625_v22 = vld [vmem:[#allocation9 + $0x6c] sm:$0xf]  ;;  %v7486_v28 = vld [vmem:[#allocation9 + $0x78] sm:$0xf0]  ;;  %v7800_v41 = vld [vmem:[#allocation9 + $0x4f0] sm:$0xf0] }
 0x443   :  { %4416 = vmatpush.bf16.msrb.mxu0 %v7493_v62  ;;  %4430 = vmatpush.bf16.msrb.mxu1 %v7621_v52  ;;  %v7550_v62 = vld [vmem:[#allocation9 + $0xf8] sm:$0xf0]  ;;  %v8673_v52 = vld [vmem:[#allocation9 + $0x1ec] sm:$0xf] }
 0x444   :  { %4444 = vmatpush.bf16.msra.mxu2 %v7497_v45  ;;  %4458 = vmatpush.bf16.msrb.mxu3 %v7625_v25  ;;  %v7561_v45 = vor.u32 %v8644_v49, %v7558_v48  ;;  %v8611_v25 = vld [vmem:[#allocation3 + $0xc] sm:$0xf0]  ;;  %v7612_v49 = vld [vmem:[#allocation9 + $0x168] sm:$0xf]  ;;  %v8659_v48 = vld [vmem:[#allocation9 + $0x174] sm:$0xf0] }
 0x445   :  { %4035 = vmatmul.bf16.vlgmr.msra.gmra.mxu0 %v9898_v38  ;;  %4049 = vmatmul.bf16.vlgmr.msra.gmra.mxu1 %v9900_v37  ;;  %v9920_v61 = vor.u32 %v8611_v25, %v7420_v27  ;;  %v8621_v25 = vld [vmem:[#allocation9 + $0x4c] sm:$0xf]  ;;  %v7598_v27 = vld [vmem:[#allocation9 + $0x158] sm:$0xf0] }
 0x446   :  { %4063 = vmatmul.bf16.vlgmr.msrb.gmra.mxu2 %v9898_v38  ;;  %4077 = vmatmul.bf16.vlgmr.msra.gmra.mxu3 %v9900_v37  ;;  %v7446_v38 = vld [vmem:[#allocation9 + $0x30] sm:$0xf0] }
 0x447   :  { %4417 = vmatpush.bf16.msrb.mxu0 %v7477_v59  ;;  %4431 = vmatpush.bf16.msrb.mxu1 %v7605_v18  ;;  %v7574_v37 = vld [vmem:[#allocation9 + $0x130] sm:$0xf0]  ;;  %v7449_v26 = vor.u32 %v8616_v40, %v7446_v38  ;;  %v7553_v59 = vor.u32 %v8641_v13, %v7550_v62  ;;  %v7681_v18 = vor.u32 %v8673_v52, %v7678_v5  ;;  %v7646_v40 = vld [vmem:[#allocation9 + $0x1b8] sm:$0xf0]  ;;  %v8623_v62 = vld [vmem:[#allocation9 + $0x54] sm:$0xf0] }
 0x448   :  { %4445 = vmatpush.bf16.msra.mxu2 %v7481_v44  ;;  %4459 = vmatpush.bf16.msrb.mxu3 %v7609_v33  ;;  %v7577_v34 = vor.u32 %v8648_v17, %v7574_v37  ;;  %v8637_v44 = vld [vmem:[#allocation9 + $0xcc] sm:$0xf]  ;;  %v7534_v33 = vld [vmem:[#allocation9 + $0xd8] sm:$0xf0]  ;;  %v7645_v17 = vor.u32 %v8667_v12, %v7644_v16  ;;  %v7500_v37 = vld [vmem:[#allocation9 + $0x88] sm:$0xf]  ;;  %v7649_v39 = vor.u32 %v8665_v58, %v7646_v40 }
 0x449   :  { %v7537_v2 = vor.u32 %v8637_v44, %v7534_v33  ;;  %v7501_v55 = vor.u32 %v8631_v9, %v7500_v37  ;;  %v7489_v52 = vor.u32 %v8625_v22, %v7486_v28  ;;  %v7617_v5 = vor.u32 %v8657_v10, %v7614_v11  ;;  %v8651_v44 = vld [vmem:[#allocation9 + $0x134] sm:$0xf0]  ;;  %v8617_v33 = vld [vmem:[#allocation9 + $0x2c] sm:$0xf]  ;;  %v7566_v40 = vld [vmem:[#allocation9 + $0x118] sm:$0xf0] }
 0x44a   :  { %v7457_v16 = vor.u32 %v8617_v33, %v7454_v32  ;;  %v7585_v12 = vor.u32 %v8649_v42, %v7582_v6  ;;  %v8645_v58 = vld [vmem:[#allocation9 + $0x10c] sm:$0xf]  ;;  %v7926_v37 = vld [vmem:[#allocation9 + $0x5e0] sm:$0xf]  ;;  %v8802_v9 = vld [vmem:[#allocation9 + $0x5ec] sm:$0xf0] }
 0x44b   :  { %4418 = vmatpush.bf16.msrb.mxu0 %v7461_v29  ;;  %4432 = vmatpush.bf16.msrb.mxu1 %v7589_v57  ;;  %v7516_v29 = vld [vmem:[#allocation9 + $0xa8] sm:$0xf]  ;;  %v8635_v57 = vld [vmem:[#allocation9 + $0xb4] sm:$0xf0]  ;;  %v8764_v22 = vld [vmem:[#allocation9 + $0x4c4] sm:$0xf] }
 0x44c   :  { %4446 = vmatpush.bf16.msra.mxu2 %v7465_v43  ;;  %4460 = vmatpush.bf16.msrb.mxu3 %v7593_v23  ;;  %v8633_v43 = vld [vmem:[#allocation9 + $0xac] sm:$0xf]  ;;  %v7518_v23 = vld [vmem:[#allocation9 + $0xb8] sm:$0xf0]  ;;  %v7517_v38 = vor.u32 %v8635_v57, %v7516_v29  ;;  %v7581_v29 = vor.u32 %v8651_v44, %v7580_v60  ;;  %v8615_v57 = vld [vmem:[#allocation9 + $0x14] sm:$0xf0] }
 0x44d   :  { %v7521_v51 = vor.u32 %v8633_v43, %v7518_v23  ;;  %v8613_v43 = vld [vmem:[#allocation9 + $0xc] sm:$0xf]  ;;  %v7438_v23 = vld [vmem:[#allocation9 + $0x18] sm:$0xf0]  ;;  %v7784_v28 = vld [vmem:[#allocation9 + $0x4d0] sm:$0xf0] }
 0x44e   :  { %v8796_v10 = vld [vmem:[#allocation9 + $0x5c4] sm:$0xf]  ;;  %v7912_v11 = vld [vmem:[#allocation9 + $0x5d0] sm:$0xf0]  ;;  %v7878_v60 = vld [vmem:[#allocation9 + $0x580] sm:$0xf] }
 0x44f   :  { %4419 = vmatpush.bf16.msrb.mxu0 %v7445_v19  ;;  %4433 = vmatpush.bf16.msrb.mxu1 %v7573_v20  ;;  %v7502_v19 = vld [vmem:[#allocation9 + $0x98] sm:$0xf0]  ;;  %v8661_v20 = vld [vmem:[#allocation9 + $0x18c] sm:$0xf]  ;;  %v8790_v44 = vld [vmem:[#allocation9 + $0x58c] sm:$0xf0] }
 0x450   :  { %4447 = vmatpush.bf16.msra.mxu2 %v7449_v26  ;;  %4461 = vmatpush.bf16.msrb.mxu3 %v7577_v34  ;;  %v7630_v26 = vld [vmem:[#allocation9 + $0x198] sm:$0xf0]  ;;  %v8627_v34 = vld [vmem:[#allocation9 + $0x74] sm:$0xf0]  ;;  %v7505_v53 = vor.u32 %v8629_v36, %v7502_v19  ;;  %v8800_v36 = vld [vmem:[#allocation9 + $0x5e4] sm:$0xf] }
 0x451   :  { %v7633_v56 = vor.u32 %v8661_v20, %v7630_v26  ;;  %v7485_v13 = vor.u32 %v8627_v34, %v7484_v7  ;;  %v7928_v19 = vld [vmem:[#allocation9 + $0x5f0] sm:$0xf0]  ;;  %v7441_v20 = vor.u32 %v8613_v43, %v7438_v23  ;;  %v7569_v26 = vor.u32 %v8645_v58, %v7566_v40  ;;  %v7782_v7 = vld [vmem:[#allocation9 + $0x4c0] sm:$0xf]  ;;  %v8766_v34 = vld [vmem:[#allocation9 + $0x4cc] sm:$0xf0] }
 0x452   :  { %v8756_v33 = vld [vmem:[#allocation9 + $0x484] sm:$0xf]  ;;  %v7752_v32 = vld [vmem:[#allocation9 + $0x490] sm:$0xf0] }
 0x453   :  { %4420 = vmatpush.bf16.msrb.mxu0 %v7429_v21  ;;  %4434 = vmatpush.bf16.msrb.mxu1 %v7557_v46  ;;  %v7613_v21 = vor.u32 %v8659_v48, %v7612_v49  ;;  %v7468_v46 = vld [vmem:[#allocation9 + $0x48] sm:$0xf]  ;;  %v7910_v49 = vld [vmem:[#allocation9 + $0x5c0] sm:$0xf]  ;;  %v8798_v48 = vld [vmem:[#allocation9 + $0x5cc] sm:$0xf0] }
 0x454   :  { %4448 = vmatpush.bf16.msra.mxu2 %v7433_v8  ;;  %4462 = vmatpush.bf16.msrb.mxu3 %v7561_v45  ;;  %v7596_v8 = vld [vmem:[#allocation9 + $0x148] sm:$0xf]  ;;  %v8655_v45 = vld [vmem:[#allocation9 + $0x154] sm:$0xf0]  ;;  %v7469_v35 = vor.u32 %v8623_v62, %v7468_v46  ;;  %v7766_v46 = vld [vmem:[#allocation9 + $0x4a0] sm:$0xf] }
 0x455   :  { %v7597_v4 = vor.u32 %v8655_v45, %v7596_v8  ;;  %v8762_v62 = vld [vmem:[#allocation9 + $0x4ac] sm:$0xf0]  ;;  %v7894_v8 = vld [vmem:[#allocation9 + $0x5a0] sm:$0xf]  ;;  %v8788_v42 = vld [vmem:[#allocation9 + $0x584] sm:$0xf] }
 0x456   :  { %4421 = vmatmul.bf16.vlgmr.msrb.gmra.mxu0 %v9920_v61  ;;  %4435 = vmatmul.bf16.vlgmr.msrb.gmra.mxu1 %v9922_v50  ;;  %v8794_v45 = vld [vmem:[#allocation9 + $0x5ac] sm:$0xf0]  ;;  %v7880_v6 = vld [vmem:[#allocation9 + $0x590] sm:$0xf0]  ;;  %v8784_v43 = vld [vmem:[#allocation9 + $0x564] sm:$0xf] }
 0x457   :  { %4469 = vmatpush.bf16.msra.mxu0 %v7549_v1  ;;  %4483 = vmatpush.bf16.msra.mxu1 %v7677_v47  ;;  %v7470_v1 = vld [vmem:[#allocation9 + $0x58] sm:$0xf0]  ;;  %v8653_v47 = vld [vmem:[#allocation9 + $0x14c] sm:$0xf]  ;;  %v7864_v23 = vld [vmem:[#allocation9 + $0x570] sm:$0xf0] }
 0x458   :  { %4497 = vmatpush.bf16.msrb.mxu2 %v7553_v59  ;;  %4511 = vmatpush.bf16.msra.mxu3 %v7681_v18  ;;  %v8619_v59 = vld [vmem:[#allocation9 + $0x34] sm:$0xf0]  ;;  %v7473_v18 = vor.u32 %v8621_v25, %v7470_v1  ;;  %v7601_v0 = vor.u32 %v8653_v47, %v7598_v27  ;;  %v8760_v25 = vld [vmem:[#allocation9 + $0x4a4] sm:$0xf]  ;;  %v7768_v1 = vld [vmem:[#allocation9 + $0x4b0] sm:$0xf0] }
 0x459   :  { %4449 = vmatmul.bf16.vlgmr.msra.gmra.mxu2 %v9920_v61  ;;  %4463 = vmatmul.bf16.vlgmr.msrb.gmra.mxu3 %v9922_v50  ;;  %v8792_v47 = vld [vmem:[#allocation9 + $0x5a4] sm:$0xf]  ;;  %v7896_v27 = vld [vmem:[#allocation9 + $0x5b0] sm:$0xf0] }
 0x45b   :  { %4470 = vmatpush.bf16.msra.mxu0 %v7533_v31  ;;  %4484 = vmatpush.bf16.msra.mxu1 %v7661_v63  ;;  %v7436_v31 = vld [vmem:[#allocation9 + $0x8] sm:$0xf]  ;;  %v7453_v63 = vor.u32 %v8619_v59, %v7452_v24  ;;  %v7750_v24 = vld [vmem:[#allocation9 + $0x480] sm:$0xf]  ;;  %v8758_v59 = vld [vmem:[#allocation9 + $0x48c] sm:$0xf0] }
 0x45c   :  { %4498 = vmatpush.bf16.msrb.mxu2 %v7537_v2  ;;  %4512 = vmatpush.bf16.msra.mxu3 %v7665_v54  ;;  %v7564_v2 = vld [vmem:[#allocation9 + $0x108] sm:$0xf]  ;;  %v8647_v54 = vld [vmem:[#allocation9 + $0x114] sm:$0xf0] }
 0x45d   :  { %v7565_v3 = vor.u32 %v8647_v54, %v7564_v2  ;;  %v7862_v2 = vld [vmem:[#allocation9 + $0x560] sm:$0xf]  ;;  %v8786_v54 = vld [vmem:[#allocation9 + $0x56c] sm:$0xf0] }
 0x45e   :  { %v7863_v40 = vor.u32 %v8786_v54, %v7862_v2  ;;  %v8765_v2 = vld [vmem:[#allocation9 + $0x4cc] sm:$0xf]  ;;  %v7792_v54 = vld [vmem:[#allocation9 + $0x4d8] sm:$0xf0] }
 0x45f   :  { %4471 = vmatpush.bf16.msra.mxu0 %v7517_v38  ;;  %4485 = vmatpush.bf16.msra.mxu1 %v7645_v17  ;;  %v7798_v38 = vld [vmem:[#allocation9 + $0x4e0] sm:$0xf]  ;;  %v8770_v17 = vld [vmem:[#allocation9 + $0x4ec] sm:$0xf0] }
 0x460   :  { %4499 = vmatpush.bf16.msrb.mxu2 %v7521_v51  ;;  %4513 = vmatpush.bf16.msra.mxu3 %v7649_v39  ;;  %v8768_v51 = vld [vmem:[#allocation9 + $0x4e4] sm:$0xf]  ;;  %v7437_v39 = vor.u32 %v8615_v57, %v7436_v31  ;;  %v7734_v31 = vld [vmem:[#allocation9 + $0x460] sm:$0xf]  ;;  %v7883_v57 = vor.u32 %v8788_v42, %v7880_v6 }
 0x463   :  { %4472 = vmatpush.bf16.msra.mxu0 %v7501_v55  ;;  %4486 = vmatpush.bf16.msra.mxu1 %v7629_v30  ;;  %v7799_v55 = vor.u32 %v8770_v17, %v7798_v38  ;;  %v7927_v30 = vor.u32 %v8802_v9, %v7926_v37  ;;  %v7718_v38 = vld [vmem:[#allocation9 + $0x440] sm:$0xf]  ;;  %v8750_v17 = vld [vmem:[#allocation9 + $0x44c] sm:$0xf0]  ;;  %v7867_v9 = vor.u32 %v8784_v43, %v7864_v23 }
 0x464   :  { %4500 = vmatpush.bf16.msrb.mxu2 %v7505_v53  ;;  %4514 = vmatpush.bf16.msra.mxu3 %v7633_v56  ;;  %v7803_v53 = vor.u32 %v8768_v51, %v7800_v41  ;;  %v7931_v56 = vor.u32 %v8800_v36, %v7928_v19  ;;  %v7846_v51 = vld [vmem:[#allocation9 + $0x540] sm:$0xf]  ;;  %v7720_v41 = vld [vmem:[#allocation9 + $0x450] sm:$0xf0]  ;;  %v8780_v36 = vld [vmem:[#allocation9 + $0x544] sm:$0xf] }
 0x465   :  { %v7848_v19 = vld [vmem:[#allocation9 + $0x550] sm:$0xf0] }
 0x467   :  { %4473 = vmatpush.bf16.msra.mxu0 %v7485_v13  ;;  %4487 = vmatpush.bf16.msra.mxu1 %v7613_v21  ;;  %v7783_v13 = vor.u32 %v8766_v34, %v7782_v7  ;;  %v7911_v21 = vor.u32 %v8798_v48, %v7910_v49  ;;  %v7851_v34 = vor.u32 %v8780_v36, %v7848_v19  ;;  %v8744_v49 = vld [vmem:[#allocation9 + $0x424] sm:$0xf]  ;;  %v7704_v48 = vld [vmem:[#allocation9 + $0x430] sm:$0xf0] }
 0x468   :  { %4501 = vmatpush.bf16.msrb.mxu2 %v7489_v52  ;;  %4515 = vmatpush.bf16.msra.mxu3 %v7617_v5  ;;  %v7787_v52 = vor.u32 %v8764_v22, %v7784_v28  ;;  %v7915_v5 = vor.u32 %v8796_v10, %v7912_v11  ;;  %v8776_v22 = vld [vmem:[#allocation9 + $0x524] sm:$0xf]  ;;  %v7832_v28 = vld [vmem:[#allocation9 + $0x530] sm:$0xf0]  ;;  %v7686_v10 = vld [vmem:[#allocation9 + $0x400] sm:$0xf] }
 0x46b   :  { %4474 = vmatpush.bf16.msra.mxu0 %v7469_v35  ;;  %4488 = vmatpush.bf16.msra.mxu1 %v7597_v4  ;;  %v7767_v35 = vor.u32 %v8762_v62, %v7766_v46  ;;  %v7895_v4 = vor.u32 %v8794_v45, %v7894_v8  ;;  %v7814_v46 = vld [vmem:[#allocation9 + $0x500] sm:$0xf]  ;;  %v8774_v62 = vld [vmem:[#allocation9 + $0x50c] sm:$0xf0]  ;;  %v8740_v8 = vld [vmem:[#allocation9 + $0x404] sm:$0xf] }
 0x46c   :  { %4502 = vmatpush.bf16.msrb.mxu2 %v7473_v18  ;;  %4516 = vmatpush.bf16.msra.mxu3 %v7601_v0  ;;  %v7771_v18 = vor.u32 %v8760_v25, %v7768_v1  ;;  %v7899_v0 = vor.u32 %v8792_v47, %v7896_v27  ;;  %v7688_v45 = vld [vmem:[#allocation9 + $0x410] sm:$0xf0]  ;;  %v8772_v25 = vld [vmem:[#allocation9 + $0x504] sm:$0xf]  ;;  %v7806_v47 = vld [vmem:[#allocation9 + $0x4e8] sm:$0xf] }
 0x46d   :  { %v7816_v1 = vld [vmem:[#allocation9 + $0x510] sm:$0xf0]  ;;  %v8771_v27 = vld [vmem:[#allocation9 + $0x4f4] sm:$0xf0] }
 0x46e   :  { %v7807_v42 = vor.u32 %v8771_v27, %v7806_v47  ;;  %v7726_v47 = vld [vmem:[#allocation9 + $0x448] sm:$0xf]  ;;  %v8751_v27 = vld [vmem:[#allocation9 + $0x454] sm:$0xf0] }
 0x46f   :  { %4475 = vmatpush.bf16.msra.mxu0 %v7453_v63  ;;  %4489 = vmatpush.bf16.msra.mxu1 %v7581_v29  ;;  %v8754_v63 = vld [vmem:[#allocation9 + $0x46c] sm:$0xf0]  ;;  %v7755_v29 = vor.u32 %v8756_v33, %v7752_v32  ;;  %v7691_v33 = vor.u32 %v8740_v8, %v7688_v45  ;;  %v7819_v32 = vor.u32 %v8772_v25, %v7816_v1  ;;  %v8785_v8 = vld [vmem:[#allocation9 + $0x56c] sm:$0xf]  ;;  %v7872_v45 = vld [vmem:[#allocation9 + $0x578] sm:$0xf0] }
 0x470   :  { %4503 = vmatpush.bf16.msrb.mxu2 %v7457_v16  ;;  %4517 = vmatpush.bf16.msra.mxu3 %v7585_v12  ;;  %v8752_v16 = vld [vmem:[#allocation9 + $0x464] sm:$0xf]  ;;  %v7736_v12 = vld [vmem:[#allocation9 + $0x470] sm:$0xf0]  ;;  %v7735_v58 = vor.u32 %v8754_v63, %v7734_v31 }
 0x471   :  { %v7739_v37 = vor.u32 %v8752_v16, %v7736_v12  ;;  %v8797_v16 = vld [vmem:[#allocation9 + $0x5cc] sm:$0xf]  ;;  %v7920_v12 = vld [vmem:[#allocation9 + $0x5d8] sm:$0xf0] }
 0x473   :  { %4476 = vmatpush.bf16.msra.mxu0 %v7437_v39  ;;  %4490 = vmatpush.bf16.msra.mxu1 %v7565_v3  ;;  %v8782_v39 = vld [vmem:[#allocation9 + $0x54c] sm:$0xf0]  ;;  %v8748_v3 = vld [vmem:[#allocation9 + $0x444] sm:$0xf] }
 0x474   :  { %4504 = vmatpush.bf16.msrb.mxu2 %v7441_v20  ;;  %4518 = vmatpush.bf16.msra.mxu3 %v7569_v26  ;;  %v7719_v20 = vor.u32 %v8750_v17, %v7718_v38  ;;  %v7847_v26 = vor.u32 %v8782_v39, %v7846_v51  ;;  %v7723_v7 = vor.u32 %v8748_v3, %v7720_v41  ;;  %v8761_v51 = vld [vmem:[#allocation9 + $0x4ac] sm:$0xf]  ;;  %v7776_v39 = vld [vmem:[#allocation9 + $0x4b8] sm:$0xf0] }
 0x475   :  { %v7795_v38 = vor.u32 %v8765_v2, %v7792_v54  ;;  %v7923_v17 = vor.u32 %v8797_v16, %v7920_v12  ;;  %v8793_v3 = vld [vmem:[#allocation9 + $0x5ac] sm:$0xf]  ;;  %v7904_v41 = vld [vmem:[#allocation9 + $0x5b8] sm:$0xf0] }
 0x476   :  { %4477 = vmatmul.bf16.vlgmr.msra.gmra.mxu0 %v9920_v61  ;;  %4491 = vmatmul.bf16.vlgmr.msra.gmra.mxu1 %v9922_v50  ;;  %v8777_v2 = vld [vmem:[#allocation9 + $0x52c] sm:$0xf]  ;;  %v7840_v54 = vld [vmem:[#allocation9 + $0x538] sm:$0xf0] }
 0x477   :  { %4928 = vmatpush.bf16.msrb.mxu0 %v7799_v55  ;;  %4942 = vmatpush.bf16.msrb.mxu1 %v7927_v30  ;;  %v7702_v55 = vld [vmem:[#allocation9 + $0x420] sm:$0xf]  ;;  %v8746_v30 = vld [vmem:[#allocation9 + $0x42c] sm:$0xf0] }
 0x478   :  { %4956 = vmatpush.bf16.msra.mxu2 %v7803_v53  ;;  %4970 = vmatpush.bf16.msrb.mxu3 %v7931_v56  ;;  %v7830_v53 = vld [vmem:[#allocation9 + $0x520] sm:$0xf]  ;;  %v8778_v56 = vld [vmem:[#allocation9 + $0x52c] sm:$0xf0]  ;;  %v7703_v11 = vor.u32 %v8746_v30, %v7702_v55  ;;  %v7779_v55 = vor.u32 %v8761_v51, %v7776_v39  ;;  %v7907_v30 = vor.u32 %v8793_v3, %v7904_v41  ;;  %v8773_v51 = vld [vmem:[#allocation9 + $0x50c] sm:$0xf] }
 0x479   :  { %4505 = vmatmul.bf16.vlgmr.msrb.gmra.mxu2 %v9920_v61  ;;  %4519 = vmatmul.bf16.vlgmr.msra.gmra.mxu3 %v9922_v50  ;;  %v7751_v61 = vor.u32 %v8758_v59, %v7750_v24  ;;  %v7879_v50 = vor.u32 %v8790_v44, %v7878_v60  ;;  %v8769_v24 = vld [vmem:[#allocation9 + $0x4ec] sm:$0xf]  ;;  %v7936_v44 = vld [vmem:[#allocation9 + $0x5f8] sm:$0xf0] }
 0x47a   :  { %v8801_v60 = vld [vmem:[#allocation9 + $0x5ec] sm:$0xf]  ;;  %v7824_v39 = vld [vmem:[#allocation9 + $0x518] sm:$0xf0] }
 0x47b   :  { %4929 = vmatpush.bf16.msrb.mxu0 %v7783_v13  ;;  %4943 = vmatpush.bf16.msrb.mxu1 %v7911_v21  ;;  %v7831_v13 = vor.u32 %v8778_v56, %v7830_v53  ;;  %v8742_v21 = vld [vmem:[#allocation9 + $0x40c] sm:$0xf0]  ;;  %v7939_v63 = vor.u32 %v8801_v60, %v7936_v44  ;;  %v8757_v53 = vld [vmem:[#allocation9 + $0x48c] sm:$0xf]  ;;  %v7760_v56 = vld [vmem:[#allocation9 + $0x498] sm:$0xf0] }
 0x47c   :  { %4957 = vmatpush.bf16.msra.mxu2 %v7787_v52  ;;  %4971 = vmatpush.bf16.msrb.mxu3 %v7915_v5  ;;  %v7707_v52 = vor.u32 %v8744_v49, %v7704_v48  ;;  %v7835_v5 = vor.u32 %v8776_v22, %v7832_v28  ;;  %v7687_v59 = vor.u32 %v8742_v21, %v7686_v10  ;;  %v8789_v49 = vld [vmem:[#allocation9 + $0x58c] sm:$0xf]  ;;  %v7888_v48 = vld [vmem:[#allocation9 + $0x598] sm:$0xf0]  ;;  %v7742_v10 = vld [vmem:[#allocation9 + $0x468] sm:$0xf] }
 0x47d   :  { %v7891_v21 = vor.u32 %v8789_v49, %v7888_v48  ;;  %v8781_v60 = vld [vmem:[#allocation9 + $0x54c] sm:$0xf]  ;;  %v7856_v44 = vld [vmem:[#allocation9 + $0x558] sm:$0xf0] }
 0x47f   :  { %4930 = vmatpush.bf16.msrb.mxu0 %v7767_v35  ;;  %4944 = vmatpush.bf16.msrb.mxu1 %v7895_v4  ;;  %v7934_v35 = vld [vmem:[#allocation9 + $0x5e8] sm:$0xf]  ;;  %v8803_v4 = vld [vmem:[#allocation9 + $0x5f4] sm:$0xf0] }
 0x480   :  { %4958 = vmatpush.bf16.msra.mxu2 %v7771_v18  ;;  %4972 = vmatpush.bf16.msrb.mxu3 %v7899_v0  ;;  %v7815_v18 = vor.u32 %v8774_v62, %v7814_v46  ;;  %v7808_v0 = vld [vmem:[#allocation9 + $0x4f8] sm:$0xf0]  ;;  %v7935_v6 = vor.u32 %v8803_v4, %v7934_v35  ;;  %v7870_v46 = vld [vmem:[#allocation9 + $0x568] sm:$0xf]  ;;  %v8787_v62 = vld [vmem:[#allocation9 + $0x574] sm:$0xf0]  ;;  %v7875_v4 = vor.u32 %v8785_v8, %v7872_v45 }
 0x481   :  { %v7811_v31 = vor.u32 %v8769_v24, %v7808_v0  ;;  %v7871_v1 = vor.u32 %v8787_v62, %v7870_v46  ;;  %v7854_v24 = vld [vmem:[#allocation9 + $0x548] sm:$0xf]  ;;  %v7728_v0 = vld [vmem:[#allocation9 + $0x458] sm:$0xf0] }
 0x483   :  { %4931 = vmatpush.bf16.msrb.mxu0 %v7751_v61  ;;  %4945 = vmatpush.bf16.msrb.mxu1 %v7879_v50  ;;  %v7790_v61 = vld [vmem:[#allocation9 + $0x4c8] sm:$0xf]  ;;  %v8767_v50 = vld [vmem:[#allocation9 + $0x4d4] sm:$0xf0] }
 0x484   :  { %4959 = vmatpush.bf16.msra.mxu2 %v7755_v29  ;;  %4973 = vmatpush.bf16.msrb.mxu3 %v7883_v57  ;;  %v7918_v29 = vld [vmem:[#allocation9 + $0x5c8] sm:$0xf]  ;;  %v8799_v57 = vld [vmem:[#allocation9 + $0x5d4] sm:$0xf0]  ;;  %v7791_v43 = vor.u32 %v8767_v50, %v7790_v61  ;;  %v7859_v50 = vor.u32 %v8781_v60, %v7856_v44 }
 0x485   :  { %v7919_v23 = vor.u32 %v8799_v57, %v7918_v29  ;;  %v8745_v29 = vld [vmem:[#allocation9 + $0x42c] sm:$0xf]  ;;  %v7712_v57 = vld [vmem:[#allocation9 + $0x438] sm:$0xf0] }
 0x487   :  { %4932 = vmatpush.bf16.msrb.mxu0 %v7735_v58  ;;  %4946 = vmatpush.bf16.msrb.mxu1 %v7863_v40  ;;  %v7774_v58 = vld [vmem:[#allocation9 + $0x4a8] sm:$0xf]  ;;  %v8763_v40 = vld [vmem:[#allocation9 + $0x4b4] sm:$0xf0] }
 0x488   :  { %4960 = vmatpush.bf16.msra.mxu2 %v7739_v37  ;;  %4974 = vmatpush.bf16.msrb.mxu3 %v7867_v9  ;;  %v7902_v37 = vld [vmem:[#allocation9 + $0x5a8] sm:$0xf]  ;;  %v8795_v9 = vld [vmem:[#allocation9 + $0x5b4] sm:$0xf0]  ;;  %v7775_v36 = vor.u32 %v8763_v40, %v7774_v58  ;;  %v7715_v58 = vor.u32 %v8745_v29, %v7712_v57  ;;  %v7843_v40 = vor.u32 %v8777_v2, %v7840_v54  ;;  %v9953_v2 = vld [vmem:[%s10200_s6] sm:$0xf] }
 0x489   :  { %v7903_v19 = vor.u32 %v8795_v9, %v7902_v37  ;;  %v8741_v37 = vld [vmem:[#allocation9 + $0x40c] sm:$0xf]  ;;  %v7696_v9 = vld [vmem:[#allocation9 + $0x418] sm:$0xf0] }
 0x48b   :  { %4933 = vmatpush.bf16.msrb.mxu0 %v7719_v20  ;;  %4947 = vmatpush.bf16.msrb.mxu1 %v7847_v26  ;;  %v7758_v20 = vld [vmem:[#allocation9 + $0x488] sm:$0xf]  ;;  %v8759_v26 = vld [vmem:[#allocation9 + $0x494] sm:$0xf0] }
 0x48c   :  { %4961 = vmatpush.bf16.msra.mxu2 %v7723_v7  ;;  %4975 = vmatpush.bf16.msrb.mxu3 %v7851_v34  ;;  %v7886_v7 = vld [vmem:[#allocation9 + $0x588] sm:$0xf]  ;;  %v8791_v34 = vld [vmem:[#allocation9 + $0x594] sm:$0xf0]  ;;  %v7759_v22 = vor.u32 %v8759_v26, %v7758_v20 }
 0x48d   :  { %v7887_v28 = vor.u32 %v8791_v34, %v7886_v7 }
 0x48f   :  { %4934 = vmatpush.bf16.msrb.mxu0 %v7703_v11  ;;  %4948 = vmatpush.bf16.msrb.mxu1 %v7831_v13  ;;  %v8755_v11 = vld [vmem:[#allocation9 + $0x474] sm:$0xf0]  ;;  %v7763_v13 = vor.u32 %v8757_v53, %v7760_v56 }
 0x490   :  { %4962 = vmatpush.bf16.msra.mxu2 %v7707_v52  ;;  %4976 = vmatpush.bf16.msrb.mxu3 %v7835_v5  ;;  %v8753_v52 = vld [vmem:[#allocation9 + $0x46c] sm:$0xf]  ;;  %v7744_v5 = vld [vmem:[#allocation9 + $0x478] sm:$0xf0]  ;;  %v7743_v25 = vor.u32 %v8755_v11, %v7742_v10 }
 0x491   :  { %v7747_v35 = vor.u32 %v8753_v52, %v7744_v5 }
 0x493   :  { %4935 = vmatpush.bf16.msrb.mxu0 %v7687_v59  ;;  %4949 = vmatpush.bf16.msrb.mxu1 %v7815_v18  ;;  %v8783_v59 = vld [vmem:[#allocation9 + $0x554] sm:$0xf0]  ;;  %v8749_v18 = vld [vmem:[#allocation9 + $0x44c] sm:$0xf] }
 0x494   :  { %4963 = vmatpush.bf16.msra.mxu2 %v7691_v33  ;;  %4977 = vmatpush.bf16.msrb.mxu3 %v7819_v32  ;;  %v7727_v33 = vor.u32 %v8751_v27, %v7726_v47  ;;  %v7855_v32 = vor.u32 %v8783_v59, %v7854_v24  ;;  %v7731_v61 = vor.u32 %v8749_v18, %v7728_v0 }
 0x496   :  { %4936 = vmatmul.bf16.vlgmr.msrb.gmra.mxu0 %v9916_v15  ;;  %4950 = vmatmul.bf16.vlgmr.msrb.gmra.mxu1 %v9918_v14 }
 0x497   :  { %4984 = vmatpush.bf16.msra.mxu0 %v7807_v42  ;;  %4998 = vmatpush.bf16.msra.mxu1 %v7935_v6  ;;  %v7710_v42 = vld [vmem:[#allocation9 + $0x428] sm:$0xf]  ;;  %v8747_v6 = vld [vmem:[#allocation9 + $0x434] sm:$0xf0] }
 0x498   :  { %5012 = vmatpush.bf16.msrb.mxu2 %v7811_v31  ;;  %5026 = vmatpush.bf16.msra.mxu3 %v7939_v63  ;;  %v7838_v31 = vld [vmem:[#allocation9 + $0x528] sm:$0xf]  ;;  %v8779_v63 = vld [vmem:[#allocation9 + $0x534] sm:$0xf0]  ;;  %v7711_v16 = vor.u32 %v8747_v6, %v7710_v42 }
 0x499   :  { %4964 = vmatmul.bf16.vlgmr.msra.gmra.mxu2 %v9916_v15  ;;  %4978 = vmatmul.bf16.vlgmr.msrb.gmra.mxu3 %v9918_v14  ;;  %v7839_v12 = vor.u32 %v8779_v63, %v7838_v31 }
 0x49b   :  { %4985 = vmatpush.bf16.msra.mxu0 %v7791_v43  ;;  %4999 = vmatpush.bf16.msra.mxu1 %v7919_v23  ;;  %v7694_v43 = vld [vmem:[#allocation9 + $0x408] sm:$0xf]  ;;  %v8743_v23 = vld [vmem:[#allocation9 + $0x414] sm:$0xf0] }
 0x49c   :  { %5013 = vmatpush.bf16.msrb.mxu2 %v7795_v38  ;;  %5027 = vmatpush.bf16.msra.mxu3 %v7923_v17  ;;  %v7822_v38 = vld [vmem:[#allocation9 + $0x508] sm:$0xf]  ;;  %v8775_v17 = vld [vmem:[#allocation9 + $0x514] sm:$0xf0]  ;;  %v7695_v3 = vor.u32 %v8743_v23, %v7694_v43  ;;  %v5050_v43 = vperm.slane %v9953_v2, 0 }
 0x49d   :  { %v7823_v41 = vor.u32 %v8775_v17, %v7822_v38 }
 0x49f   :  { %4986 = vmatpush.bf16.msra.mxu0 %v7775_v36  ;;  %5000 = vmatpush.bf16.msra.mxu1 %v7903_v19  ;;  %v7699_v36 = vor.u32 %v8741_v37, %v7696_v9  ;;  %v7827_v19 = vor.u32 %v8773_v51, %v7824_v39  ;;  %v5052_v39 = vperm.slane %v9953_v2, 2 }
 0x4a0   :  { %5014 = vmatpush.bf16.msrb.mxu2 %v7779_v55  ;;  %5028 = vmatpush.bf16.msra.mxu3 %v7907_v30 }
 0x4a3   :  { %4987 = vmatpush.bf16.msra.mxu0 %v7759_v22  ;;  %5001 = vmatpush.bf16.msra.mxu1 %v7887_v28 }
 0x4a4   :  { %5015 = vmatpush.bf16.msrb.mxu2 %v7763_v13  ;;  %5029 = vmatpush.bf16.msra.mxu3 %v7891_v21 }
 0x4a7   :  { %4988 = vmatpush.bf16.msra.mxu0 %v7743_v25  ;;  %5002 = vmatpush.bf16.msra.mxu1 %v7871_v1 }
 0x4a8   :  { %5016 = vmatpush.bf16.msrb.mxu2 %v7747_v35  ;;  %5030 = vmatpush.bf16.msra.mxu3 %v7875_v4 }
 0x4ab   :  { %4989 = vmatpush.bf16.msra.mxu0 %v7727_v33  ;;  %5003 = vmatpush.bf16.msra.mxu1 %v7855_v32 }
 0x4ac   :  { %5017 = vmatpush.bf16.msrb.mxu2 %v7731_v61  ;;  %5031 = vmatpush.bf16.msra.mxu3 %v7859_v50 }
 0x4af   :  { %4990 = vmatpush.bf16.msra.mxu0 %v7711_v16  ;;  %5004 = vmatpush.bf16.msra.mxu1 %v7839_v12 }
 0x4b0   :  { %5018 = vmatpush.bf16.msrb.mxu2 %v7715_v58  ;;  %5032 = vmatpush.bf16.msra.mxu3 %v7843_v40 }
 0x4b2   :  { %v3980_v20 = vpop.f32.mrf.mxu0  ;;  %v3994_v26 = vpop.f32.mrf.mxu1 }
 0x4b3   :  { %4991 = vmatpush.bf16.msra.mxu0 %v7695_v3  ;;  %5005 = vmatpush.bf16.msra.mxu1 %v7823_v41  ;;  %v3995_v55 = vadd.f32 %v3994_v26, %v3980_v20 }
 0x4b4   :  { %5019 = vmatpush.bf16.msrb.mxu2 %v7699_v36  ;;  %5033 = vmatpush.bf16.msra.mxu3 %v7827_v19 }
 0x4b6   :  { %4992 = vmatmul.bf16.vlgmr.msra.gmra.mxu0 %v9916_v15  ;;  %5006 = vmatmul.bf16.vlgmr.msra.gmra.mxu1 %v9918_v14 }
 0x4b7   :  { %5020 = vmatmul.bf16.vlgmr.msrb.gmra.mxu2 %v9916_v15  ;;  %5034 = vmatmul.bf16.vlgmr.msra.gmra.mxu3 %v9918_v14 }
 0x4b9   :  { %v4008_v30 = vpop.f32.mrf.mxu2  ;;  %v4022_v7 = vpop.f32.mrf.mxu3 }
 0x4ba   :  { %v4023_v34 = vadd.f32 %v4022_v7, %v4008_v30  ;;  %v3982_v53 = vpop.f32.mrf.mxu0  ;;  %v3996_v56 = vpop.f32.mrf.mxu1 }
 0x4bb   :  { %v3997_v49 = vadd.f32 %v3996_v56, %v3982_v53 }
 0x4c1   :  { %v4010_v48 = vpop.f32.mrf.mxu2  ;;  %v4024_v22 = vpop.f32.mrf.mxu3 }
 0x4c2   :  { %v9940_v28 = vadd.f32 %v4024_v22, %v4010_v48  ;;  %v4036_v10 = vpop.f32.mrf.mxu0  ;;  %v4050_v11 = vpop.f32.mrf.mxu1 }
 0x4c3   :  { %v4051_v13 = vadd.f32 %v4050_v11, %v4036_v10 }
 0x4c9   :  { %v4064_v21 = vpop.f32.mrf.mxu2  ;;  %v4078_v15 = vpop.f32.mrf.mxu3 }
 0x4ca   :  { %v4079_v46 = vadd.f32 %v4078_v15, %v4064_v21  ;;  %v4038_v14 = vpop.f32.mrf.mxu0  ;;  %v4052_v62 = vpop.f32.mrf.mxu1 }
 0x4cb   :  { %v4053_v41 = vadd.f32 %v4052_v62, %v4038_v14  ;;  %v5053_v14 = vperm.slane %v9953_v2, 3 }
 0x4d1   :  { %v9942_v52 = vpop.f32.mrf.mxu2  ;;  %v9944_v5 = vpop.f32.mrf.mxu3 }
 0x4d3   :  { %v4422_v8 = vpop.f32.mrf.mxu0  ;;  %v4436_v45 = vpop.f32.mrf.mxu1 }
 0x4d4   :  { %v4423_v29 = vadd.f32 %v4422_v8, %v3995_v55 }
 0x4d6   :  { %v4437_v54 = vadd.f32 %v4436_v45, %v4423_v29 }
 0x4db   :  { %v4424_v47 = vpop.f32.mrf.mxu0  ;;  %v4438_v27 = vpop.f32.mrf.mxu1 }
 0x4dc   :  { %v4450_v25 = vpop.f32.mrf.mxu2  ;;  %v4464_v1 = vpop.f32.mrf.mxu3  ;;  %v4425_v37 = vadd.f32 %v4424_v47, %v3997_v49 }
 0x4dd   :  { %v4451_v40 = vadd.f32 %v4450_v25, %v4023_v34  ;;  %v5051_v34 = vperm.slane %v9953_v2, 1 }
 0x4de   :  { %v4439_v30 = vadd.f32 %v4438_v27, %v4425_v37  ;;  %v8809_v37 = vld [vmem:[%s10201_s7 + $0x28] sm:$0xff] }
 0x4df   :  { %v4465_v26 = vadd.f32 %v4464_v1, %v4451_v40  ;;  %v4081_v1 = vadd.f32 %v9944_v5, %v9942_v52 }
 0x4e4   :  { %v4452_v35 = vpop.f32.mrf.mxu2  ;;  %v9946_v4 = vpop.f32.mrf.mxu3 }
 0x4f3   :  { %v4478_v24 = vpop.f32.mrf.mxu0  ;;  %v4492_v59 = vpop.f32.mrf.mxu1 }
 0x4f4   :  { %v4479_v16 = vadd.f32 %v4478_v24, %v4051_v13  ;;  %v4453_v13 = vadd.f32 %v4452_v35, %v9940_v28 }
 0x4f6   :  { %v4493_v9 = vadd.f32 %v4492_v59, %v4479_v16 }
 0x4fb   :  { %v4480_v60 = vpop.f32.mrf.mxu0  ;;  %v4494_v44 = vpop.f32.mrf.mxu1 }
 0x4fc   :  { %v4506_v18 = vpop.f32.mrf.mxu2  ;;  %v4520_v0 = vpop.f32.mrf.mxu3  ;;  %v4481_v7 = vadd.f32 %v4480_v60, %v4053_v41  ;;  %v4467_v60 = vadd.f32 %v9946_v4, %v4453_v13  ;;  %v8811_v4 = vld [vmem:[%s10201_s7 + $0x38] sm:$0xff] }
 0x4fd   :  { %v4507_v55 = vadd.f32 %v4506_v18, %v4079_v46  ;;  %v8807_v41 = vld [vmem:[%s10201_s7 + $0x18] sm:$0xff] }
 0x4fe   :  { %v4495_v46 = vadd.f32 %v4494_v44, %v4481_v7  ;;  %v8812_v7 = vld [vmem:[%s10201_s7 + $0x40] sm:$0xff]  ;;  %v8827_v13 = vld [vmem:[%s10201_s7 + $0xb8] sm:$0xff] }
 0x4ff   :  { %v4521_v21 = vadd.f32 %v4520_v0, %v4507_v55  ;;  %v8813_v55 = vld [vmem:[%s10201_s7 + $0x48] sm:$0xff] }
 0x504   :  { %v4508_v33 = vpop.f32.mrf.mxu2  ;;  %v9948_v32 = vpop.f32.mrf.mxu3 }
 0x505   :  { %v4509_v28 = vadd.f32 %v4508_v33, %v4081_v1  ;;  %v8825_v1 = vld [vmem:[%s10201_s7 + $0xa8] sm:$0xff] }
 0x507   :  { %v4523_v29 = vadd.f32 %v9948_v32, %v4509_v28  ;;  %v5080_v32 = vld [vmem:[%s10205_s11] sm:$0xf] }
 0x508   :  { %v8832_v28 = vld [vmem:[%s10201_s7 + $0xe0] sm:$0xff] }
 0x513   :  { %v4937_v42 = vpop.f32.mrf.mxu0  ;;  %v4951_v6 = vpop.f32.mrf.mxu1 }
 0x514   :  { %v4952_v57 = vadd.f32 %v4951_v6, %v4937_v42 }
 0x516   :  { %v5040_v12 = vadd.f32 %v4952_v57, %v4437_v54 }
 0x518   :  { %v5058_v36 = vadd.f32 %v5050_v43, %v5040_v12  ;;  %v7942_v12 = vld [vmem:[%s10205_s11 + $0x4] sm:$0xf] }
 0x51a   :  { %v5066_v48 = vmax.f32 %v5058_v36, 0.0  ;;  %v8815_v36 = vld [vmem:[%s10201_s7 + $0x58] sm:$0xff] }
 0x51b   :  { %v4939_v31 = vpop.f32.mrf.mxu0  ;;  %v4953_v63 = vpop.f32.mrf.mxu1 }
 0x51c   :  { %v4965_v61 = vpop.f32.mrf.mxu2  ;;  %v4979_v50 = vpop.f32.mrf.mxu3  ;;  %v4954_v19 = vadd.f32 %v4953_v63, %v4939_v31 }
 0x51d   :  { %v4980_v3 = vadd.f32 %v4979_v50, %v4965_v61 }
 0x51e   :  { %v5044_v22 = vadd.f32 %v4954_v19, %v4439_v30  ;;  %v8806_v19 = vld [vmem:[%s10201_s7 + $0x10] sm:$0xff]  ;;  %v8804_v30 = vld [vmem:[%s10201_s7] sm:$0xff] }
 0x51f   :  { %v5041_v56 = vadd.f32 %v4980_v3, %v4465_v26  ;;  %v8816_v3 = vld [vmem:[%s10201_s7 + $0x60] sm:$0xff]  ;;  %v8805_v26 = vld [vmem:[%s10201_s7 + $0x8] sm:$0xff] }
 0x520   :  { %v5062_v59 = vadd.f32 %v5050_v43, %v5044_v22 }
 0x521   :  { %v5059_v47 = vadd.f32 %v5051_v34, %v5041_v56 }
 0x522   :  { %v5070_v50 = vmax.f32 %v5062_v59, 0.0  ;;  %v8833_v59 = vld [vmem:[%s10201_s7 + $0xe8] sm:$0xff] }
 0x523   :  { %v5067_v42 = vmax.f32 %v5059_v47, 0.0 }
 0x524   :  { %v4967_v23 = vpop.f32.mrf.mxu2  ;;  %v4981_v58 = vpop.f32.mrf.mxu3 }
 0x525   :  { %v4982_v27 = vadd.f32 %v4981_v58, %v4967_v23  ;;  %v8810_v58 = vld [vmem:[%s10201_s7 + $0x30] sm:$0xff] }
 0x527   :  { %v5045_v6 = vadd.f32 %v4982_v27, %v4467_v60  ;;  %v8834_v27 = vld [vmem:[%s10201_s7 + $0xf0] sm:$0xff]  ;;  %v8011_v60 = vld [vmem:[%s10206_s12 + $0x1] sm:$0x1] }
 0x529   :  { %v5063_v2 = vadd.f32 %v5051_v34, %v5045_v6  ;;  %v8830_v6 = vld [vmem:[%s10201_s7 + $0xd0] sm:$0xff] }
 0x52b   :  { %v5071_v43 = vmax.f32 %v5063_v2, 0.0  ;;  %v8851_v2 = vld [vmem:[%s10201_s7 + $0x178] sm:$0xff] }
 0x533   :  { %v4993_v38 = vpop.f32.mrf.mxu0  ;;  %v5007_v17 = vpop.f32.mrf.mxu1 }
 0x534   :  { %v5008_v51 = vadd.f32 %v5007_v17, %v4993_v38  ;;  %v8819_v38 = vld [vmem:[%s10201_s7 + $0x78] sm:$0xff] }
 0x536   :  { %v5042_v20 = vadd.f32 %v5008_v51, %v4493_v9  ;;  %v8818_v9 = vld [vmem:[%s10201_s7 + $0x70] sm:$0xff]  ;;  %v8808_v51 = vld [vmem:[%s10201_s7 + $0x20] sm:$0xff] }
 0x538   :  { %v5060_v53 = vadd.f32 %v5052_v39, %v5042_v20  ;;  %v8814_v20 = vld [vmem:[%s10201_s7 + $0x50] sm:$0xff] }
 0x53a   :  { %v5068_v49 = vmax.f32 %v5060_v53, 0.0  ;;  %v5021_v10 = vpop.f32.mrf.mxu2  ;;  %v5035_v11 = vpop.f32.mrf.mxu3 }
 0x53b   :  { %v5036_v15 = vadd.f32 %v5035_v11, %v5021_v10  ;;  %v4995_v62 = vpop.f32.mrf.mxu0  ;;  %v5009_v8 = vpop.f32.mrf.mxu1  ;;  %v5151_v11 = vld [vmem:[%s10206_s12] sm:$0x1] }
 0x53c   :  { %v5074_v45 = vmax.f32 %v5066_v48, %v5068_v49  ;;  %v5010_v25 = vadd.f32 %v5009_v8, %v4995_v62 }
 0x53d   :  { %v5043_v24 = vadd.f32 %v5036_v15, %v4521_v21 }
 0x53e   :  { %v5046_v18 = vadd.f32 %v5010_v25, %v4495_v46  ;;  %v8826_v46 = vld [vmem:[%s10201_s7 + $0xb0] sm:$0xff]  ;;  %v8835_v25 = vld [vmem:[%s10201_s7 + $0xf8] sm:$0xff] }
 0x53f   :  { %v5061_v35 = vadd.f32 %v5053_v14, %v5043_v24  ;;  %v8824_v24 = vld [vmem:[%s10201_s7 + $0xa0] sm:$0xff] }
 0x540   :  { %v5064_v0 = vadd.f32 %v5052_v39, %v5046_v18  ;;  %v8817_v39 = vld [vmem:[%s10201_s7 + $0x68] sm:$0xff]  ;;  %v8823_v18 = vld [vmem:[%s10201_s7 + $0x98] sm:$0xff] }
 0x541   :  { %v5069_v61 = vmax.f32 %v5061_v35, 0.0  ;;  %v8822_v35 = vld [vmem:[%s10201_s7 + $0x90] sm:$0xff] }
 0x542   :  { %v5072_v44 = vmax.f32 %v5064_v0, 0.0  ;;  %v5023_v31 = vpop.f32.mrf.mxu2  ;;  %v5037_v63 = vpop.f32.mrf.mxu3  ;;  %v8831_v0 = vld [vmem:[%s10201_s7 + $0xd8] sm:$0xff] }
 0x543   :  { %v5075_v52 = vmax.f32 %v5067_v42, %v5069_v61  ;;  %v5038_v5 = vadd.f32 %v5037_v63, %v5023_v31  ;;  %v8821_v42 = vld [vmem:[%s10201_s7 + $0x88] sm:$0xff]  ;;  %v8820_v61 = vld [vmem:[%s10201_s7 + $0x80] sm:$0xff] }
 0x544   :  { %v5076_v57 = vmax.f32 %v5070_v50, %v5072_v44  ;;  %v8829_v50 = vld [vmem:[%s10201_s7 + $0xc8] sm:$0xff]  ;;  %v8828_v44 = vld [vmem:[%s10201_s7 + $0xc0] sm:$0xff] }
 0x545   :  { %v5047_v54 = vadd.f32 %v5038_v5, %v4523_v29 }
 0x546   :  { %v5078_v33 = vpack.c.bf16 %v5076_v57, %v5074_v45  ;;  %v8843_v57 = vld [vmem:[%s10201_s7 + $0x138] sm:$0xff] }
 0x547   :  { %v5065_v16 = vadd.f32 %v5053_v14, %v5047_v54  ;;  %v8842_v54 = vld [vmem:[%s10201_s7 + $0x130] sm:$0xff] }
 0x548   :  { %5092 = vmatpush.bf16.msrb.mxu0 %v5078_v33  ;;  %5123 = vmatpush.bf16.msra.mxu2 %v5078_v33 }
 0x549   :  { %v5073_v23 = vmax.f32 %v5065_v16, 0.0 }
 0x54b   :  { %v5077_v40 = vmax.f32 %v5071_v43, %v5073_v23  ;;  %7943 = vmatmul.msk.bf16.vlgmr.msra.gmra.mxu2 %vm5081_vm2, %v7942_v12  ;;  %7940 = vmatmul.msk.bf16.vlgmr.msrb.gmra.mxu0 %vm5081_vm2, %v5080_v32  ;;  %v8849_v43 = vld [vmem:[%s10201_s7 + $0x168] sm:$0xff] }
 0x54c   :  { %5319 = vmatpush.bf16.msrb.mxu2 %v8811_v4  ;;  %v8850_v4 = vld [vmem:[%s10201_s7 + $0x170] sm:$0xff] }
 0x54d   :  { %v5079_v17 = vpack.c.bf16 %v5077_v40, %v5075_v52 }
 0x54f   :  { %5105 = vmatpush.bf16.msrb.mxu1 %v5079_v17  ;;  %5136 = vmatpush.bf16.msrb.mxu3 %v5079_v17 }
 0x550   :  { %5320 = vmatpush.bf16.msrb.mxu2 %v8810_v58  ;;  %v8859_v58 = vld [vmem:[%s10201_s7 + $0x1b8] sm:$0xff] }
 0x552   :  { %7941 = vmatmul.msk.bf16.vlgmr.msrb.gmra.mxu1 %vm5081_vm2, %v5080_v32  ;;  %7944 = vmatmul.msk.bf16.vlgmr.msrb.gmra.mxu3 %vm5081_vm2, %v7942_v12  ;;  %v8110_v12 = vld [vmem:[%s10206_s12 + $0x2] sm:$0x1]  ;;  %v8841_v32 = vld [vmem:[%s10201_s7 + $0x128] sm:$0xff] }
 0x553   :  { %5332 = vmatpush.bf16.msra.mxu3 %v8819_v38  ;;  %v8867_v38 = vld [vmem:[%s10201_s7 + $0x1f8] sm:$0xff] }
 0x554   :  { %5321 = vmatpush.bf16.msrb.mxu2 %v8809_v37 }
 0x557   :  { %5333 = vmatpush.bf16.msra.mxu3 %v8818_v9 }
 0x558   :  { %5322 = vmatpush.bf16.msrb.mxu2 %v8808_v51  ;;  %v8209_v51 = vld [vmem:[%s10206_s12 + $0x3] sm:$0x1] }
 0x55b   :  { %5334 = vmatpush.bf16.msra.mxu3 %v8817_v39  ;;  %v8840_v39 = vld [vmem:[%s10201_s7 + $0x120] sm:$0xff] }
 0x55c   :  { %5323 = vmatpush.bf16.msrb.mxu2 %v8807_v41  ;;  %v8858_v41 = vld [vmem:[%s10201_s7 + $0x1b0] sm:$0xff] }
 0x55f   :  { %5335 = vmatpush.bf16.msra.mxu3 %v8816_v3  ;;  %v8848_v3 = vld [vmem:[%s10201_s7 + $0x160] sm:$0xff] }
 0x560   :  { %5324 = vmatpush.bf16.msrb.mxu2 %v8806_v19  ;;  %v8839_v19 = vld [vmem:[%s10201_s7 + $0x118] sm:$0xff] }
 0x563   :  { %5336 = vmatpush.bf16.msra.mxu3 %v8815_v36  ;;  %v8866_v36 = vld [vmem:[%s10201_s7 + $0x1f0] sm:$0xff] }
 0x564   :  { %5325 = vmatpush.bf16.msrb.mxu2 %v8805_v26  ;;  %v8857_v26 = vld [vmem:[%s10201_s7 + $0x1a8] sm:$0xff] }
 0x567   :  { %5337 = vmatpush.bf16.msra.mxu3 %v8814_v20  ;;  %v8847_v20 = vld [vmem:[%s10201_s7 + $0x158] sm:$0xff] }
 0x568   :  { %5326 = vmatpush.bf16.msrb.mxu2 %v8804_v30  ;;  %v8838_v30 = vld [vmem:[%s10201_s7 + $0x110] sm:$0xff] }
 0x56b   :  { %5338 = vmatpush.bf16.msra.mxu3 %v8813_v55  ;;  %v8865_v55 = vld [vmem:[%s10201_s7 + $0x1e8] sm:$0xff] }
 0x56f   :  { %5339 = vmatpush.bf16.msra.mxu3 %v8812_v7  ;;  %v8846_v7 = vld [vmem:[%s10201_s7 + $0x150] sm:$0xff] }
 0x5c8   :  { %v5094_v53 = vpop.f32.mrf.mxu0 }
 0x5ce   :  { %v5125_v56 = vpop.f32.mrf.mxu2 }
 0x5cf   :  { %v5107_v34 = vpop.f32.mrf.mxu1  ;;  %v5142_v48 = vmax.f32 %v5094_v53, %v5125_v56  ;;  %v8856_v53 = vld [vmem:[%s10201_s7 + $0x1a0] sm:$0xff] }
 0x5d0   :  { %v5096_v22 = vpop.f32.mrf.mxu0  ;;  %v8864_v56 = vld [vmem:[%s10201_s7 + $0x1e0] sm:$0xff] }
 0x5d1   :  { %v5144_v49 = vpack.c.bf16 %v5142_v48, %v5142_v48  ;;  %v8845_v48 = vld [vmem:[%s10201_s7 + $0x148] sm:$0xff]  ;;  %v8855_v22 = vld [vmem:[%s10201_s7 + $0x198] sm:$0xff] }
 0x5d3   :  { %v5158_v10 = vsel %vm1533_vm4, %v5144_v49, 0  ;;  %v8863_v49 = vld [vmem:[%s10201_s7 + $0x1d8] sm:$0xff] }
 0x5d4   :  { %5170 = vmatpush.bf16.msra.mxu0 %v5158_v10  ;;  %5547 = vmatpush.bf16.msra.mxu2 %v5158_v10 }
 0x5d5   :  { %v5138_v21 = vpop.f32.mrf.mxu3 }
 0x5d6   :  { %v5143_v15 = vmax.f32 %v5107_v34, %v5138_v21  ;;  %v5127_v14 = vpop.f32.mrf.mxu2  ;;  %v8837_v34 = vld [vmem:[%s10201_s7 + $0x108] sm:$0xff]  ;;  %v8862_v21 = vld [vmem:[%s10201_s7 + $0x1d0] sm:$0xff] }
 0x5d7   :  { %v5109_v62 = vpop.f32.mrf.mxu1  ;;  %7945 = vmatmul.msk.bf16.vlgmr.msra.gmra.mxu0 %vm5152_vm5, %v5151_v11  ;;  %v8861_v14 = vld [vmem:[%s10201_s7 + $0x1c8] sm:$0xff] }
 0x5d8   :  { %5358 = vmatpush.bf16.msrb.mxu0 %v5158_v10  ;;  %v5145_v8 = vpack.c.bf16 %v5143_v15, %v5143_v15  ;;  %v8853_v15 = vld [vmem:[%s10201_s7 + $0x188] sm:$0xff] }
 0x5da   :  { %v5161_v45 = vsel %vm1533_vm4, %v5145_v8, 0  ;;  %v8852_v8 = vld [vmem:[%s10201_s7 + $0x180] sm:$0xff] }
 0x5db   :  { %5183 = vmatpush.bf16.msra.mxu1 %v5161_v45  ;;  %5560 = vmatpush.bf16.msrb.mxu3 %v5161_v45 }
 0x5dc   :  { %5508 = vmatpush.bf16.msra.mxu0 %v8827_v13  ;;  %v8854_v13 = vld [vmem:[%s10201_s7 + $0x190] sm:$0xff] }
 0x5dd   :  { %v5140_v47 = vpop.f32.mrf.mxu3 }
 0x5de   :  { %7946 = vmatmul.msk.bf16.vlgmr.msra.gmra.mxu1 %vm5152_vm5, %v5151_v11  ;;  %v8844_v11 = vld [vmem:[%s10201_s7 + $0x140] sm:$0xff] }
 0x5df   :  { %5371 = vmatpush.bf16.msrb.mxu1 %v5161_v45 }
 0x5e0   :  { %5509 = vmatpush.bf16.msra.mxu0 %v8826_v46  ;;  %v8860_v46 = vld [vmem:[%s10201_s7 + $0x1c0] sm:$0xff] }
 0x5e3   :  { %5521 = vmatpush.bf16.msra.mxu1 %v8835_v25 }
 0x5e4   :  { %5510 = vmatpush.bf16.msra.mxu0 %v8825_v1 }
 0x5e7   :  { %5522 = vmatpush.bf16.msra.mxu1 %v8834_v27  ;;  %8012 = vmatmul.msk.bf16.vlgmr.msrb.gmra.mxu0 %vm5152_vm5, %v8011_v60  ;;  %v8882_v27 = vld [vmem:[%s10202_s8] ss:$0 sm:$0xff] }
 0x5e8   :  { %5511 = vmatpush.bf16.msra.mxu0 %v8824_v24 }
 0x5eb   :  { %5523 = vmatpush.bf16.msra.mxu1 %v8833_v59 }
 0x5ec   :  { %5512 = vmatpush.bf16.msra.mxu0 %v8823_v18 }
 0x5ee   :  { %8013 = vmatmul.msk.bf16.vlgmr.msrb.gmra.mxu1 %vm5152_vm5, %v8011_v60 }
 0x5ef   :  { %5524 = vmatpush.bf16.msra.mxu1 %v8832_v28 }
 0x5f0   :  { %5513 = vmatpush.bf16.msra.mxu0 %v8822_v35 }
 0x5f3   :  { %5525 = vmatpush.bf16.msra.mxu1 %v8831_v0 }
 0x5f4   :  { %5514 = vmatpush.bf16.msra.mxu0 %v8821_v42 }
 0x5f7   :  { %5526 = vmatpush.bf16.msra.mxu1 %v8830_v6 }
 0x5f8   :  { %5515 = vmatpush.bf16.msra.mxu0 %v8820_v61 }
 0x5fb   :  { %5527 = vmatpush.bf16.msra.mxu1 %v8829_v50 }
 0x5fc   :  { %5736 = vmatpush.bf16.msrb.mxu0 %v5158_v10  ;;  %v8836_v10 = vld [vmem:[%s10201_s7 + $0x100] sm:$0xff]  ;;  %s8990_s7 = smov [#allocation10]  }
 0x5fd   :  { %s5919_s8 = sshll.u32 %s8990_s7, 4  ;;  %s5920_s8 = int_to_ptr.vmem [resolvable:$true] %s5919_s8 }
 0x5ff   :  { %5528 = vmatpush.bf16.msra.mxu1 %v8828_v44 }
 0x603   :  { %5749 = vmatpush.bf16.msrb.mxu1 %v5161_v45 }
 0x654   :  { %v5172_v31 = vpop.f32.mrf.mxu0 }
 0x655   :  { %v5189_v63 = vpack.c.bf16 %v5172_v31, %v5172_v31 }
 0x657   :  { %5327 = vmatmul.bf16.vlgmr.msrb.gmra.mxu2 %v5189_v63 }
 0x658   :  { %5697 = vmatpush.bf16.msrb.mxu2 %v8843_v57 }
 0x65b   :  { %v5185_v29 = vpop.f32.mrf.mxu1 }
 0x65c   :  { %v5190_v52 = vpack.c.bf16 %v5185_v29, %v5185_v29  ;;  %v5174_v5 = vpop.f32.mrf.mxu0  ;;  %5698 = vmatpush.bf16.msrb.mxu2 %v8842_v54 }
 0x65e   :  { %5340 = vmatmul.bf16.vlgmr.msra.gmra.mxu3 %v5190_v52 }
 0x65f   :  { %5710 = vmatpush.bf16.msra.mxu3 %v8851_v2 }
 0x660   :  { %5699 = vmatpush.bf16.msrb.mxu2 %v8841_v32 }
 0x663   :  { %v5187_v33 = vpop.f32.mrf.mxu1  ;;  %5711 = vmatpush.bf16.msra.mxu3 %v8850_v4 }
 0x664   :  { %v5360_v16 = vpop.f32.mrf.mxu0  ;;  %5700 = vmatpush.bf16.msrb.mxu2 %v8840_v39 }
 0x665   :  { %v5377_v23 = vpack.c.bf16 %v5360_v16, %v5360_v16 }
 0x667   :  { %5516 = vmatmul.bf16.vlgmr.msra.gmra.mxu0 %v5377_v23  ;;  %8111 = vmatmul.msk.bf16.vlgmr.msra.gmra.mxu2 %vm5152_vm5, %v8110_v12 }
 0x668   :  { %5712 = vmatpush.bf16.msra.mxu3 %v8849_v43  ;;  %5886 = vmatpush.bf16.msra.mxu0 %v8859_v58 }
 0x669   :  { %5701 = vmatpush.bf16.msrb.mxu2 %v8839_v19 }
 0x66b   :  { %v5373_v40 = vpop.f32.mrf.mxu1 }
 0x66c   :  { %v5378_v17 = vpack.c.bf16 %v5373_v40, %v5373_v40  ;;  %v5362_v37 = vpop.f32.mrf.mxu0  ;;  %5713 = vmatpush.bf16.msra.mxu3 %v8848_v3  ;;  %5887 = vmatpush.bf16.msra.mxu0 %v8858_v41 }
 0x66d   :  { %5702 = vmatpush.bf16.msrb.mxu2 %v8838_v30 }
 0x66e   :  { %5529 = vmatmul.bf16.vlgmr.msra.gmra.mxu1 %v5378_v17  ;;  %8112 = vmatmul.msk.bf16.vlgmr.msrb.gmra.mxu3 %vm5152_vm5, %v8110_v12 }
 0x66f   :  { %5899 = vmatpush.bf16.msra.mxu1 %v8867_v38 }
 0x670   :  { %5714 = vmatpush.bf16.msra.mxu3 %v8847_v20  ;;  %5888 = vmatpush.bf16.msra.mxu0 %v8857_v26 }
 0x671   :  { %5703 = vmatpush.bf16.msrb.mxu2 %v8837_v34 }
 0x673   :  { %v5375_v9 = vpop.f32.mrf.mxu1  ;;  %5900 = vmatpush.bf16.msra.mxu1 %v8866_v36 }
 0x674   :  { %5715 = vmatpush.bf16.msra.mxu3 %v8846_v7  ;;  %5889 = vmatpush.bf16.msra.mxu0 %v8856_v53 }
 0x675   :  { %5704 = vmatpush.bf16.msrb.mxu2 %v8836_v10 }
 0x677   :  { %8210 = vmatmul.msk.bf16.vlgmr.msrb.gmra.mxu0 %vm5152_vm5, %v8209_v51  ;;  %5901 = vmatpush.bf16.msra.mxu1 %v8865_v55 }
 0x678   :  { %5716 = vmatpush.bf16.msra.mxu3 %v8845_v48  ;;  %5890 = vmatpush.bf16.msra.mxu0 %v8855_v22 }
 0x67b   :  { %5902 = vmatpush.bf16.msra.mxu1 %v8864_v56 }
 0x67c   :  { %5717 = vmatpush.bf16.msra.mxu3 %v8844_v11  ;;  %5891 = vmatpush.bf16.msra.mxu0 %v8854_v13 }
 0x67e   :  { %8211 = vmatmul.msk.bf16.vlgmr.msrb.gmra.mxu1 %vm5152_vm5, %v8209_v51 }
 0x67f   :  { %5903 = vmatpush.bf16.msra.mxu1 %v8863_v49 }
 0x680   :  { %5892 = vmatpush.bf16.msra.mxu0 %v8853_v15 }
 0x683   :  { %5904 = vmatpush.bf16.msra.mxu1 %v8862_v21 }
 0x684   :  { %5893 = vmatpush.bf16.msra.mxu0 %v8852_v8 }
 0x687   :  { %5905 = vmatpush.bf16.msra.mxu1 %v8861_v14 }
 0x68b   :  { %5906 = vmatpush.bf16.msra.mxu1 %v8860_v46 }
 0x6da   :  { %v5328_v62 = vpop.f32.mrf.mxu2 }
 0x6e1   :  { %v5341_v45 = vpop.f32.mrf.mxu3 }
 0x6e2   :  { %v5342_v25 = vadd.f32 %v5341_v45, %v5328_v62  ;;  %v5330_v1 = vpop.f32.mrf.mxu2 }
 0x6e4   :  { %v5517_v47 = vpop.f32.mrf.mxu0  ;;  %v5345_v28 = vadd.f32 %v8882_v27, %v5342_v25 }
 0x6e9   :  { %v5343_v24 = vpop.f32.mrf.mxu3 }
 0x6ea   :  { %v5549_v59 = vpop.f32.mrf.mxu2 }
 0x6eb   :  { %v5530_v18 = vpop.f32.mrf.mxu1  ;;  %v5566_v60 = vpack.c.bf16 %v5549_v59, %v5549_v59 }
 0x6ec   :  { %v5531_v35 = vadd.f32 %v5530_v18, %v5517_v47  ;;  %v5519_v0 = vpop.f32.mrf.mxu0 }
 0x6ed   :  { %5705 = vmatmul.bf16.vlgmr.msrb.gmra.mxu2 %v5566_v60 }
 0x6ee   :  { %v5534_v42 = vadd.f32 %v5531_v35, %v5345_v28 }
 0x6f1   :  { %v5562_v6 = vpop.f32.mrf.mxu3 }
 0x6f2   :  { %v5567_v61 = vpack.c.bf16 %v5562_v6, %v5562_v6  ;;  %v5551_v50 = vpop.f32.mrf.mxu2 }
 0x6f3   :  { %v5532_v44 = vpop.f32.mrf.mxu1 }
 0x6f4   :  { %5718 = vmatmul.bf16.vlgmr.msra.gmra.mxu3 %v5567_v61  ;;  %v5738_v31 = vpop.f32.mrf.mxu0 }
 0x6f5   :  { %v5755_v63 = vpack.c.bf16 %v5738_v31, %v5738_v31 }
 0x6f7   :  { %5894 = vmatmul.bf16.vlgmr.msra.gmra.mxu0 %v5755_v63 }
 0x6f9   :  { %v5564_v29 = vpop.f32.mrf.mxu3 }
 0x6fb   :  { %v5751_v52 = vpop.f32.mrf.mxu1 }
 0x6fc   :  { %v5756_v5 = vpack.c.bf16 %v5751_v52, %v5751_v52  ;;  %v5740_v57 = vpop.f32.mrf.mxu0 }
 0x6fe   :  { %5907 = vmatmul.bf16.vlgmr.msra.gmra.mxu1 %v5756_v5 }
 0x703   :  { %v5753_v2 = vpop.f32.mrf.mxu1 }
 0x770   :  { %v5706_v54 = vpop.f32.mrf.mxu2 }
 0x774   :  { %v5895_v4 = vpop.f32.mrf.mxu0 }
 0x777   :  { %v5719_v33 = vpop.f32.mrf.mxu3 }
 0x778   :  { %v5720_v16 = vadd.f32 %v5719_v33, %v5706_v54  ;;  %v5708_v12 = vpop.f32.mrf.mxu2 }
 0x77a   :  { %v5723_v43 = vadd.f32 %v5720_v16, %v5534_v42 }
 0x77b   :  { %v5908_v32 = vpop.f32.mrf.mxu1 }
 0x77c   :  { %v5909_v23 = vadd.f32 %v5908_v32, %v5895_v4  ;;  %v5897_v58 = vpop.f32.mrf.mxu0 }
 0x77e   :  { %v5912_v40 = vadd.f32 %v5909_v23, %v5723_v43 }
 0x77f   :  { %v5721_v38 = vpop.f32.mrf.mxu3 }
 0x780   :  { %5913 = vst [vmem:[#allocation10] sm:$0x3] %v5912_v40 }
 0x781   :  { %5924 = dma.vmem_to_hbm [thread:$0]  %s5920_s8, 32, %s5922_s29, [#allocation6]  }
 0x783   :  { %v5910_v17 = vpop.f32.mrf.mxu1 }
 0x784   :  { %8983 = dma.done.wait [#allocation6], 32  }
 0x785   :  { %8984 = vsyncadd [#allocation6], 4294967264 }
 0x786   :  { %5929 = vsyncpa [#allocation5], 1 }
 0x787   :  { %5930 = vsyncpa [#allocation8], 1 }
 0x788   :  { %5931 = vsyncpa [#allocation6], 1 }

</bundles_post_ra>
